<compile_context>
chip_gen: v7x
topology: tpu7x:2x2x1
jax: 0.10.0
libtpu: 0.0.40
codegen_flags: <defaults>
</compile_context>

<pallas_src>
import functools

import jax
import jax.numpy as jnp
import numpy as np
from jax.experimental import pallas as pl
from jax.experimental.pallas import tpu as pltpu

_LANE = 128      # TPU lane width: output channels padded to this
_SUBLANE = 8     # sublane granularity for the per-tile channel-max output


def _round_up(n, m):
    return (n + m - 1) // m * m


def _conv_chmax_kernel(p_ref, w_ref, i_ref, cmax_ref, *, m_real):
    """One row tile of the im2col matmul (the conv) plus this tile's
    per-out-channel max (input to the Adaptive Threshold Balance, ATB).

    Per-tile maxes go to a distinct (8, Cpad) output block per grid step so the
    row axis can be 'parallel' (sharded across TensorCores on multi-TC chips);
    the tiny cross-tile reduction happens outside the kernel."""
    cur = jnp.dot(p_ref[...], w_ref[...], preferred_element_type=jnp.float32)
    i_ref[...] = cur
    # Rows >= m_real are zero padding (M rounded up to a tile multiple); they
    # must not contribute to the channel max.
    row = (pl.program_id(0) * cur.shape[0]
           + jax.lax.broadcasted_iota(jnp.int32, cur.shape, 0))
    masked = jnp.where(row < m_real, cur, -jnp.inf)
    tile_max = jnp.max(masked, axis=0, keepdims=True)              # (1, Cpad)
    cmax_ref[...] = jnp.broadcast_to(tile_max, cmax_ref.shape)     # (8, Cpad)


def _spike_kernel(i_ref, cmax_ref, mem_ref, s_ref, *, decay):
    """ASF -> LIF -> WTA(k=1) on one row tile.  All math kept in f32: bf16 or
    approx-reciprocal here could flip spikes for neurons at the threshold."""
    thre = cmax_ref[...] + 1e-4            # (1, Cpad) ATB threshold
    bias = 0.4 * thre                      # hoisted per-channel constants
    slope = 8.0 / thre
    cur = jnp.maximum(i_ref[...], 0.0)                   # clamp(min=0)
    i_asf = thre / (1.0 + jnp.exp(-(cur - bias) * slope))
    mem = mem_ref[...] * decay + i_asf                   # LIF integration
    spike = (mem > thre).astype(jnp.float32)
    # WTA k=1 over channels, deterministic tie-break by membrane margin.
    # TODO(synk): original WTALayer breaks ties with torch.rand; here the
    # spiking channel with the largest (mem - thre) wins.
    pos = spike * (mem - thre) + spike
    keep = (pos >= jnp.max(pos, axis=-1, keepdims=True)).astype(jnp.float32)
    s_ref[...] = spike * keep
    # TODO(synk): lateral inhibition / membrane reset / threshold write-back
    # only mutate persistent LIF training state and are not returned.


def stdp_conv_forward(x, weight, mem0, *, stride=1, padding=1, decay=0.2,
                      tm=512, mxu_dtype=jnp.bfloat16):
    """x: (B,Cin,H,W) NCHW, weight: (Cout,Cin,kh,kw), mem0: (B,Cout,Ho,Wo).

    Returns spikes (B,Cout,Ho,Wo), matching STDPConv.forward in eval mode."""
    B, Cin, H, W = x.shape
    Cout, Cin_w, kh, kw = weight.shape
    assert Cin == Cin_w  # TODO(synk): groups > 1 not supported in this kernel
    Ho = (H + 2 * padding - kh) // stride + 1
    Wo = (W + 2 * padding - kw) // stride + 1

    M = B * Ho * Wo
    K = kh * kw * Cin
    Cpad = _round_up(Cout, _LANE)        # lane-dense output channels
    Mpad = _round_up(M, tm)              # no M % tm restriction
    n_tiles = Mpad // tm

    # ---- glue: channel-last im2col (K order = (kh, kw, Cin)); avoids the big
    # NCHW transposes of a naive im2col.  TODO(synk): fold the kh*kw taps into
    # an in-kernel K/grid axis to remove the kh*kw HBM blow-up entirely.
    xp = jnp.pad(jnp.transpose(x, (0, 2, 3, 1)),                  # NHWC
                 ((0, 0), (padding, padding), (padding, padding), (0, 0)))
    cols = [xp[:, ki:ki + stride * Ho:stride, kj:kj + stride * Wo:stride, :]
            for ki in range(kh) for kj in range(kw)]
    patches = jnp.concatenate(cols, axis=-1).reshape(M, K)
    patches = jnp.pad(patches, ((0, Mpad - M), (0, 0))).astype(mxu_dtype)

    w_mat = jnp.transpose(weight, (2, 3, 1, 0)).reshape(K, Cout)  # (K, Cout)
    w_mat = jnp.pad(w_mat, ((0, 0), (0, Cpad - Cout))).astype(mxu_dtype)

    mem_mat = jnp.transpose(mem0, (0, 2, 3, 1)).reshape(M, Cout)
    mem_mat = jnp.pad(mem_mat, ((0, Mpad - M), (0, Cpad - Cout)))
    mem_mat = mem_mat.astype(jnp.float32)

    grid = (n_tiles,)
    # Explicit scoped-VMEM budget: tiles here are well under 2 MiB per buffer,
    # 32 MiB leaves ample headroom even on v7x's 64 MiB physical VMEM.
    cparams = pltpu.CompilerParams(
        dimension_semantics=("parallel",),
        vmem_limit_bytes=32 * 1024 * 1024)

    # ---- pass 1: conv current (f32) + per-tile per-channel max (ATB) ----
    i_mat, cmax_tiles = pl.pallas_call(
        functools.partial(_conv_chmax_kernel, m_real=M),
        out_shape=(jax.ShapeDtypeStruct((Mpad, Cpad), jnp.float32),
                   jax.ShapeDtypeStruct((n_tiles * _SUBLANE, Cpad),
                                        jnp.float32)),
        grid_spec=pltpu.PrefetchScalarGridSpec(
            num_scalar_prefetch=0, grid=grid,
            in_specs=[pl.BlockSpec((tm, K), lambda m: (m, 0)),
                      pl.BlockSpec((K, Cpad), lambda m: (0, 0))],
            out_specs=[pl.BlockSpec((tm, Cpad), lambda m: (m, 0)),
                       pl.BlockSpec((_SUBLANE, Cpad), lambda m: (m, 0))]),
        compiler_params=cparams,
    )(patches, w_mat)

    # tiny cross-tile reduction of the per-channel max (f32)
    cmax = jnp.max(cmax_tiles, axis=0, keepdims=True)             # (1, Cpad)

    # ---- pass 2: ASF + LIF + WTA; spikes overwrite i_mat in place ----
    s_mat = pl.pallas_call(
        functools.partial(_spike_kernel, decay=decay),
        out_shape=jax.ShapeDtypeStruct((Mpad, Cpad), jnp.float32),
        grid_spec=pltpu.PrefetchScalarGridSpec(
            num_scalar_prefetch=0, grid=grid,
            in_specs=[pl.BlockSpec((tm, Cpad), lambda m: (m, 0)),
                      pl.BlockSpec((1, Cpad), lambda m: (0, 0)),
                      pl.BlockSpec((tm, Cpad), lambda m: (m, 0))],
            out_specs=pl.BlockSpec((tm, Cpad), lambda m: (m, 0))),
        compiler_params=cparams,
        input_output_aliases={0: 0},
    )(i_mat, cmax, mem_mat)

    # ---- glue: strip row/channel padding, back to NCHW ----
    spikes = s_mat[:M, :Cout].reshape(B, Ho, Wo, Cout).transpose(0, 3, 1, 2)
    return spikes
    # TODO(synk): training-mode dw (autograd w.r.t. conv weight), trace update
    # and persistent LIF/threshold state are not part of the returned value
    # and are not implemented.


def _reference(x, weight, mem0, stride, padding, decay, mxu_dtype):
    """Plain-JAX reference of the same forward; conv uses the same MXU operand
    precision as the kernel so the comparison is apples-to-apples."""
    i = jax.lax.conv_general_dilated(
        x.astype(mxu_dtype), weight.astype(mxu_dtype), (stride, stride),
        [(padding, padding)] * 2,
        dimension_numbers=('NCHW', 'OIHW', 'NCHW'),
        preferred_element_type=jnp.float32)
    thre = i.max(axis=(0, 2, 3), keepdims=True) + 1e-4
    cur = jnp.maximum(i, 0.0)
    i_asf = thre / (1.0 + jnp.exp(-(cur - 0.4 * thre) * (8.0 / thre)))
    mem = mem0 * decay + i_asf
    spike = (mem > thre).astype(jnp.float32)
    pos = spike * (mem - thre) + spike
    keep = (pos >= pos.max(axis=1, keepdims=True)).astype(jnp.float32)
    return spike * keep


if __name__ == "__main__":
    key = jax.random.PRNGKey(0)
    kx, kw_, km = jax.random.split(key, 3)

    B, Cin, H, W = 2, 4, 16, 16
    Cout, ksz, stride, padding = 8, 3, 1, 1
    decay = 0.2

    # binary input spikes
    x = (jax.random.uniform(kx, (B, Cin, H, W)) < 0.3).astype(jnp.float32)

    # deterministic weight init + normweight(clip=False):
    # per-filter zero-mean / unit-std (unbiased=False)
    w = jax.random.normal(kw_, (Cout, Cin, ksz, ksz), jnp.float32)
    w = (w - w.mean(axis=(1, 2, 3), keepdims=True)) / \
        w.std(axis=(1, 2, 3), keepdims=True)

    # persistent LIF membrane state (zero right after reset(); nonzero here so
    # that some neurons actually cross the adaptive threshold)
    mem0 = jax.random.uniform(km, (B, Cout, H, W), dtype=jnp.float32) * 4.0

    fwd = jax.jit(functools.partial(stdp_conv_forward, stride=stride,
                                    padding=padding, decay=decay))
    spikes = jax.block_until_ready(fwd(x, w, mem0))

    ref = _reference(x, w, mem0, stride, padding, decay, jnp.bfloat16)
    mismatch = float(np.mean(np.asarray(spikes) != np.asarray(ref)))
    assert spikes.shape == (B, Cout, H, W)
    assert mismatch < 0.01, f"spike mismatch fraction {mismatch}"

    print("KERNEL_OK")
</pallas_src>

<mosaic_0001>
module attributes {stable_mosaic.version = 11 : i64} {
  func.func @_conv_chmax_kernel(%arg0: i32, %arg1: memref<512x36xbf16, #tpu.memory_space<vmem>>, %arg2: memref<36x128xbf16, #tpu.memory_space<vmem>>, %arg3: memref<512x128xf32, #tpu.memory_space<vmem>>, %arg4: memref<8x128xf32, #tpu.memory_space<vmem>>) attributes {dimension_semantics = [#tpu.dimension_semantics<parallel>], iteration_bounds = array<i64: 1>, scalar_prefetch = 0 : i64, scratch_operands = 0 : i64, tpu.core_type = #tpu.core_type<tc>, window_params = [{transform_indices = @transform_0, window_bounds = array<i64: 512, 36>}, {pipeline_mode = #tpu.pipeline_mode<synchronous>, transform_indices = @transform_1, window_bounds = array<i64: 36, 128>}, {transform_indices = @transform_2, window_bounds = array<i64: 512, 128>}, {transform_indices = @transform_3, window_bounds = array<i64: 8, 128>}]} {
    %c0 = arith.constant 0 : index
    %c0_0 = arith.constant 0 : index
    %0 = vector.load %arg1[%c0, %c0_0] : memref<512x36xbf16, #tpu.memory_space<vmem>>, vector<512x36xbf16>
    %c0_1 = arith.constant 0 : index
    %c0_2 = arith.constant 0 : index
    %1 = vector.load %arg2[%c0_1, %c0_2] : memref<36x128xbf16, #tpu.memory_space<vmem>>, vector<36x128xbf16>
    %cst = arith.constant dense<0.000000e+00> : vector<512x128xf32>
    %2 = tpu.matmul %0, %1, %cst {dimension_numbers = #tpu.dot_dimension_numbers<[1], [0], [0], [1], [0, 0, 1, 1], [], []>} : vector<512x36xbf16>, vector<36x128xbf16>, vector<512x128xf32> -> vector<512x128xf32>
    %c0_3 = arith.constant 0 : index
    %c0_4 = arith.constant 0 : index
    %3 = vector.load %arg3[%c0_3, %c0_4] : memref<512x128xf32, #tpu.memory_space<vmem>>, vector<512x128xf32>
    tpu.vector_store %arg3[%c0_3, %c0_4], %2 {strides = array<i32>} : memref<512x128xf32, #tpu.memory_space<vmem>>, vector<512x128xf32>,
    %c512_i32 = arith.constant 512 : i32
    %4 = arith.muli %arg0, %c512_i32 : i32
    %5 = tpu.iota {dimensions = array<i32: 0>} : vector<512x128xi32>
    %6 = vector.broadcast %4 : i32 to vector<512x128xi32>
    %7 = arith.addi %6, %5 : vector<512x128xi32>
    %c512_i32_5 = arith.constant 512 : i32
    %8 = vector.broadcast %c512_i32_5 : i32 to vector<512x128xi32>
    %9 = arith.cmpi slt, %7, %8 : vector<512x128xi32>
    %cst_6 = arith.constant 0xFF800000 : f32
    %10 = vector.broadcast %cst_6 : f32 to vector<512x128xf32>
    %11 = arith.select %9, %2, %10 : vector<512x128xi1>, vector<512x128xf32>
    %cst_7 = arith.constant dense<0xFF800000> : vector<128xf32>
    %12 = vector.multi_reduction <maximumf>, %11, %cst_7 [0] : vector<512x128xf32> to vector<128xf32>
    %13 = vector.shape_cast %12 : vector<128xf32> to vector<1x128xf32>
    %14 = vector.shape_cast %13 : vector<1x128xf32> to vector<1x128xf32>
    %15 = vector.broadcast %14 : vector<1x128xf32> to vector<8x128xf32>
    %c0_8 = arith.constant 0 : index
    %c0_9 = arith.constant 0 : index
    %16 = vector.load %arg4[%c0_8, %c0_9] : memref<8x128xf32, #tpu.memory_space<vmem>>, vector<8x128xf32>
    tpu.vector_store %arg4[%c0_8, %c0_9], %15 {strides = array<i32>} : memref<8x128xf32, #tpu.memory_space<vmem>>, vector<8x128xf32>,
    return
  }
  func.func @transform_0(%arg0: i32) -> (i32, i32) {
    %c0_i32 = arith.constant 0 : i32
    %c0_i32_0 = arith.constant 0 : i32
    return %arg0, %c0_i32 : i32, i32
  }
  func.func @transform_1(%arg0: i32) -> (i32, i32) {
    %c0_i32 = arith.constant 0 : i32
    %c0_i32_0 = arith.constant 0 : i32
    %c0_i32_1 = arith.constant 0 : i32
    return %c0_i32, %c0_i32_0 : i32, i32
  }
  func.func @transform_2(%arg0: i32) -> (i32, i32) {
    %c0_i32 = arith.constant 0 : i32
    %c0_i32_0 = arith.constant 0 : i32
    return %arg0, %c0_i32 : i32, i32
  }
  func.func @transform_3(%arg0: i32) -> (i32, i32) {
    %c0_i32 = arith.constant 0 : i32
    %c0_i32_0 = arith.constant 0 : i32
    return %arg0, %c0_i32 : i32, i32
  }
}

module attributes {stable_mosaic.version = 11 : i64} {
  func.func @_spike_kernel(%arg0: i32, %arg1: memref<512x128xf32, #tpu.memory_space<vmem>>, %arg2: memref<1x128xf32, #tpu.memory_space<vmem>>, %arg3: memref<512x128xf32, #tpu.memory_space<vmem>>, %arg4: memref<512x128xf32, #tpu.memory_space<vmem>>) attributes {dimension_semantics = [#tpu.dimension_semantics<parallel>], iteration_bounds = array<i64: 1>, scalar_prefetch = 0 : i64, scratch_operands = 0 : i64, tpu.core_type = #tpu.core_type<tc>, window_params = [{transform_indices = @transform_0, window_bounds = array<i64: 512, 128>}, {pipeline_mode = #tpu.pipeline_mode<synchronous>, transform_indices = @transform_1, window_bounds = array<i64: 1, 128>}, {transform_indices = @transform_2, window_bounds = array<i64: 512, 128>}, {transform_indices = @transform_3, window_bounds = array<i64: 512, 128>}]} {
    %c0 = arith.constant 0 : index
    %c0_0 = arith.constant 0 : index
    %0 = vector.load %arg2[%c0, %c0_0] : memref<1x128xf32, #tpu.memory_space<vmem>>, vector<1x128xf32>
    %cst = arith.constant 9.99999974E-5 : f32
    %1 = vector.broadcast %cst : f32 to vector<1x128xf32>
    %2 = arith.addf %0, %1 : vector<1x128xf32>
    %cst_1 = arith.constant 4.000000e-01 : f32
    %3 = vector.broadcast %cst_1 : f32 to vector<1x128xf32>
    %4 = arith.mulf %3, %2 : vector<1x128xf32>
    %cst_2 = arith.constant 8.000000e+00 : f32
    %5 = vector.broadcast %cst_2 : f32 to vector<1x128xf32>
    %6 = arith.divf %5, %2 : vector<1x128xf32>
    %c0_3 = arith.constant 0 : index
    %c0_4 = arith.constant 0 : index
    %7 = vector.load %arg1[%c0_3, %c0_4] : memref<512x128xf32, #tpu.memory_space<vmem>>, vector<512x128xf32>
    %cst_5 = arith.constant 0.000000e+00 : f32
    %8 = vector.broadcast %cst_5 : f32 to vector<512x128xf32>
    %9 = arith.maximumf %7, %8 : vector<512x128xf32>
    %10 = vector.broadcast %4 : vector<1x128xf32> to vector<512x128xf32>
    %11 = arith.subf %9, %10 : vector<512x128xf32>
    %cst_6 = arith.constant 0.000000e+00 : f32
    %12 = vector.broadcast %cst_6 : f32 to vector<512x128xf32>
    %13 = arith.subf %12, %11 : vector<512x128xf32>
    %14 = vector.broadcast %6 : vector<1x128xf32> to vector<512x128xf32>
    %15 = arith.mulf %13, %14 : vector<512x128xf32>
    %16 = math.exp %15 : vector<512x128xf32>
    %cst_7 = arith.constant 1.000000e+00 : f32
    %17 = vector.broadcast %cst_7 : f32 to vector<512x128xf32>
    %18 = arith.addf %17, %16 : vector<512x128xf32>
    %19 = vector.broadcast %2 : vector<1x128xf32> to vector<512x128xf32>
    %20 = arith.divf %19, %18 : vector<512x128xf32>
    %c0_8 = arith.constant 0 : index
    %c0_9 = arith.constant 0 : index
    %21 = vector.load %arg3[%c0_8, %c0_9] : memref<512x128xf32, #tpu.memory_space<vmem>>, vector<512x128xf32>
    %cst_10 = arith.constant 2.000000e-01 : f32
    %22 = vector.broadcast %cst_10 : f32 to vector<512x128xf32>
    %23 = arith.mulf %21, %22 : vector<512x128xf32>
    %24 = arith.addf %23, %20 : vector<512x128xf32>
    %25 = vector.broadcast %2 : vector<1x128xf32> to vector<512x128xf32>
    %26 = arith.cmpf ogt, %24, %25 : vector<512x128xf32>
    %27 = arith.extui %26 : vector<512x128xi1> to vector<512x128xi32>
    %28 = arith.sitofp %27 : vector<512x128xi32> to vector<512x128xf32>
    %29 = vector.broadcast %2 : vector<1x128xf32> to vector<512x128xf32>
    %30 = arith.subf %24, %29 : vector<512x128xf32>
    %31 = arith.mulf %28, %30 : vector<512x128xf32>
    %32 = arith.addf %31, %28 : vector<512x128xf32>
    %cst_11 = arith.constant dense<0xFF800000> : vector<512xf32>
    %33 = vector.multi_reduction <maximumf>, %32, %cst_11 [1] : vector<512x128xf32> to vector<512xf32>
    %34 = vector.shape_cast %33 : vector<512xf32> to vector<512x1xf32>
    %35 = vector.broadcast %34 : vector<512x1xf32> to vector<512x128xf32>
    %36 = arith.cmpf oge, %32, %35 : vector<512x128xf32>
    %37 = arith.extui %36 : vector<512x128xi1> to vector<512x128xi32>
    %38 = arith.sitofp %37 : vector<512x128xi32> to vector<512x128xf32>
    %39 = arith.mulf %28, %38 : vector<512x128xf32>
    %c0_12 = arith.constant 0 : index
    %c0_13 = arith.constant 0 : index
    %40 = vector.load %arg4[%c0_12, %c0_13] : memref<512x128xf32, #tpu.memory_space<vmem>>, vector<512x128xf32>
    tpu.vector_store %arg4[%c0_12, %c0_13], %39 {strides = array<i32>} : memref<512x128xf32, #tpu.memory_space<vmem>>, vector<512x128xf32>,
    return
  }
  func.func @transform_0(%arg0: i32) -> (i32, i32) {
    %c0_i32 = arith.constant 0 : i32
    %c0_i32_0 = arith.constant 0 : i32
    return %arg0, %c0_i32 : i32, i32
  }
  func.func @transform_1(%arg0: i32) -> (i32, i32) {
    %c0_i32 = arith.constant 0 : i32
    %c0_i32_0 = arith.constant 0 : i32
    %c0_i32_1 = arith.constant 0 : i32
    return %c0_i32, %c0_i32_0 : i32, i32
  }
  func.func @transform_2(%arg0: i32) -> (i32, i32) {
    %c0_i32 = arith.constant 0 : i32
    %c0_i32_0 = arith.constant 0 : i32
    return %arg0, %c0_i32 : i32, i32
  }
  func.func @transform_3(%arg0: i32) -> (i32, i32) {
    %c0_i32 = arith.constant 0 : i32
    %c0_i32_0 = arith.constant 0 : i32
    return %arg0, %c0_i32 : i32, i32
  }
}

</mosaic_0001>

<bundles_post_ra>
// kernel: stdp_conv_forward.2
= control target key start
LH: loop header
LB: loop body
LE: loop exit
PB: predicated region body
PF: predicated region fallthrough
CT: control target
= control target key end

     0   :  { %vm258_vm0 = vcmask 293888   ;;  %vm355_vm1 = vcmask 1041408   ;;  %s1616_s1 = inlined_call_operand.vmem [shape: bf16[36,128], index: 1, kind: input, shape index: {}]   ;;  %s1617_s0 = inlined_call_operand.vmem [shape: bf16[512,36], index: 0, kind: input, shape index: {}]   ;;  %s1618_s2 = inlined_call_operand.vmem [shape: f32[512,128], index: 2, kind: output, shape index: {0}]   ;;  %s1619_s3 = inlined_call_operand.vmem [shape: f32[8,128], index: 3, kind: output, shape index: {1}]  }
   0x1   :  { %v1229_v0 = vld [vmem:[%s1616_s1] sm:$0xff]   ;;  %v1230_v1 = vld [vmem:[%s1616_s1 + $0x8] sm:$0xff]   ;;  %v1231_v2 = vld [vmem:[%s1616_s1 + $0x10] ss:$0 sps:$4 sm:$0x33]  }
   0x2   :  { %1151 = vmatprep.subr.bf16.mxu0 %v1229_v0  ;;  %v1232_v3 = vld [vmem:[%s1617_s0] sm:$0xff]   ;;  %1221 = vmatprep.subr.bf16.mxu1 %v1229_v0  ;;  %v357_v5 = vsel %vm355_vm1, %v1231_v2, 0  ;;  %v1233_v6 = vld [vmem:[%s1617_s0 + $0x8] sm:$0xff]   ;;  %v1234_v7 = vld [vmem:[%s1617_s0 + $0x10] sm:$0xff]  }
   0x3   :  { %1152 = vmatpush3.bf16.msra.mxu0 %v1229_v0  ;;  %1224 = vmatpush3.bf16.msra.mxu1 %v1229_v0  ;;  %v1236_v4 = vld [vmem:[%s1617_s0 + $0x80] sm:$0xff]   ;;  %v1237_v8 = vld [vmem:[%s1617_s0 + $0x88] sm:$0xff]   ;;  %v1240_v9 = vld [vmem:[%s1617_s0 + $0x90] sm:$0xff]  }
   0x4   :  { %1153 = vmatprep.subr.bf16.mxu0 %v1230_v1  ;;  %1157 = vmatprep.mubr.msk.bf16.mxu0 %vm258_vm0, %v1232_v3  ;;  %v1235_v10 = vld [vmem:[%s1617_s0 + $0x18] sm:$0xff]   ;;  %v1238_v11 = vld [vmem:[%s1617_s0 + $0x20] sm:$0xff]   ;;  %v1239_v14 = vld [vmem:[%s1617_s0 + $0x28] sm:$0xff]  }
   0x5   :  { %1222 = vmatprep.subr.bf16.mxu1 %v1230_v1  ;;  %1189 = vmatprep.mubr.msk.bf16.mxu1 %vm258_vm0, %v1236_v4  ;;  %v1241_v12 = vld [vmem:[%s1617_s0 + $0x98] sm:$0xff]   ;;  %v1244_v13 = vld [vmem:[%s1617_s0 + $0xa0] sm:$0xff]   ;;  %v1242_v15 = vld [vmem:[%s1617_s0 + $0x30] sm:$0xff]  }
   0x6   :  { %v1245_v16 = vld [vmem:[%s1617_s0 + $0xa8] sm:$0xff]   ;;  %v1248_v17 = vld [vmem:[%s1617_s0 + $0xb0] sm:$0xff]   ;;  %v1243_v18 = vld [vmem:[%s1617_s0 + $0x38] sm:$0xff]  }
   0x7   :  { %1154 = vmatpush3.bf16.msra.mxu0 %v1230_v1  ;;  %1225 = vmatpush3.bf16.msra.mxu1 %v1230_v1  ;;  %v1249_v19 = vld [vmem:[%s1617_s0 + $0xb8] sm:$0xff]   ;;  %v1246_v20 = vld [vmem:[%s1617_s0 + $0x40] sm:$0xff]   ;;  %v1247_v22 = vld [vmem:[%s1617_s0 + $0x48] sm:$0xff]  }
   0x8   :  { %1227 = vmatprep.subr.msk.bf16.mxu0 %vm355_vm1, %v1231_v2  ;;  %1228 = vmatprep.subr.msk.bf16.mxu1 %vm355_vm1, %v1231_v2  ;;  %v1252_v21 = vld [vmem:[%s1617_s0 + $0xc0] sm:$0xff]   ;;  %v1253_v23 = vld [vmem:[%s1617_s0 + $0xc8] sm:$0xff]   ;;  %v1250_v24 = vld [vmem:[%s1617_s0 + $0x50] sm:$0xff]  }
   0x9   :  { %v1256_v25 = vld [vmem:[%s1617_s0 + $0xd0] sm:$0xff]   ;;  %v1251_v26 = vld [vmem:[%s1617_s0 + $0x58] sm:$0xff]   ;;  %v1254_v28 = vld [vmem:[%s1617_s0 + $0x60] sm:$0xff]  }
   0xa   :  { %v1257_v27 = vld [vmem:[%s1617_s0 + $0xd8] sm:$0xff]   ;;  %v1260_v29 = vld [vmem:[%s1617_s0 + $0xe0] sm:$0xff]   ;;  %v1255_v30 = vld [vmem:[%s1617_s0 + $0x68] sm:$0xff]  }
   0xb   :  { %1156 = vmatpush3.bf16.msra.mxu0 %v357_v5  ;;  %1226 = vmatpush3.bf16.msra.mxu1 %v357_v5  ;;  %v1261_v31 = vld [vmem:[%s1617_s0 + $0xe8] sm:$0xff]   ;;  %v1258_v32 = vld [vmem:[%s1617_s0 + $0x70] sm:$0xff]   ;;  %v1259_v34 = vld [vmem:[%s1617_s0 + $0x78] sm:$0xff]  }
   0xc   :  { %v1262_v33 = vld [vmem:[%s1617_s0 + $0xf0] sm:$0xff]   ;;  %v1263_v35 = vld [vmem:[%s1617_s0 + $0xf8] sm:$0xff]  }
   0xe   :  { %1158 = vmatmul.mubr.msk.bf16.vlgmr.msra.gmra.mrb[0].mxu0 %vm258_vm0, %v1233_v6  ;;  %1190 = vmatmul.mubr.msk.bf16.vlgmr.msra.gmra.mrb[0].mxu1 %vm258_vm0, %v1237_v8 }
   0xf   :  { %1161 = vmatprep.mubr.msk.bf16.mxu0 %vm258_vm0, %v1234_v7  ;;  %1193 = vmatprep.mubr.msk.bf16.mxu1 %vm258_vm0, %v1240_v9 }
  0x16   :  { %1162 = vmatmul.mubr.msk.bf16.gmra.mrb[4].mxu0 %vm258_vm0, %v1235_v10  ;;  %1194 = vmatmul.mubr.msk.bf16.gmra.mrb[4].mxu1 %vm258_vm0, %v1241_v12 }
  0x17   :  { %1165 = vmatprep.mubr.msk.bf16.mxu0 %vm258_vm0, %v1238_v11  ;;  %1197 = vmatprep.mubr.msk.bf16.mxu1 %vm258_vm0, %v1244_v13 }
  0x1e   :  { %1166 = vmatmul.mubr.msk.bf16.gmra.mrb[8].mxu0 %vm258_vm0, %v1239_v14  ;;  %1198 = vmatmul.mubr.msk.bf16.gmra.mrb[8].mxu1 %vm258_vm0, %v1245_v16 }
  0x1f   :  { %1169 = vmatprep.mubr.msk.bf16.mxu0 %vm258_vm0, %v1242_v15  ;;  %1201 = vmatprep.mubr.msk.bf16.mxu1 %vm258_vm0, %v1248_v17 }
  0x26   :  { %1170 = vmatmul.mubr.msk.bf16.gmra.mrb[12].mxu0 %vm258_vm0, %v1243_v18  ;;  %1202 = vmatmul.mubr.msk.bf16.gmra.mrb[12].mxu1 %vm258_vm0, %v1249_v19 }
  0x27   :  { %1173 = vmatprep.mubr.msk.bf16.mxu0 %vm258_vm0, %v1246_v20  ;;  %1205 = vmatprep.mubr.msk.bf16.mxu1 %vm258_vm0, %v1252_v21 }
  0x2e   :  { %1174 = vmatmul.mubr.msk.bf16.gmra.mrb[16].mxu0 %vm258_vm0, %v1247_v22  ;;  %1206 = vmatmul.mubr.msk.bf16.gmra.mrb[16].mxu1 %vm258_vm0, %v1253_v23 }
  0x2f   :  { %1177 = vmatprep.mubr.msk.bf16.mxu0 %vm258_vm0, %v1250_v24  ;;  %1209 = vmatprep.mubr.msk.bf16.mxu1 %vm258_vm0, %v1256_v25 }
  0x36   :  { %1178 = vmatmul.mubr.msk.bf16.gmra.mrb[20].mxu0 %vm258_vm0, %v1251_v26  ;;  %1210 = vmatmul.mubr.msk.bf16.gmra.mrb[20].mxu1 %vm258_vm0, %v1257_v27 }
  0x37   :  { %1181 = vmatprep.mubr.msk.bf16.mxu0 %vm258_vm0, %v1254_v28  ;;  %1213 = vmatprep.mubr.msk.bf16.mxu1 %vm258_vm0, %v1260_v29 }
  0x3e   :  { %1182 = vmatmul.mubr.msk.bf16.gmra.mrb[24].mxu0 %vm258_vm0, %v1255_v30  ;;  %1214 = vmatmul.mubr.msk.bf16.gmra.mrb[24].mxu1 %vm258_vm0, %v1261_v31 }
  0x3f   :  { %1185 = vmatprep.mubr.msk.bf16.mxu0 %vm258_vm0, %v1258_v32  ;;  %1217 = vmatprep.mubr.msk.bf16.mxu1 %vm258_vm0, %v1262_v33 }
  0x46   :  { %1186 = vmatmul.mubr.msk.bf16.gmra.mrb[28].mxu0 %vm258_vm0, %v1259_v34  ;;  %1218 = vmatmul.mubr.msk.bf16.gmra.mrb[28].mxu1 %vm258_vm0, %v1263_v35 }
  0xe1   :  { %v1159_v36 = vpop.f32.mrb[0].mxu0  ;;  %v1191_v37 = vpop.f32.mrb[0].mxu1 }
  0xe2   :  { %650 = vst [vmem:[%s1618_s2 + $0x10] sm:$0xff] %v1159_v36  ;;  %v393_v38 = vpop.f32.mrb[1].mxu0  ;;  %682 = vst [vmem:[%s1618_s2 + $0x110] sm:$0xff] %v1191_v37  ;;  %v521_v39 = vpop.f32.mrb[1].mxu1 }
  0xe3   :  { %648 = vst [vmem:[%s1618_s2] sm:$0xff] %v393_v38  ;;  %v1160_v40 = vpop.f32.mrb[2].mxu0  ;;  %v1001_v41 = vmax.f32 %v521_v39, %v1191_v37  ;;  %680 = vst [vmem:[%s1618_s2 + $0x100] sm:$0xff] %v521_v39  ;;  %v1192_v42 = vpop.f32.mrb[2].mxu1 }
  0xe4   :  { %651 = vst [vmem:[%s1618_s2 + $0x18] sm:$0xff] %v1160_v40  ;;  %v396_v43 = vpop.f32.mrb[3].mxu0  ;;  %683 = vst [vmem:[%s1618_s2 + $0x118] sm:$0xff] %v1192_v42  ;;  %v524_v44 = vpop.f32.mrb[3].mxu1 }
  0xe5   :  { %649 = vst [vmem:[%s1618_s2 + $0x8] sm:$0xff] %v396_v43  ;;  %v1005_v45 = vmax.f32 %v1001_v41, %v1192_v42  ;;  %681 = vst [vmem:[%s1618_s2 + $0x108] sm:$0xff] %v524_v44 }
  0xe7   :  { %v1009_v46 = vmax.f32 %v1005_v45, %v524_v44 }
  0xe9   :  { %v1163_v47 = vpop.f32.mrb[4].mxu0  ;;  %v1195_v48 = vpop.f32.mrb[4].mxu1 }
  0xea   :  { %654 = vst [vmem:[%s1618_s2 + $0x30] sm:$0xff] %v1163_v47  ;;  %v973_v49 = vmax.f32 %v1159_v36, %v1163_v47  ;;  %v409_v50 = vpop.f32.mrb[5].mxu0  ;;  %v999_v51 = vmax.f32 %v1195_v48, %v1009_v46  ;;  %686 = vst [vmem:[%s1618_s2 + $0x130] sm:$0xff] %v1195_v48  ;;  %v537_v52 = vpop.f32.mrb[5].mxu1 }
  0xeb   :  { %652 = vst [vmem:[%s1618_s2 + $0x20] sm:$0xff] %v409_v50  ;;  %v971_v53 = vmax.f32 %v393_v38, %v409_v50  ;;  %v1164_v54 = vpop.f32.mrb[6].mxu0  ;;  %684 = vst [vmem:[%s1618_s2 + $0x120] sm:$0xff] %v537_v52  ;;  %v1196_v55 = vpop.f32.mrb[6].mxu1 }
  0xec   :  { %655 = vst [vmem:[%s1618_s2 + $0x38] sm:$0xff] %v1164_v54  ;;  %v974_v56 = vmax.f32 %v1160_v40, %v1164_v54  ;;  %v412_v57 = vpop.f32.mrb[7].mxu0  ;;  %v1003_v58 = vmax.f32 %v999_v51, %v537_v52  ;;  %687 = vst [vmem:[%s1618_s2 + $0x138] sm:$0xff] %v1196_v55  ;;  %v540_v59 = vpop.f32.mrb[7].mxu1 }
  0xed   :  { %653 = vst [vmem:[%s1618_s2 + $0x28] sm:$0xff] %v412_v57  ;;  %v972_v60 = vmax.f32 %v396_v43, %v412_v57  ;;  %685 = vst [vmem:[%s1618_s2 + $0x128] sm:$0xff] %v540_v59 }
  0xee   :  { %v1007_v61 = vmax.f32 %v1003_v58, %v1196_v55 }
  0xf0   :  { %v1002_v62 = vmax.f32 %v540_v59, %v1007_v61 }
  0xf1   :  { %v1167_v63 = vpop.f32.mrb[8].mxu0  ;;  %v1199_v0 = vpop.f32.mrb[8].mxu1 }
  0xf2   :  { %658 = vst [vmem:[%s1618_s2 + $0x50] sm:$0xff] %v1167_v63  ;;  %v977_v1 = vmax.f32 %v973_v49, %v1167_v63  ;;  %v425_v2 = vpop.f32.mrb[9].mxu0  ;;  %v1006_v3 = vmax.f32 %v1002_v62, %v1199_v0  ;;  %690 = vst [vmem:[%s1618_s2 + $0x150] sm:$0xff] %v1199_v0  ;;  %v553_v4 = vpop.f32.mrb[9].mxu1 }
  0xf3   :  { %656 = vst [vmem:[%s1618_s2 + $0x40] sm:$0xff] %v425_v2  ;;  %v975_v5 = vmax.f32 %v971_v53, %v425_v2  ;;  %v1168_v6 = vpop.f32.mrb[10].mxu0  ;;  %688 = vst [vmem:[%s1618_s2 + $0x140] sm:$0xff] %v553_v4  ;;  %v1200_v7 = vpop.f32.mrb[10].mxu1 }
  0xf4   :  { %659 = vst [vmem:[%s1618_s2 + $0x58] sm:$0xff] %v1168_v6  ;;  %v978_v8 = vmax.f32 %v974_v56, %v1168_v6  ;;  %v428_v9 = vpop.f32.mrb[11].mxu0  ;;  %v1010_v10 = vmax.f32 %v1006_v3, %v553_v4  ;;  %691 = vst [vmem:[%s1618_s2 + $0x158] sm:$0xff] %v1200_v7  ;;  %v556_v11 = vpop.f32.mrb[11].mxu1 }
  0xf5   :  { %657 = vst [vmem:[%s1618_s2 + $0x48] sm:$0xff] %v428_v9  ;;  %v976_v12 = vmax.f32 %v972_v60, %v428_v9  ;;  %689 = vst [vmem:[%s1618_s2 + $0x148] sm:$0xff] %v556_v11 }
  0xf6   :  { %v1000_v13 = vmax.f32 %v1200_v7, %v1010_v10 }
  0xf8   :  { %v1004_v14 = vmax.f32 %v1000_v13, %v556_v11 }
  0xf9   :  { %v1171_v15 = vpop.f32.mrb[12].mxu0  ;;  %v1203_v16 = vpop.f32.mrb[12].mxu1 }
  0xfa   :  { %662 = vst [vmem:[%s1618_s2 + $0x70] sm:$0xff] %v1171_v15  ;;  %v981_v17 = vmax.f32 %v977_v1, %v1171_v15  ;;  %v441_v18 = vpop.f32.mrb[13].mxu0  ;;  %v1008_v19 = vmax.f32 %v1004_v14, %v1203_v16  ;;  %694 = vst [vmem:[%s1618_s2 + $0x170] sm:$0xff] %v1203_v16  ;;  %v569_v20 = vpop.f32.mrb[13].mxu1 }
  0xfb   :  { %660 = vst [vmem:[%s1618_s2 + $0x60] sm:$0xff] %v441_v18  ;;  %v979_v21 = vmax.f32 %v975_v5, %v441_v18  ;;  %v1172_v22 = vpop.f32.mrb[14].mxu0  ;;  %692 = vst [vmem:[%s1618_s2 + $0x160] sm:$0xff] %v569_v20  ;;  %v1204_v23 = vpop.f32.mrb[14].mxu1 }
  0xfc   :  { %663 = vst [vmem:[%s1618_s2 + $0x78] sm:$0xff] %v1172_v22  ;;  %v982_v24 = vmax.f32 %v978_v8, %v1172_v22  ;;  %v444_v25 = vpop.f32.mrb[15].mxu0  ;;  %v1013_v26 = vmax.f32 %v569_v20, %v1008_v19  ;;  %695 = vst [vmem:[%s1618_s2 + $0x178] sm:$0xff] %v1204_v23  ;;  %v572_v27 = vpop.f32.mrb[15].mxu1 }
  0xfd   :  { %661 = vst [vmem:[%s1618_s2 + $0x68] sm:$0xff] %v444_v25  ;;  %v980_v28 = vmax.f32 %v976_v12, %v444_v25  ;;  %693 = vst [vmem:[%s1618_s2 + $0x168] sm:$0xff] %v572_v27 }
  0xfe   :  { %v1017_v29 = vmax.f32 %v1013_v26, %v1204_v23 }
 0x100   :  { %v1021_v30 = vmax.f32 %v1017_v29, %v572_v27 }
 0x101   :  { %v1175_v31 = vpop.f32.mrb[16].mxu0  ;;  %v1207_v32 = vpop.f32.mrb[16].mxu1 }
 0x102   :  { %666 = vst [vmem:[%s1618_s2 + $0x90] sm:$0xff] %v1175_v31  ;;  %v985_v33 = vmax.f32 %v981_v17, %v1175_v31  ;;  %v457_v34 = vpop.f32.mrb[17].mxu0  ;;  %v1025_v35 = vmax.f32 %v1021_v30, %v1207_v32  ;;  %698 = vst [vmem:[%s1618_s2 + $0x190] sm:$0xff] %v1207_v32  ;;  %v585_v36 = vpop.f32.mrb[17].mxu1 }
 0x103   :  { %664 = vst [vmem:[%s1618_s2 + $0x80] sm:$0xff] %v457_v34  ;;  %v983_v37 = vmax.f32 %v979_v21, %v457_v34  ;;  %v1176_v38 = vpop.f32.mrb[18].mxu0  ;;  %696 = vst [vmem:[%s1618_s2 + $0x180] sm:$0xff] %v585_v36  ;;  %v1208_v39 = vpop.f32.mrb[18].mxu1 }
 0x104   :  { %667 = vst [vmem:[%s1618_s2 + $0x98] sm:$0xff] %v1176_v38  ;;  %v986_v40 = vmax.f32 %v982_v24, %v1176_v38  ;;  %v460_v41 = vpop.f32.mrb[19].mxu0  ;;  %v1011_v42 = vmax.f32 %v585_v36, %v1025_v35  ;;  %699 = vst [vmem:[%s1618_s2 + $0x198] sm:$0xff] %v1208_v39  ;;  %v588_v43 = vpop.f32.mrb[19].mxu1 }
 0x105   :  { %665 = vst [vmem:[%s1618_s2 + $0x88] sm:$0xff] %v460_v41  ;;  %v984_v44 = vmax.f32 %v980_v28, %v460_v41  ;;  %697 = vst [vmem:[%s1618_s2 + $0x188] sm:$0xff] %v588_v43 }
 0x106   :  { %v1015_v45 = vmax.f32 %v1011_v42, %v1208_v39 }
 0x108   :  { %v1019_v46 = vmax.f32 %v1015_v45, %v588_v43 }
 0x109   :  { %v1179_v47 = vpop.f32.mrb[20].mxu0  ;;  %v1211_v48 = vpop.f32.mrb[20].mxu1 }
 0x10a   :  { %670 = vst [vmem:[%s1618_s2 + $0xb0] sm:$0xff] %v1179_v47  ;;  %v989_v49 = vmax.f32 %v985_v33, %v1179_v47  ;;  %v473_v50 = vpop.f32.mrb[21].mxu0  ;;  %v1023_v51 = vmax.f32 %v1019_v46, %v1211_v48  ;;  %702 = vst [vmem:[%s1618_s2 + $0x1b0] sm:$0xff] %v1211_v48  ;;  %v601_v52 = vpop.f32.mrb[21].mxu1 }
 0x10b   :  { %668 = vst [vmem:[%s1618_s2 + $0xa0] sm:$0xff] %v473_v50  ;;  %v987_v53 = vmax.f32 %v983_v37, %v473_v50  ;;  %v1180_v54 = vpop.f32.mrb[22].mxu0  ;;  %700 = vst [vmem:[%s1618_s2 + $0x1a0] sm:$0xff] %v601_v52  ;;  %v1212_v55 = vpop.f32.mrb[22].mxu1 }
 0x10c   :  { %671 = vst [vmem:[%s1618_s2 + $0xb8] sm:$0xff] %v1180_v54  ;;  %v990_v56 = vmax.f32 %v986_v40, %v1180_v54  ;;  %v476_v57 = vpop.f32.mrb[23].mxu0  ;;  %v1014_v58 = vmax.f32 %v601_v52, %v1023_v51  ;;  %703 = vst [vmem:[%s1618_s2 + $0x1b8] sm:$0xff] %v1212_v55  ;;  %v604_v59 = vpop.f32.mrb[23].mxu1 }
 0x10d   :  { %669 = vst [vmem:[%s1618_s2 + $0xa8] sm:$0xff] %v476_v57  ;;  %v988_v60 = vmax.f32 %v984_v44, %v476_v57  ;;  %701 = vst [vmem:[%s1618_s2 + $0x1a8] sm:$0xff] %v604_v59 }
 0x10e   :  { %v1018_v61 = vmax.f32 %v1014_v58, %v1212_v55 }
 0x111   :  { %v1183_v62 = vpop.f32.mrb[24].mxu0  ;;  %v1215_v63 = vpop.f32.mrb[24].mxu1 }
 0x112   :  { %674 = vst [vmem:[%s1618_s2 + $0xd0] sm:$0xff] %v1183_v62  ;;  %v993_v0 = vmax.f32 %v989_v49, %v1183_v62  ;;  %v489_v1 = vpop.f32.mrb[25].mxu0  ;;  %706 = vst [vmem:[%s1618_s2 + $0x1d0] sm:$0xff] %v1215_v63  ;;  %v617_v2 = vpop.f32.mrb[25].mxu1 }
 0x113   :  { %672 = vst [vmem:[%s1618_s2 + $0xc0] sm:$0xff] %v489_v1  ;;  %v991_v3 = vmax.f32 %v987_v53, %v489_v1  ;;  %v1184_v4 = vpop.f32.mrb[26].mxu0  ;;  %704 = vst [vmem:[%s1618_s2 + $0x1c0] sm:$0xff] %v617_v2  ;;  %v1216_v5 = vpop.f32.mrb[26].mxu1 }
 0x114   :  { %675 = vst [vmem:[%s1618_s2 + $0xd8] sm:$0xff] %v1184_v4  ;;  %v994_v6 = vmax.f32 %v990_v56, %v1184_v4  ;;  %v492_v7 = vpop.f32.mrb[27].mxu0  ;;  %707 = vst [vmem:[%s1618_s2 + $0x1d8] sm:$0xff] %v1216_v5  ;;  %v620_v8 = vpop.f32.mrb[27].mxu1 }
 0x115   :  { %673 = vst [vmem:[%s1618_s2 + $0xc8] sm:$0xff] %v492_v7  ;;  %v992_v9 = vmax.f32 %v988_v60, %v492_v7  ;;  %705 = vst [vmem:[%s1618_s2 + $0x1c8] sm:$0xff] %v620_v8 }
 0x119   :  { %v1187_v10 = vpop.f32.mrb[28].mxu0  ;;  %v1219_v11 = vpop.f32.mrb[28].mxu1 }
 0x11a   :  { %678 = vst [vmem:[%s1618_s2 + $0xf0] sm:$0xff] %v1187_v10  ;;  %v997_v12 = vmax.f32 %v993_v0, %v1187_v10  ;;  %v505_v13 = vpop.f32.mrb[29].mxu0  ;;  %710 = vst [vmem:[%s1618_s2 + $0x1f0] sm:$0xff] %v1219_v11  ;;  %v633_v14 = vpop.f32.mrb[29].mxu1 }
 0x11b   :  { %676 = vst [vmem:[%s1618_s2 + $0xe0] sm:$0xff] %v505_v13  ;;  %v995_v15 = vmax.f32 %v991_v3, %v505_v13  ;;  %v1188_v16 = vpop.f32.mrb[30].mxu0  ;;  %708 = vst [vmem:[%s1618_s2 + $0x1e0] sm:$0xff] %v633_v14  ;;  %v1220_v17 = vpop.f32.mrb[30].mxu1 }
 0x11c   :  { %v1022_v18 = vmax.f32 %v1018_v61, %v997_v12  ;;  %679 = vst [vmem:[%s1618_s2 + $0xf8] sm:$0xff] %v1188_v16  ;;  %v998_v19 = vmax.f32 %v994_v6, %v1188_v16  ;;  %v508_v20 = vpop.f32.mrb[31].mxu0  ;;  %711 = vst [vmem:[%s1618_s2 + $0x1f8] sm:$0xff] %v1220_v17  ;;  %v636_v21 = vpop.f32.mrb[31].mxu1 }
 0x11d   :  { %677 = vst [vmem:[%s1618_s2 + $0xe8] sm:$0xff] %v508_v20  ;;  %v996_v22 = vmax.f32 %v992_v9, %v508_v20  ;;  %709 = vst [vmem:[%s1618_s2 + $0x1e8] sm:$0xff] %v636_v21 }
 0x11e   :  { %v1026_v23 = vmax.f32 %v1022_v18, %v604_v59 }
 0x120   :  { %v1012_v24 = vmax.f32 %v995_v15, %v1026_v23 }
 0x122   :  { %v1016_v25 = vmax.f32 %v1012_v24, %v998_v19 }
 0x124   :  { %v1020_v26 = vmax.f32 %v1016_v25, %v996_v22 }
 0x126   :  { %v1024_v27 = vmax.f32 %v1020_v26, %v1215_v63 }
 0x128   :  { %v1029_v28 = vmax.f32 %v617_v2, %v1024_v27 }
 0x12a   :  { %v1027_v29 = vmax.f32 %v1216_v5, %v1029_v28 }
 0x12c   :  { %v1030_v30 = vmax.f32 %v620_v8, %v1027_v29 }
 0x12e   :  { %v1032_v31 = vmax.f32 %v1219_v11, %v1030_v30 }
 0x130   :  { %v1028_v32 = vmax.f32 %v633_v14, %v1032_v31 }
 0x132   :  { %v1031_v33 = vmax.f32 %v1220_v17, %v1028_v32 }
 0x134   :  { %v1033_v34 = vmax.f32 %v1031_v33, %v636_v21 }
 0x136   :  { %v1034_v35 = vrot.slane %v1033_v34, 4 }
 0x138   :  { %v1035_v36 = vmax.f32 %v1033_v34, %v1034_v35 }
 0x13a   :  { %v1036_v37 = vrot.slane %v1035_v36, 2 }
 0x13c   :  { %v1037_v38 = vmax.f32 %v1035_v36, %v1036_v37 }
 0x13e   :  { %v1038_v39 = vrot.slane %v1037_v38, 1 }
 0x140   :  { %v1039_v40 = vmax.f32 %v1037_v38, %v1038_v39 }
 0x142   :  { %1040 = vst [vmem:[%s1619_s3] sm:$0xff] %v1039_v40 }

// kernel: stdp_conv_forward.3
= control target key start
LH: loop header
LB: loop body
LE: loop exit
PB: predicated region body
PF: predicated region fallthrough
CT: control target
= control target key end

     0   :  { %v148_v0 = vlaneseq  ;;  %s4054_s0 = inlined_call_operand.vmem [shape: f32[512,128], index: 0, kind: input, shape index: {}, may-alias: {0,3}]   ;;  %s4055_s1 = inlined_call_operand.vmem [shape: f32[1,128], index: 1, kind: input, shape index: {}]   ;;  %s4056_s2 = inlined_call_operand.vmem [shape: f32[512,128], index: 2, kind: input, shape index: {}]   ;;  %s4057_s3 = inlined_call_operand.vmem [shape: f32[512,128], index: 3, kind: output, shape index: {}, may-alias: {0,3}]  }
   0x1   :  { %v14_v1 = vld [vmem:[%s4055_s1] sm:$0x1]  ;;  %v21_v2 = vld [vmem:[%s4054_s0 + $0x10] sm:$0xff]  ;;  %v22_v9 = vld [vmem:[%s4054_s0 + $0x18] sm:$0xff] }
   0x2   :  { %v15_v3 = vadd.f32 0.0001, %v14_v1  ;;  %v149_v4 = vshrl.u32 %v148_v0, 7  ;;  %v679_v5 = vld [vmem:[%s4056_s2 + $0x10] sm:$0xff]  ;;  %v85_v6 = vmax.f32 %v21_v2, 0.0  ;;  %v19_v7 = vld [vmem:[%s4054_s0] sm:$0xff] }
   0x3   :  { %v677_v8 = vld [vmem:[%s4056_s2] sm:$0xff]  ;;  %v83_v12 = vmax.f32 %v19_v7, 0.0  ;;  %v680_v13 = vld [vmem:[%s4056_s2 + $0x18] sm:$0xff]  ;;  %v20_v14 = vld [vmem:[%s4054_s0 + $0x8] sm:$0xff]  ;;  %v2139_v15 = vmul.f32 0.2, %v679_v5 }
   0x4   :  { %v16_v10 = vmul.f32 0.4, %v15_v3  ;;  %1834 = vrcp.f32 %v15_v3  ;;  %v2131_v11 = vsub.s32 0, %v149_v4  ;;  %v2141_v16 = vmul.f32 0.2, %v677_v8  ;;  %v678_v21 = vld [vmem:[%s4056_s2 + $0x8] sm:$0xff] }
   0x5   :  { %v86_v17 = vmax.f32 %v22_v9, 0.0  ;;  %v84_v18 = vmax.f32 %v20_v14, 0.0  ;;  %v2146_v20 = vmul.f32 0.2, %v680_v13  ;;  %v24_v22 = vld [vmem:[%s4054_s0 + $0x28] sm:$0xff]  ;;  %v23_v28 = vld [vmem:[%s4054_s0 + $0x20] sm:$0xff] }
   0x6   :  { %v2144_v19 = vrot.slane %v16_v10, %v2131_v11  ;;  %v682_v23 = vld [vmem:[%s4056_s2 + $0x28] sm:$0xff]  ;;  %v2158_v24 = vrot.slane %v15_v3, %v2131_v11  ;;  %v2160_v25 = vmul.f32 0.2, %v678_v21  ;;  %v88_v26 = vmax.f32 %v24_v22, 0.0  ;;  %v681_v33 = vld [vmem:[%s4056_s2 + $0x20] sm:$0xff]  ;;  %v26_v34 = vld [vmem:[%s4054_s0 + $0x38] sm:$0xff] }
   0x7   :  { %v2162_v27 = vmul.f32 0.2, %v682_v23  ;;  %v684_v35 = vld [vmem:[%s4056_s2 + $0x38] sm:$0xff]  ;;  %v87_v37 = vmax.f32 %v23_v28, 0.0  ;;  %v2189_v38 = vmul.f32 0.2, %v681_v33 }
   0x8   :  { %v2168_v29 = vsub.f32 %v85_v6, %v2144_v19  ;;  %v2171_v30 = vsub.f32 %v83_v12, %v2144_v19  ;;  %v2174_v31 = vsub.f32 %v86_v17, %v2144_v19  ;;  %v2177_v32 = vsub.f32 %v84_v18, %v2144_v19  ;;  %v25_v40 = vld [vmem:[%s4054_s0 + $0x30] sm:$0xff]  ;;  %v28_v46 = vld [vmem:[%s4054_s0 + $0x48] sm:$0xff]  ;;  %v27_v52 = vld [vmem:[%s4054_s0 + $0x40] sm:$0xff] }
   0x9   :  { %v158_v36 = vsub.f32 %v88_v26, %v2144_v19  ;;  %v90_v39 = vmax.f32 %v26_v34, 0.0  ;;  %v683_v41 = vld [vmem:[%s4056_s2 + $0x30] sm:$0xff]  ;;  %v686_v47 = vld [vmem:[%s4056_s2 + $0x48] sm:$0xff]  ;;  %v157_v49 = vsub.f32 %v87_v37, %v2144_v19  ;;  %v2209_v51 = vmul.f32 0.2, %v684_v35  ;;  %v685_v53 = vld [vmem:[%s4056_s2 + $0x40] sm:$0xff] }
   0xa   :  { %v219_v42 = vsub.f32 0.0, %v2168_v29  ;;  %v217_v43 = vsub.f32 0.0, %v2171_v30  ;;  %v220_v44 = vsub.f32 0.0, %v2174_v31  ;;  %v218_v45 = vsub.f32 0.0, %v2177_v32  ;;  %v30_v54 = vld [vmem:[%s4054_s0 + $0x58] sm:$0xff]  ;;  %v29_v5 = vld [vmem:[%s4054_s0 + $0x50] sm:$0xff] }
   0xb   :  { %v222_v48 = vsub.f32 0.0, %v158_v36  ;;  %v160_v50 = vsub.f32 %v90_v39, %v2144_v19  ;;  %v89_v55 = vmax.f32 %v25_v40, 0.0  ;;  %v2220_v56 = vmul.f32 0.2, %v683_v41  ;;  %v688_v63 = vld [vmem:[%s4056_s2 + $0x58] sm:$0xff]  ;;  %v687_v6 = vld [vmem:[%s4056_s2 + $0x50] sm:$0xff] }
   0xc   :  { %v92_v57 = vmax.f32 %v28_v46, 0.0  ;;  %v2222_v58 = vmul.f32 0.2, %v686_v47  ;;  %v221_v59 = vsub.f32 0.0, %v157_v49  ;;  %v91_v61 = vmax.f32 %v27_v52, 0.0  ;;  %v32_v7 = vld [vmem:[%s4054_s0 + $0x68] sm:$0xff] }
   0xd   :  { %v224_v60 = vsub.f32 0.0, %v160_v50  ;;  %v2224_v62 = vmul.f32 0.2, %v685_v53  ;;  %v159_v1 = vsub.f32 %v89_v55, %v2144_v19  ;;  %v94_v3 = vmax.f32 %v30_v54, 0.0  ;;  %v690_v13 = vld [vmem:[%s4056_s2 + $0x68] sm:$0xff]  ;;  %v31_v14 = vld [vmem:[%s4054_s0 + $0x60] sm:$0xff] }
   0xe   :  { %v1835_v0 = vpop.eup %1834  ;;  %v162_v2 = vsub.f32 %v92_v57, %v2144_v19  ;;  %v2231_v4 = vmul.f32 0.2, %v688_v63  ;;  %v161_v9 = vsub.f32 %v91_v61, %v2144_v19  ;;  %v93_v10 = vmax.f32 %v29_v5, 0.0  ;;  %v689_v23 = vld [vmem:[%s4056_s2 + $0x60] sm:$0xff]  ;;  %v34_v47 = vld [vmem:[%s4054_s0 + $0x78] sm:$0xff] }
   0xf   :  { %v18_v8 = vmul.f32 8.0, %v1835_v0  ;;  %v2243_v12 = vmul.f32 0.2, %v687_v6  ;;  %v223_v17 = vsub.f32 0.0, %v159_v1  ;;  %v164_v21 = vsub.f32 %v94_v3, %v2144_v19  ;;  %v691_v3 = vld [vmem:[%s4056_s2 + $0x70] sm:$0xff] }
  0x10   :  { %v226_v18 = vsub.f32 0.0, %v162_v2  ;;  %v96_v22 = vmax.f32 %v32_v7, 0.0  ;;  %v225_v28 = vsub.f32 0.0, %v161_v9  ;;  %v163_v29 = vsub.f32 %v93_v10, %v2144_v19  ;;  %v33_v2 = vld [vmem:[%s4054_s0 + $0x70] sm:$0xff] }
  0x11   :  { %v2256_v26 = vrot.slane %v18_v8, %v2131_v11  ;;  %v2259_v30 = vmul.f32 0.2, %v690_v13  ;;  %v228_v31 = vsub.f32 0.0, %v164_v21  ;;  %v95_v33 = vmax.f32 %v31_v14, 0.0  ;;  %v36_v13 = vld [vmem:[%s4054_s0 + $0x88] sm:$0xff] }
  0x12   :  { %v166_v32 = vsub.f32 %v96_v22, %v2144_v19  ;;  %v2262_v34 = vmul.f32 0.2, %v689_v23  ;;  %v227_v61 = vsub.f32 0.0, %v163_v29  ;;  %v98_v1 = vmax.f32 %v34_v47, 0.0  ;;  %v694_v14 = vld [vmem:[%s4056_s2 + $0x88] sm:$0xff]  ;;  %v35_v22 = vld [vmem:[%s4054_s0 + $0x80] sm:$0xff] }
  0x13   :  { %v289_v35 = vmul.f32 %v2256_v26, %v219_v42  ;;  %v287_v36 = vmul.f32 %v2256_v26, %v217_v43  ;;  %v290_v37 = vmul.f32 %v2256_v26, %v220_v44  ;;  %v288_v11 = vmul.f32 %v2256_v26, %v218_v45  ;;  %v692_v44 = vld [vmem:[%s4056_s2 + $0x78] sm:$0xff] }
  0x14   :  { %v292_v39 = vmul.f32 %v2256_v26, %v222_v48  ;;  %v291_v40 = vmul.f32 %v2256_v26, %v221_v59  ;;  %v294_v41 = vmul.f32 %v2256_v26, %v224_v60  ;;  %v293_v46 = vmul.f32 %v2256_v26, %v223_v17 }
  0x15   :  { %v355_v49 = vmul.f32 1.442695, %v289_v35  ;;  %v351_v42 = vmul.f32 1.442695, %v287_v36  ;;  %v357_v50 = vmul.f32 1.442695, %v290_v37  ;;  %v296_v43 = vmul.f32 %v2256_v26, %v226_v18 }
  0x16   :  { %v353_v45 = vmul.f32 1.442695, %v288_v11  ;;  %v361_v48 = vmul.f32 1.442695, %v292_v39  ;;  %v359_v52 = vmul.f32 1.442695, %v291_v40  ;;  %v295_v53 = vmul.f32 %v2256_v26, %v225_v28 }
  0x17   :  { %1836 = vpow2.f32 %v355_v49  ;;  %v365_v54 = vmul.f32 1.442695, %v294_v41  ;;  %v363_v55 = vmul.f32 1.442695, %v293_v46  ;;  %v369_v57 = vmul.f32 1.442695, %v296_v43 }
  0x18   :  { %1838 = vpow2.f32 %v351_v42  ;;  %v367_v59 = vmul.f32 1.442695, %v295_v53  ;;  %v298_v60 = vmul.f32 %v2256_v26, %v228_v31  ;;  %v230_v63 = vsub.f32 0.0, %v166_v32  ;;  %v693_v31 = vld [vmem:[%s4056_s2 + $0x80] sm:$0xff]  ;;  %v38_v36 = vld [vmem:[%s4054_s0 + $0x98] sm:$0xff] }
  0x19   :  { %1840 = vpow2.f32 %v357_v50  ;;  %v165_v0 = vsub.f32 %v95_v33, %v2144_v19  ;;  %v297_v6 = vmul.f32 %v2256_v26, %v227_v61  ;;  %v2289_v7 = vmul.f32 0.2, %v692_v44 }
  0x1a   :  { %1842 = vpow2.f32 %v353_v45  ;;  %v373_v5 = vmul.f32 1.442695, %v298_v60  ;;  %v300_v8 = vmul.f32 %v2256_v26, %v230_v63  ;;  %v168_v10 = vsub.f32 %v98_v1, %v2144_v19 }
  0x1b   :  { %1844 = vpow2.f32 %v361_v48  ;;  %v229_v9 = vsub.f32 0.0, %v165_v0  ;;  %v371_v17 = vmul.f32 1.442695, %v297_v6  ;;  %v97_v18 = vmax.f32 %v33_v2, 0.0  ;;  %v695_v6 = vld [vmem:[%s4056_s2 + $0x90] sm:$0xff] }
  0x1c   :  { %1846 = vpow2.f32 %v359_v52  ;;  %v2299_v21 = vmul.f32 0.2, %v691_v3  ;;  %v377_v23 = vmul.f32 1.442695, %v300_v8  ;;  %v232_v29 = vsub.f32 0.0, %v168_v10 }
  0x1d   :  { %1848 = vpow2.f32 %v365_v54  ;;  %v299_v28 = vmul.f32 %v2256_v26, %v229_v9  ;;  %v167_v32 = vsub.f32 %v97_v18, %v2144_v19  ;;  %v100_v33 = vmax.f32 %v36_v13, 0.0 }
  0x1e   :  { %1850 = vpow2.f32 %v363_v55  ;;  %v2309_v35 = vmul.f32 0.2, %v694_v14  ;;  %v302_v11 = vmul.f32 %v2256_v26, %v232_v29  ;;  %v99_v39 = vmax.f32 %v35_v22, 0.0  ;;  %v40_v14 = vld [vmem:[%s4054_s0 + $0xa8] sm:$0xff] }
  0x1f   :  { %1852 = vpow2.f32 %v369_v57  ;;  %v2314_v37 = vmul.f32 1.442695, %v299_v28  ;;  %v231_v40 = vsub.f32 0.0, %v167_v32  ;;  %v170_v41 = vsub.f32 %v100_v33, %v2144_v19  ;;  %v696_v57 = vld [vmem:[%s4056_s2 + $0x98] sm:$0xff]  ;;  %v698_v28 = vld [vmem:[%s4056_s2 + $0xa8] sm:$0xff] }
  0x20   :  { %1854 = vpow2.f32 %v367_v59  ;;  %v2318_v46 = vmul.f32 0.2, %v693_v31  ;;  %v2320_v49 = vmul.f32 1.442695, %v302_v11  ;;  %v169_v42 = vsub.f32 %v99_v39, %v2144_v19 }
  0x21   :  { %v1837_v47 = vpop.eup %1836  ;;  %1856 = vpow2.f32 %v373_v5  ;;  %v102_v50 = vmax.f32 %v38_v36, 0.0  ;;  %v301_v45 = vmul.f32 %v2256_v26, %v231_v40  ;;  %v234_v48 = vsub.f32 0.0, %v170_v41  ;;  %v37_v5 = vld [vmem:[%s4054_s0 + $0x90] sm:$0xff]  ;;  %v39_v36 = vld [vmem:[%s4054_s0 + $0xa0] sm:$0xff] }
  0x22   :  { %v1839_v43 = vpop.eup %1838  ;;  %v481_v44 = vadd.f32 1.0, %v1837_v47  ;;  %1858 = vpow2.f32 %v371_v17  ;;  %v233_v54 = vsub.f32 0.0, %v169_v42  ;;  %v2340_v13 = vmul.f32 0.2, %v696_v57  ;;  %v697_v47 = vld [vmem:[%s4056_s2 + $0xa0] sm:$0xff] }
  0x23   :  { %v1841_v52 = vpop.eup %1840  ;;  %v479_v53 = vadd.f32 1.0, %v1839_v43  ;;  %1860 = vpow2.f32 %v377_v23  ;;  %v172_v55 = vsub.f32 %v102_v50, %v2144_v19  ;;  %v2328_v61 = vmul.f32 1.442695, %v301_v45 }
  0x24   :  { %v1843_v59 = vpop.eup %1842  ;;  %1862 = vrcp.f32 %v481_v44  ;;  %v482_v60 = vadd.f32 1.0, %v1841_v52  ;;  %v304_v63 = vmul.f32 %v2256_v26, %v234_v48  ;;  %v303_v2 = vmul.f32 %v2256_v26, %v233_v54  ;;  %v42_v54 = vld [vmem:[%s4054_s0 + $0xb8] sm:$0xff] }
  0x25   :  { %v1845_v0 = vpop.eup %1844  ;;  %1864 = vrcp.f32 %v479_v53  ;;  %v480_v1 = vadd.f32 1.0, %v1843_v59  ;;  %v236_v3 = vsub.f32 0.0, %v172_v55  ;;  %v101_v32 = vmax.f32 %v37_v5, 0.0 }
  0x26   :  { %v1847_v8 = vpop.eup %1846  ;;  %1866 = vrcp.f32 %v482_v60  ;;  %v484_v9 = vadd.f32 1.0, %v1845_v0  ;;  %v2338_v10 = vmul.f32 1.442695, %v304_v63  ;;  %v2345_v22 = vmul.f32 1.442695, %v303_v2 }
  0x27   :  { %v1849_v17 = vpop.eup %1848  ;;  %1868 = vrcp.f32 %v480_v1  ;;  %v483_v18 = vadd.f32 1.0, %v1847_v8  ;;  %v306_v23 = vmul.f32 %v2256_v26, %v236_v3  ;;  %v2351_v33 = vmul.f32 0.2, %v695_v6 }
  0x28   :  { %v1851_v29 = vpop.eup %1850  ;;  %1870 = vrcp.f32 %v484_v9  ;;  %v486_v31 = vadd.f32 1.0, %v1849_v17  ;;  %v104_v41 = vmax.f32 %v40_v14, 0.0  ;;  %v171_v43 = vsub.f32 %v101_v32, %v2144_v19 }
  0x29   :  { %v1853_v11 = vpop.eup %1852  ;;  %1872 = vrcp.f32 %v483_v18  ;;  %v485_v39 = vadd.f32 1.0, %v1851_v29  ;;  %v2356_v40 = vmul.f32 1.442695, %v306_v23  ;;  %v2362_v44 = vmul.f32 0.2, %v698_v28 }
  0x2a   :  { %v1855_v42 = vpop.eup %1854  ;;  %1874 = vrcp.f32 %v486_v31  ;;  %v488_v50 = vadd.f32 1.0, %v1853_v11  ;;  %v174_v52 = vsub.f32 %v104_v41, %v2144_v19  ;;  %v103_v53 = vmax.f32 %v39_v36, 0.0 }
  0x2b   :  { %v1857_v45 = vpop.eup %1856  ;;  %1876 = vrcp.f32 %v485_v39  ;;  %v487_v48 = vadd.f32 1.0, %v1855_v42  ;;  %v235_v59 = vsub.f32 0.0, %v171_v43  ;;  %v2368_v60 = vmul.f32 0.2, %v697_v47 }
  0x2c   :  { %v1859_v55 = vpop.eup %1858  ;;  %1878 = vrcp.f32 %v488_v50  ;;  %v490_v57 = vadd.f32 1.0, %v1857_v45  ;;  %v238_v1 = vsub.f32 0.0, %v174_v52  ;;  %v173_v2 = vsub.f32 %v103_v53, %v2144_v19 }
  0x2d   :  { %v1861_v63 = vpop.eup %1860  ;;  %1880 = vrcp.f32 %v487_v48  ;;  %v489_v0 = vadd.f32 1.0, %v1859_v55  ;;  %v305_v6 = vmul.f32 %v2256_v26, %v235_v59  ;;  %v106_v8 = vmax.f32 %v42_v54, 0.0 }
  0x2e   :  { %v1863_v3 = vpop.eup %1862  ;;  %1882 = vrcp.f32 %v490_v57  ;;  %v492_v5 = vadd.f32 1.0, %v1861_v63  ;;  %v308_v17 = vmul.f32 %v2256_v26, %v238_v1  ;;  %v237_v18 = vsub.f32 0.0, %v173_v2 }
  0x2f   :  { %v1865_v9 = vpop.eup %1864  ;;  %v554_v14 = vmul.f32 %v1863_v3, %v2158_v24  ;;  %1884 = vrcp.f32 %v489_v0  ;;  %v2375_v29 = vmul.f32 1.442695, %v305_v6  ;;  %v2378_v31 = vsub.f32 %v106_v8, %v2144_v19 }
  0x30   :  { %v1867_v23 = vpop.eup %1866  ;;  %v550_v28 = vmul.f32 %v1865_v9, %v2158_v24  ;;  %1886 = vrcp.f32 %v492_v5  ;;  %v2383_v39 = vmul.f32 1.442695, %v308_v17  ;;  %v2389_v50 = vmul.f32 %v2256_v26, %v237_v18 }
  0x31   :  { %v1869_v32 = vpop.eup %1868  ;;  %v807_v36 = vadd.f32 %v2139_v15, %v554_v14  ;;  %v556_v11 = vmul.f32 %v1867_v23, %v2158_v24  ;;  %1888 = vpow2.f32 %v2314_v37  ;;  %v4058_v52 = vmov 0.0  }
  0x32   :  { %v1871_v41 = vpop.eup %1870  ;;  %v805_v47 = vadd.f32 %v2141_v16, %v550_v28  ;;  %v552_v42 = vmul.f32 %v1869_v32, %v2158_v24  ;;  %1890 = vpow2.f32 %v2320_v49 }
  0x33   :  { %v1873_v43 = vpop.eup %1872  ;;  %vm871_vm0 = vcmp.gt.f32.partialorder %v807_v36, %v2158_v24  ;;  %v1063_v15 = vsub.f32 %v807_v36, %v2158_v24  ;;  %v808_v45 = vadd.f32 %v2146_v20, %v556_v11  ;;  %v560_v37 = vmul.f32 %v1871_v41, %v2158_v24 }
  0x34   :  { %v1875_v48 = vpop.eup %1874  ;;  %v2396_v16 = vsel %vm871_vm0, 1.0, %v4058_v52  ;;  %vm869_vm1 = vcmp.gt.f32.partialorder %v805_v47, %v2158_v24  ;;  %v1061_v49 = vsub.f32 %v805_v47, %v2158_v24  ;;  %v806_v53 = vadd.f32 %v2160_v25, %v552_v42 }
  0x35   :  { %v1877_v54 = vpop.eup %1876  ;;  %v1127_v55 = vmul.f32 %v2396_v16, %v1063_v15  ;;  %v2403_v57 = vsel %vm869_vm1, 1.0, %v4058_v52  ;;  %vm872_vm2 = vcmp.gt.f32.partialorder %v808_v45, %v2158_v24  ;;  %v1064_v20 = vsub.f32 %v808_v45, %v2158_v24 }
  0x36   :  { %v1879_v59 = vpop.eup %1878  ;;  %v1125_v63 = vmul.f32 %v2403_v57, %v1061_v49  ;;  %v2409_v0 = vsel %vm872_vm2, 1.0, %v4058_v52  ;;  %vm870_vm3 = vcmp.gt.f32.partialorder %v806_v53, %v2158_v24  ;;  %v1062_v25 = vsub.f32 %v806_v53, %v2158_v24 }
  0x37   :  { %v1881_v1 = vpop.eup %1880  ;;  %v2414_v2 = vadd.f32 %v2396_v16, %v1127_v55  ;;  %v1128_v3 = vmul.f32 %v2409_v0, %v1064_v20  ;;  %v2418_v5 = vsel %vm870_vm3, 1.0, %v4058_v52  ;;  %v810_v6 = vadd.f32 %v2162_v27, %v560_v37 }
  0x38   :  { %v1883_v8 = vpop.eup %1882  ;;  %v2422_v9 = vadd.f32 %v2403_v57, %v1125_v63  ;;  %v1126_v14 = vmul.f32 %v2418_v5, %v1062_v25  ;;  %v558_v17 = vmul.f32 %v1873_v43, %v2158_v24  ;;  %v564_v18 = vmul.f32 %v1875_v48, %v2158_v24 }
  0x39   :  { %v1885_v23 = vpop.eup %1884  ;;  %1257 = vmax.xlane.f32.xlu1 %v2414_v2  ;;  %v2429_v28 = vadd.f32 %v2409_v0, %v1128_v3  ;;  %vm874_vm4 = vcmp.gt.f32.partialorder %v810_v6, %v2158_v24  ;;  %v1066_v27 = vsub.f32 %v810_v6, %v2158_v24  ;;  %v562_v32 = vmul.f32 %v1877_v54, %v2158_v24 }
  0x3a   :  { %v1887_v36 = vpop.eup %1886  ;;  %1253 = vmax.xlane.f32.xlu0 %v2422_v9  ;;  %v2436_v11 = vadd.f32 %v2418_v5, %v1126_v14  ;;  %v2439_v41 = vsel %vm874_vm4, 1.0, %v4058_v52  ;;  %v809_v47 = vadd.f32 %v2189_v38, %v558_v17  ;;  %v812_v42 = vadd.f32 %v2209_v51, %v564_v18 }
  0x3b   :  { %v1889_v43 = vpop.eup %1888  ;;  %v1130_v15 = vmul.f32 %v2439_v41, %v1066_v27  ;;  %v811_v45 = vadd.f32 %v2220_v56, %v562_v32  ;;  %v568_v37 = vmul.f32 %v1879_v59, %v2158_v24  ;;  %v566_v48 = vmul.f32 %v1881_v1, %v2158_v24 }
  0x3c   :  { %v1891_v49 = vpop.eup %1890  ;;  %vm873_vm5 = vcmp.gt.f32.partialorder %v809_v47, %v2158_v24  ;;  %v1065_v53 = vsub.f32 %v809_v47, %v2158_v24  ;;  %vm876_vm6 = vcmp.gt.f32.partialorder %v812_v42, %v2158_v24  ;;  %v1068_v38 = vsub.f32 %v812_v42, %v2158_v24 }
  0x3d   :  { %1259 = vmax.xlane.f32.xlu1 %v2429_v28  ;;  %v2453_v51 = vadd.f32 %v2439_v41, %v1130_v15  ;;  %v2456_v56 = vsel %vm873_vm5, 1.0, %v4058_v52  ;;  %v2459_v54 = vsel %vm876_vm6, 1.0, %v4058_v52  ;;  %vm875_vm7 = vcmp.gt.f32.partialorder %v811_v45, %v2158_v24 }
  0x3e   :  { %1255 = vmax.xlane.f32.xlu0 %v2436_v11  ;;  %v1129_v55 = vmul.f32 %v2456_v56, %v1065_v53  ;;  %v1132_v20 = vmul.f32 %v2459_v54, %v1068_v38  ;;  %v2466_v59 = vsel %vm875_vm7, 1.0, %v4058_v52  ;;  %v1067_v63 = vsub.f32 %v811_v45, %v2158_v24 }
  0x3f   :  { %v814_v25 = vadd.f32 %v2222_v58, %v568_v37  ;;  %v813_v1 = vadd.f32 %v2224_v62, %v566_v48  ;;  %v572_v3 = vmul.f32 %v1883_v8, %v2158_v24  ;;  %v570_v6 = vmul.f32 %v1885_v23, %v2158_v24 }
  0x40   :  { %v2474_v14 = vadd.f32 %v2456_v56, %v1129_v55  ;;  %v2477_v17 = vadd.f32 %v2459_v54, %v1132_v20  ;;  %v1131_v18 = vmul.f32 %v2466_v59, %v1067_v63  ;;  %v576_v27 = vmul.f32 %v1887_v36, %v2158_v24  ;;  %v41_v20 = vld [vmem:[%s4054_s0 + $0xb0] sm:$0xff] }
  0x41   :  { %1263 = vmax.xlane.f32.xlu1 %v2453_v51  ;;  %vm878_vm8 = vcmp.gt.f32.partialorder %v814_v25, %v2158_v24  ;;  %v1070_v58 = vsub.f32 %v814_v25, %v2158_v24  ;;  %vm877_vm9 = vcmp.gt.f32.partialorder %v813_v1, %v2158_v24  ;;  %v1069_v62 = vsub.f32 %v813_v1, %v2158_v24 }
  0x42   :  { %1261 = vmax.xlane.f32.xlu0 %v2474_v14  ;;  %v2488_v8 = vadd.f32 %v2466_v59, %v1131_v18  ;;  %v2491_v23 = vsel %vm878_vm8, 1.0, %v4058_v52  ;;  %v2494_v32 = vsel %vm877_vm9, 1.0, %v4058_v52  ;;  %v816_v36 = vadd.f32 %v2231_v4, %v572_v3  ;;  %v699_v3 = vld [vmem:[%s4056_s2 + $0xb0] sm:$0xff] }
  0x43   :  { %v1134_v47 = vmul.f32 %v2491_v23, %v1070_v58  ;;  %v1133_v42 = vmul.f32 %v2494_v32, %v1069_v62  ;;  %v815_v15 = vadd.f32 %v2243_v12, %v570_v6  ;;  %v818_v45 = vadd.f32 %v2259_v30, %v576_v27  ;;  %v44_v58 = vld [vmem:[%s4054_s0 + $0xc8] sm:$0xff] }
  0x44   :  { %vm880_vm10 = vcmp.gt.f32.partialorder %v816_v36, %v2158_v24  ;;  %v1072_v37 = vsub.f32 %v816_v36, %v2158_v24  ;;  %v491_v48 = vadd.f32 1.0, %v1889_v43  ;;  %v494_v53 = vadd.f32 1.0, %v1891_v49  ;;  %v700_v49 = vld [vmem:[%s4056_s2 + $0xb8] sm:$0xff] }
  0x45   :  { %1267 = vmax.xlane.f32.xlu1 %v2477_v17  ;;  %v2505_v38 = vadd.f32 %v2491_v23, %v1134_v47  ;;  %v2508_v4 = vadd.f32 %v2494_v32, %v1133_v42  ;;  %v2511_v55 = vsel %vm880_vm10, 1.0, %v4058_v52  ;;  %vm879_vm11 = vcmp.gt.f32.partialorder %v815_v15, %v2158_v24  ;;  %v702_v47 = vld [vmem:[%s4056_s2 + $0xc8] sm:$0xff] }
  0x46   :  { %1265 = vmax.xlane.f32.xlu0 %v2488_v8  ;;  %v1136_v12 = vmul.f32 %v2511_v55, %v1072_v37  ;;  %v2517_v30 = vsel %vm879_vm11, 1.0, %v4058_v52  ;;  %v1071_v43 = vsub.f32 %v815_v15, %v2158_v24  ;;  %vm882_vm12 = vcmp.gt.f32.partialorder %v818_v45, %v2158_v24 }
  0x47   :  { %4143 = vst [vmem:[#allocation2_spill] sm:$0xff] %v2517_v30  ;;  %v2528_v63 = vsel %vm882_vm12, 1.0, %v4058_v52  ;;  %v1074_v25 = vsub.f32 %v818_v45, %v2158_v24  ;;  %1892 = vrcp.f32 %v491_v48  ;;  %v391_v1 = vmul.f32 1.442695, %v2389_v50  ;;  %v701_v45 = vld [vmem:[%s4056_s2 + $0xc0] sm:$0xff] }
  0x48   :  { %4144 = vst [vmem:[#allocation3_spill] sm:$0xff] %v2528_v63  ;;  %v2536_v6 = vadd.f32 %v2511_v55, %v1136_v12  ;;  %v1135_v18 = vmul.f32 %v2517_v30, %v1071_v43  ;;  %1894 = vrcp.f32 %v494_v53  ;;  %v240_v27 = vsub.f32 0.0, %v2378_v31  ;;  %v43_v31 = vld [vmem:[%s4054_s0 + $0xc0] sm:$0xff]  ;;  %v704_v12 = vld [vmem:[%s4056_s2 + $0xd8] sm:$0xff] }
  0x49   :  { %1271 = vmax.xlane.f32.xlu1 %v2505_v38  ;;  %v1138_v50 = vmul.f32 %v2528_v63, %v1074_v25  ;;  %1896 = vpow2.f32 %v2328_v61  ;;  %v2546_v62 = vmul.f32 0.2, %v700_v49  ;;  %v105_v36 = vmax.f32 %v41_v20, 0.0 }
  0x4a   :  { %1269 = vmax.xlane.f32.xlu0 %v2508_v4  ;;  %v2556_v42 = vadd.f32 %v2517_v30, %v1135_v18  ;;  %1898 = vpow2.f32 %v2338_v10  ;;  %v310_v61 = vmul.f32 %v2256_v26, %v240_v27  ;;  %v2560_v15 = vmul.f32 0.2, %v699_v3  ;;  %v46_v10 = vld [vmem:[%s4054_s0 + $0xd8] sm:$0xff] }
  0x4b   :  { %v2566_v37 = vadd.f32 %v2528_v63, %v1138_v50  ;;  %1900 = vpow2.f32 %v2345_v22  ;;  %v175_v48 = vsub.f32 %v105_v36, %v2144_v19  ;;  %v108_v53 = vmax.f32 %v44_v58, 0.0  ;;  %v45_v22 = vld [vmem:[%s4054_s0 + $0xd0] sm:$0xff] }
  0x4c   :  { %4145 = vst [vmem:[#allocation4_spill] sm:$0xff] %v2556_v42  ;;  %1902 = vpow2.f32 %v2356_v40  ;;  %v397_v43 = vmul.f32 1.442695, %v310_v61  ;;  %v2577_v49 = vmul.f32 0.2, %v702_v47  ;;  %v107_v20 = vmax.f32 %v43_v31, 0.0 }
  0x4d   :  { %4146 = vst [vmem:[#allocation5_spill] sm:$0xff] %v2566_v37  ;;  %1275 = vmax.xlane.f32.xlu1 %v2536_v6  ;;  %1904 = vpow2.f32 %v2375_v29  ;;  %v239_v25 = vsub.f32 0.0, %v175_v48  ;;  %v178_v3 = vsub.f32 %v108_v53, %v2144_v19  ;;  %v2585_v18 = vmul.f32 0.2, %v701_v45  ;;  %v703_v40 = vld [vmem:[%s4056_s2 + $0xd0] sm:$0xff]  ;;  %v2598_v29 = vld [vmem:[%s4054_s0 + $0xe8] sm:$0xff] }
  0x4e   :  { %1273 = vmax.xlane.f32.xlu0 %v2556_v42  ;;  %1906 = vpow2.f32 %v2383_v39  ;;  %v177_v27 = vsub.f32 %v107_v20, %v2144_v19  ;;  %v110_v58 = vmax.f32 %v46_v10, 0.0  ;;  %v2593_v50 = vmul.f32 0.2, %v704_v12  ;;  %v706_v61 = vld [vmem:[%s4056_s2 + $0xe8] sm:$0xff] }
  0x4f   :  { %1908 = vpow2.f32 %v391_v1  ;;  %v309_v36 = vmul.f32 %v2256_v26, %v239_v25  ;;  %v242_v47 = vsub.f32 0.0, %v178_v3  ;;  %v109_v31 = vmax.f32 %v45_v22, 0.0 }
  0x50   :  { %1910 = vpow2.f32 %v397_v43  ;;  %v241_v39 = vsub.f32 0.0, %v177_v27  ;;  %v180_v45 = vsub.f32 %v110_v58, %v2144_v19  ;;  %v2605_v48 = vmul.f32 0.2, %v703_v40 }
  0x51   :  { %v1893_v53 = vpop.eup %1892  ;;  %1279 = vmax.xlane.f32.xlu1 %v2566_v37  ;;  %v395_v10 = vmul.f32 1.442695, %v309_v36  ;;  %v312_v1 = vmul.f32 %v2256_v26, %v242_v47  ;;  %v179_v12 = vsub.f32 %v109_v31, %v2144_v19  ;;  %v112_v20 = vmax.f32 %v2598_v29, 0.0 }
  0x52   :  { %v1895_v22 = vpop.eup %1894  ;;  %v574_v25 = vmul.f32 %v1893_v53, %v2158_v24  ;;  %v311_v43 = vmul.f32 %v2256_v26, %v241_v39  ;;  %v244_v3 = vsub.f32 0.0, %v180_v45  ;;  %v2613_v27 = vmul.f32 0.2, %v706_v61 }
  0x53   :  { %v1897_v40 = vpop.eup %1896  ;;  %v580_v58 = vmul.f32 %v1895_v22, %v2158_v24  ;;  %1912 = vpow2.f32 %v395_v10  ;;  %v401_v52 = vmul.f32 1.442695, %v312_v1  ;;  %v243_v36 = vsub.f32 0.0, %v179_v12 }
  0x54   :  { %v1899_v63 = vpop.eup %1898  ;;  %v817_v47 = vadd.f32 %v2262_v34, %v574_v25  ;;  %v493_v31 = vadd.f32 1.0, %v1897_v40  ;;  %v399_v30 = vmul.f32 1.442695, %v311_v43  ;;  %v314_v29 = vmul.f32 %v2256_v26, %v244_v3 }
  0x55   :  { %v1901_v37 = vpop.eup %1900  ;;  %v820_v53 = vadd.f32 %v2289_v7, %v580_v58  ;;  %v496_v39 = vadd.f32 1.0, %v1899_v63  ;;  %1914 = vpow2.f32 %v401_v52  ;;  %v313_v61 = vmul.f32 %v2256_v26, %v243_v36  ;;  %v47_v36 = vld [vmem:[%s4054_s0 + $0xe0] sm:$0xff] }
  0x56   :  { %v1903_v45 = vpop.eup %1902  ;;  %vm881_vm13 = vcmp.gt.f32.partialorder %v817_v47, %v2158_v24  ;;  %v1073_v10 = vsub.f32 %v817_v47, %v2158_v24  ;;  %1916 = vrcp.f32 %v493_v31  ;;  %v495_v1 = vadd.f32 1.0, %v1901_v37  ;;  %v705_v47 = vld [vmem:[%s4056_s2 + $0xe0] sm:$0xff] }
  0x57   :  { %v1905_v12 = vpop.eup %1904  ;;  %v4147_v34 = vmov 0.0   ;;  %vm884_vm14 = vcmp.gt.f32.partialorder %v820_v53, %v2158_v24  ;;  %v1076_v25 = vsub.f32 %v820_v53, %v2158_v24  ;;  %1918 = vrcp.f32 %v496_v39 }
  0x58   :  { %v2623_v22 = vsel %vm881_vm13, 1.0, %v4147_v34  ;;  %v1907_v7 = vpop.eup %1906  ;;  %v2629_v63 = vsel %vm884_vm14, 1.0, %v4147_v34  ;;  %1920 = vrcp.f32 %v495_v1  ;;  %v498_v43 = vadd.f32 1.0, %v1903_v45  ;;  %v49_v1 = vld [vmem:[%s4054_s0 + $0xf0] sm:$0xff] }
  0x59   :  { %4148 = vst [vmem:[#allocation6_spill] sm:$0xff] %v2623_v22  ;;  %v1137_v52 = vmul.f32 %v2623_v22, %v1073_v10  ;;  %4149 = vst [vmem:[#allocation7_spill] sm:$0xff] %v2629_v63  ;;  %v1909_v3 = vpop.eup %1908  ;;  %v1140_v37 = vmul.f32 %v2629_v63, %v1076_v25  ;;  %v497_v40 = vadd.f32 1.0, %v1905_v12  ;;  %v500_v58 = vadd.f32 1.0, %v1907_v7  ;;  %v50_v10 = vld [vmem:[%s4054_s0 + $0xf8] sm:$0xff] }
  0x5a   :  { %1922 = vpow2.f32 %v399_v30  ;;  %v1911_v31 = vpop.eup %1910  ;;  %v499_v39 = vadd.f32 1.0, %v1909_v3  ;;  %v405_v45 = vmul.f32 1.442695, %v314_v29  ;;  %v708_v30 = vld [vmem:[%s4056_s2 + $0xf8] sm:$0xff]  ;;  %v403_v7 = vmul.f32 1.442695, %v313_v61 }
  0x5b   :  { %v2639_v53 = vadd.f32 %v2623_v22, %v1137_v52  ;;  %1924 = vrcp.f32 %v498_v43  ;;  %v2651_v12 = vadd.f32 %v2629_v63, %v1140_v37  ;;  %v502_v25 = vadd.f32 1.0, %v1911_v31  ;;  %v707_v3 = vld [vmem:[%s4056_s2 + $0xf0] sm:$0xff] }
  0x5c   :  { %1926 = vrcp.f32 %v497_v40  ;;  %v182_v29 = vsub.f32 %v112_v20, %v2144_v19  ;;  %v111_v52 = vmax.f32 %v47_v36, 0.0  ;;  %v2655_v43 = vmul.f32 0.2, %v705_v47 }
  0x5d   :  { %4150 = vst [vmem:[#allocation8_spill] sm:$0xff] %v2639_v53  ;;  %4151 = vst [vmem:[#allocation9_spill] sm:$0xff] %v2651_v12  ;;  %1277 = vmax.xlane.f32.xlu0 %v2639_v53  ;;  %1928 = vrcp.f32 %v500_v58  ;;  %v1913_v22 = vpop.eup %1912  ;;  %1283 = vmax.xlane.f32.xlu1 %v2651_v12  ;;  %v114_v37 = vmax.f32 %v50_v10, 0.0  ;;  %v2661_v40 = vmul.f32 0.2, %v708_v30  ;;  %v113_v61 = vmax.f32 %v49_v1, 0.0 }
  0x5e   :  { %1930 = vrcp.f32 %v499_v39  ;;  %v501_v31 = vadd.f32 1.0, %v1913_v22  ;;  %v246_v58 = vsub.f32 0.0, %v182_v29  ;;  %v181_v20 = vsub.f32 %v111_v52, %v2144_v19 }
  0x5f   :  { %1932 = vrcp.f32 %v502_v25  ;;  %v1915_v36 = vpop.eup %1914  ;;  %v184_v47 = vsub.f32 %v114_v37, %v2144_v19  ;;  %v183_v63 = vsub.f32 %v113_v61, %v2144_v19  ;;  %v2666_v53 = vmul.f32 0.2, %v707_v3 }
  0x60   :  { %1934 = vpow2.f32 %v405_v45  ;;  %v1917_v42 = vpop.eup %1916  ;;  %v504_v39 = vadd.f32 1.0, %v1915_v36  ;;  %v316_v10 = vmul.f32 %v2256_v26, %v246_v58  ;;  %v245_v30 = vsub.f32 0.0, %v181_v20 }
  0x61   :  { %1936 = vrcp.f32 %v501_v31  ;;  %v1919_v1 = vpop.eup %1918  ;;  %v578_v22 = vmul.f32 %v1917_v42, %v2158_v24  ;;  %v248_v25 = vsub.f32 0.0, %v184_v47  ;;  %v247_v29 = vsub.f32 0.0, %v183_v63 }
  0x62   :  { %1938 = vpow2.f32 %v403_v7  ;;  %v1921_v52 = vpop.eup %1920  ;;  %v584_v45 = vmul.f32 %v1919_v1, %v2158_v24  ;;  %v409_v37 = vmul.f32 1.442695, %v316_v10  ;;  %v315_v3 = vmul.f32 %v2256_v26, %v245_v30 }
  0x63   :  { %1940 = vrcp.f32 %v504_v39  ;;  %v819_v31 = vadd.f32 %v2299_v21, %v578_v22  ;;  %v582_v36 = vmul.f32 %v1921_v52, %v2158_v24  ;;  %v2675_v58 = vmul.f32 %v2256_v26, %v248_v25 }
  0x64   :  { %v1923_v61 = vpop.eup %1922  ;;  %v2678_v42 = vmul.f32 %v2256_v26, %v247_v29  ;;  %v822_v63 = vadd.f32 %v2309_v35, %v584_v45  ;;  %1942 = vpow2.f32 %v409_v37  ;;  %v2681_v47 = vmul.f32 1.442695, %v315_v3 }
  0x65   :  { %v1925_v7 = vpop.eup %1924  ;;  %v503_v20 = vadd.f32 1.0, %v1923_v61  ;;  %vm883_vm15 = vcmp.gt.f32.partialorder %v819_v31, %v2158_v24  ;;  %v1075_v21 = vsub.f32 %v819_v31, %v2158_v24  ;;  %v821_v10 = vadd.f32 %v2318_v46, %v582_v36 }
  0x66   :  { %v1927_v39 = vpop.eup %1926  ;;  %v588_v30 = vmul.f32 %v1925_v7, %v2158_v24  ;;  %v2688_v22 = vsel %vm883_vm15, 1.0, %v4147_v34  ;;  %vm886_vm0 = vcmp.gt.f32.partialorder %v822_v63, %v2158_v24  ;;  %v1078_v35 = vsub.f32 %v822_v63, %v2158_v24 }
  0x67   :  { %v1929_v1 = vpop.eup %1928  ;;  %4152 = vst [vmem:[#allocation10_spill] sm:$0xff] %v2688_v22  ;;  %v586_v25 = vmul.f32 %v1927_v39, %v2158_v24  ;;  %v1139_v52 = vmul.f32 %v2688_v22, %v1075_v21  ;;  %v2695_v45 = vsel %vm886_vm0, 1.0, %v4147_v34  ;;  %vm885_vm1 = vcmp.gt.f32.partialorder %v821_v10, %v2158_v24 }
  0x68   :  { %v1931_v29 = vpop.eup %1930  ;;  %4153 = vst [vmem:[#allocation11_spill] sm:$0xff] %v2695_v45  ;;  %v1077_v46 = vsub.f32 %v821_v10, %v2158_v24  ;;  %v1142_v3 = vmul.f32 %v2695_v45, %v1078_v35  ;;  %v2701_v61 = vsel %vm885_vm1, 1.0, %v4147_v34  ;;  %v824_v31 = vadd.f32 %v2340_v13, %v588_v30 }
  0x69   :  { %v1933_v37 = vpop.eup %1932  ;;  %4154 = vst [vmem:[#allocation12_spill] sm:$0xff] %v2701_v61  ;;  %v823_v36 = vadd.f32 %v2351_v33, %v586_v25  ;;  %v2706_v63 = vadd.f32 %v2688_v22, %v1139_v52  ;;  %v592_v21 = vmul.f32 %v1929_v1, %v2158_v24  ;;  %v590_v10 = vmul.f32 %v1931_v29, %v2158_v24 }
  0x6a   :  { %v1935_v7 = vpop.eup %1934  ;;  %v1141_v39 = vmul.f32 %v2701_v61, %v1077_v46  ;;  %v2712_v35 = vadd.f32 %v2695_v45, %v1142_v3  ;;  %vm888_vm2 = vcmp.gt.f32.partialorder %v824_v31, %v2158_v24  ;;  %v1080_v13 = vsub.f32 %v824_v31, %v2158_v24 }
  0x6b   :  { %4155 = vst [vmem:[#allocation13_spill] sm:$0xff] %v2706_v63  ;;  %v1937_v12 = vpop.eup %1936  ;;  %vm887_vm3 = vcmp.gt.f32.partialorder %v823_v36, %v2158_v24  ;;  %1281 = vmax.xlane.f32.xlu0 %v2706_v63  ;;  %v2722_v1 = vsel %vm888_vm2, 1.0, %v4147_v34  ;;  %v1079_v29 = vsub.f32 %v823_v36, %v2158_v24  ;;  %v826_v3 = vadd.f32 %v2362_v44, %v592_v21 }
  0x6c   :  { %4156 = vst [vmem:[#allocation14_spill] sm:$0xff] %v2712_v35  ;;  %v1939_v33 = vpop.eup %1938  ;;  %v2719_v30 = vadd.f32 %v2701_v61, %v1141_v39  ;;  %4158 = vst [vmem:[#allocation16_spill] sm:$0xff] %v2722_v1  ;;  %v2725_v25 = vsel %vm887_vm3, 1.0, %v4147_v34  ;;  %1287 = vmax.xlane.f32.xlu1 %v2712_v35  ;;  %v1144_v46 = vmul.f32 %v2722_v1, %v1080_v13  ;;  %1944 = vrcp.f32 %v503_v20 }
  0x6d   :  { %4159 = vst [vmem:[#allocation17_spill] sm:$0xff] %v2725_v25  ;;  %v1941_v52 = vpop.eup %1940  ;;  %v825_v31 = vadd.f32 %v2368_v60, %v590_v10  ;;  %v596_v39 = vmul.f32 %v1933_v37, %v2158_v24  ;;  %v1143_v61 = vmul.f32 %v2725_v25, %v1079_v29  ;;  %v594_v45 = vmul.f32 %v1937_v12, %v2158_v24 }
  0x6e   :  { %4157 = vst [vmem:[#allocation15_spill] sm:$0xff] %v2719_v30  ;;  %v600_v22 = vmul.f32 %v1941_v52, %v2158_v24  ;;  %v1943_v63 = vpop.eup %1942  ;;  %v2737_v36 = vadd.f32 %v2722_v1, %v1144_v46  ;;  %vm890_vm4 = vcmp.gt.f32.partialorder %v826_v3, %v2158_v24  ;;  %v1082_v13 = vsub.f32 %v826_v3, %v2158_v24 }
  0x6f   :  { %vm889_vm5 = vcmp.gt.f32.partialorder %v825_v31, %v2158_v24  ;;  %1285 = vmax.xlane.f32.xlu0 %v2719_v30  ;;  %v2744_v44 = vadd.f32 %v2725_v25, %v1143_v61  ;;  %v2747_v60 = vsel %vm890_vm4, 1.0, %v4147_v34  ;;  %v1081_v20 = vsub.f32 %v825_v31, %v2158_v24 }
  0x70   :  { %4160 = vst [vmem:[#allocation18_spill] sm:$0xff] %v2737_v36  ;;  %4162 = vst [vmem:[#allocation20_spill] sm:$0xff] %v2747_v60  ;;  %v2750_v12 = vsel %vm889_vm5, 1.0, %v4147_v34  ;;  %1291 = vmax.xlane.f32.xlu1 %v2737_v36  ;;  %v1146_v37 = vmul.f32 %v2747_v60, %v1082_v13  ;;  %v828_v21 = vadd.f32 %v2546_v62, %v596_v39  ;;  %v506_v52 = vadd.f32 1.0, %v1935_v7 }
  0x71   :  { %4161 = vst [vmem:[#allocation19_spill] sm:$0xff] %v2744_v44  ;;  %4163 = vst [vmem:[#allocation21_spill] sm:$0xff] %v2750_v12  ;;  %v827_v10 = vadd.f32 %v2560_v15, %v594_v45  ;;  %v830_v29 = vadd.f32 %v2577_v49, %v600_v22  ;;  %v1145_v61 = vmul.f32 %v2750_v12, %v1081_v20  ;;  %v505_v46 = vadd.f32 1.0, %v1939_v33  ;;  %v710_v33 = vld [vmem:[%s4056_s2 + $0x108] sm:$0xff] }
  0x72   :  { %v508_v3 = vadd.f32 1.0, %v1943_v63  ;;  %v2760_v25 = vadd.f32 %v2747_v60, %v1146_v37  ;;  %vm892_vm6 = vcmp.gt.f32.partialorder %v828_v21, %v2158_v24  ;;  %v1084_v31 = vsub.f32 %v828_v21, %v2158_v24  ;;  %v52_v63 = vld [vmem:[%s4054_s0 + $0x108] sm:$0xff]  ;;  %v51_v37 = vld [vmem:[%s4054_s0 + $0x100] sm:$0xff] }
  0x73   :  { %vm891_vm7 = vcmp.gt.f32.partialorder %v827_v10, %v2158_v24  ;;  %1289 = vmax.xlane.f32.xlu0 %v2744_v44  ;;  %v2767_v62 = vadd.f32 %v2750_v12, %v1145_v61  ;;  %v2770_v15 = vsel %vm892_vm6, 1.0, %v4147_v34  ;;  %v1083_v22 = vsub.f32 %v827_v10, %v2158_v24  ;;  %v709_v61 = vld [vmem:[%s4056_s2 + $0x100] sm:$0xff] }
  0x74   :  { %4164 = vst [vmem:[#allocation22_spill] sm:$0xff] %v2760_v25  ;;  %4166 = vst [vmem:[#allocation24_spill] sm:$0xff] %v2770_v15  ;;  %v2773_v49 = vsel %vm891_vm7, 1.0, %v4147_v34  ;;  %1295 = vmax.xlane.f32.xlu1 %v2760_v25  ;;  %v1148_v45 = vmul.f32 %v2770_v15, %v1084_v31  ;;  %vm894_vm8 = vcmp.gt.f32.partialorder %v830_v29, %v2158_v24  ;;  %1946 = vrcp.f32 %v506_v52 }
  0x75   :  { %4165 = vst [vmem:[#allocation23_spill] sm:$0xff] %v2767_v62  ;;  %4167 = vst [vmem:[#allocation25_spill] sm:$0xff] %v2773_v49  ;;  %v1086_v7 = vsub.f32 %v830_v29, %v2158_v24  ;;  %v1147_v39 = vmul.f32 %v2773_v49, %v1083_v22  ;;  %v2788_v13 = vsel %vm894_vm8, 1.0, %v4147_v34  ;;  %1948 = vrcp.f32 %v505_v46  ;;  %v53_v22 = vld [vmem:[%s4054_s0 + $0x110] sm:$0xff] }
  0x76   :  { %4168 = vst [vmem:[#allocation26_spill] sm:$0xff] %v2788_v13  ;;  %v413_v20 = vmul.f32 1.442695, %v2675_v58  ;;  %v2795_v21 = vadd.f32 %v2770_v15, %v1148_v45  ;;  %1950 = vrcp.f32 %v508_v3  ;;  %v411_v29 = vmul.f32 1.442695, %v2678_v42  ;;  %v54_v58 = vld [vmem:[%s4054_s0 + $0x118] sm:$0xff]  ;;  %v1945_v52 = vpop.eup %1944 }
  0x77   :  { %v1150_v10 = vmul.f32 %v2788_v13, %v1086_v7  ;;  %1293 = vmax.xlane.f32.xlu0 %v2767_v62  ;;  %v2807_v46 = vadd.f32 %v2773_v49, %v1147_v39  ;;  %1952 = vpow2.f32 %v2681_v47  ;;  %v116_v31 = vmax.f32 %v52_v63, 0.0  ;;  %v712_v42 = vld [vmem:[%s4056_s2 + $0x118] sm:$0xff]  ;;  %v711_v63 = vld [vmem:[%s4056_s2 + $0x110] sm:$0xff] }
  0x78   :  { %4169 = vst [vmem:[#allocation27_spill] sm:$0xff] %v2795_v21  ;;  %v2810_v3 = vmul.f32 0.2, %v710_v33  ;;  %1299 = vmax.xlane.f32.xlu1 %v2795_v21  ;;  %v598_v7 = vmul.f32 %v1945_v52, %v2158_v24  ;;  %1954 = vpow2.f32 %v413_v20  ;;  %v115_v47 = vmax.f32 %v51_v37, 0.0  ;;  %v56_v33 = vld [vmem:[%s4054_s0 + $0x128] sm:$0xff] }
  0x79   :  { %4170 = vst [vmem:[#allocation28_spill] sm:$0xff] %v2807_v46  ;;  %v2820_v45 = vadd.f32 %v2788_v13, %v1150_v10  ;;  %1956 = vpow2.f32 %v411_v29  ;;  %v186_v39 = vsub.f32 %v116_v31, %v2144_v19  ;;  %v2830_v49 = vmul.f32 0.2, %v709_v61  ;;  %v714_v61 = vld [vmem:[%s4056_s2 + $0x128] sm:$0xff] }
  0x7a   :  { %v118_v15 = vmax.f32 %v54_v58, 0.0  ;;  %v829_v10 = vadd.f32 %v2585_v18, %v598_v7  ;;  %v185_v52 = vsub.f32 %v115_v47, %v2144_v19  ;;  %v2834_v20 = vmul.f32 0.2, %v712_v42 }
  0x7b   :  { %4171 = vst [vmem:[#allocation29_spill] sm:$0xff] %v2820_v45  ;;  %v117_v37 = vmax.f32 %v53_v22, 0.0  ;;  %1297 = vmax.xlane.f32.xlu0 %v2807_v46  ;;  %v250_v13 = vsub.f32 0.0, %v186_v39  ;;  %v2838_v21 = vmul.f32 0.2, %v711_v63  ;;  %v120_v29 = vmax.f32 %v56_v33, 0.0 }
  0x7c   :  { %v188_v12 = vsub.f32 %v118_v15, %v2144_v19  ;;  %1303 = vmax.xlane.f32.xlu1 %v2820_v45  ;;  %vm893_vm9 = vcmp.gt.f32.partialorder %v829_v10, %v2158_v24  ;;  %v1085_v18 = vsub.f32 %v829_v10, %v2158_v24  ;;  %v249_v58 = vsub.f32 0.0, %v185_v52 }
  0x7d   :  { %v187_v31 = vsub.f32 %v117_v37, %v2144_v19  ;;  %v2848_v42 = vsel %vm893_vm9, 1.0, %v4147_v34  ;;  %v320_v15 = vmul.f32 %v2256_v26, %v250_v13  ;;  %v190_v7 = vsub.f32 %v120_v29, %v2144_v19 }
  0x7e   :  { %4172 = vst [vmem:[#allocation30_spill] sm:$0xff] %v2848_v42  ;;  %v252_v22 = vsub.f32 0.0, %v188_v12  ;;  %v1947_v47 = vpop.eup %1946  ;;  %v1149_v63 = vmul.f32 %v2848_v42, %v1085_v18  ;;  %v319_v33 = vmul.f32 %v2256_v26, %v249_v58  ;;  %v2854_v45 = vmul.f32 0.2, %v714_v61 }
  0x7f   :  { %v251_v39 = vsub.f32 0.0, %v187_v31  ;;  %v1949_v10 = vpop.eup %1948  ;;  %v604_v52 = vmul.f32 %v1947_v47, %v2158_v24  ;;  %v417_v37 = vmul.f32 1.442695, %v320_v15  ;;  %v254_v60 = vsub.f32 0.0, %v190_v7 }
  0x80   :  { %v322_v46 = vmul.f32 %v2256_v26, %v252_v22  ;;  %v1951_v62 = vpop.eup %1950  ;;  %v2859_v12 = vadd.f32 %v2848_v42, %v1149_v63  ;;  %v602_v13 = vmul.f32 %v1949_v10, %v2158_v24  ;;  %v415_v29 = vmul.f32 1.442695, %v319_v33 }
  0x81   :  { %v321_v18 = vmul.f32 %v2256_v26, %v251_v39  ;;  %v1953_v58 = vpop.eup %1952  ;;  %v832_v61 = vadd.f32 %v2593_v50, %v604_v52  ;;  %v608_v31 = vmul.f32 %v1951_v62, %v2158_v24  ;;  %1958 = vpow2.f32 %v417_v37  ;;  %v713_v37 = vld [vmem:[%s4056_s2 + $0x120] sm:$0xff] }
  0x82   :  { %4173 = vst [vmem:[#allocation31_spill] sm:$0xff] %v2859_v12  ;;  %v421_v47 = vmul.f32 1.442695, %v322_v46  ;;  %v1955_v15 = vpop.eup %1954  ;;  %1301 = vmax.xlane.f32.xlu0 %v2859_v12  ;;  %v831_v22 = vadd.f32 %v2605_v48, %v602_v13  ;;  %v507_v7 = vadd.f32 1.0, %v1953_v58  ;;  %1960 = vpow2.f32 %v415_v29  ;;  %v58_v58 = vld [vmem:[%s4054_s0 + $0x138] sm:$0xff] }
  0x83   :  { %v419_v63 = vmul.f32 1.442695, %v321_v18  ;;  %v1957_v42 = vpop.eup %1956  ;;  %vm896_vm10 = vcmp.gt.f32.partialorder %v832_v61, %v2158_v24  ;;  %v1088_v33 = vsub.f32 %v832_v61, %v2158_v24  ;;  %v834_v39 = vadd.f32 %v2613_v27, %v608_v31  ;;  %v55_v27 = vld [vmem:[%s4054_s0 + $0x120] sm:$0xff] }
  0x84   :  { %v510_v50 = vadd.f32 1.0, %v1955_v15  ;;  %v2871_v62 = vsel %vm896_vm10, 1.0, %v4147_v34  ;;  %vm895_vm11 = vcmp.gt.f32.partialorder %v831_v22, %v2158_v24  ;;  %v1087_v46 = vsub.f32 %v831_v22, %v2158_v24  ;;  %v716_v22 = vld [vmem:[%s4056_s2 + $0x138] sm:$0xff] }
  0x85   :  { %4174 = vst [vmem:[#allocation32_spill] sm:$0xff] %v2871_v62  ;;  %1962 = vrcp.f32 %v507_v7  ;;  %v1152_v48 = vmul.f32 %v2871_v62, %v1088_v33  ;;  %v2877_v10 = vsel %vm895_vm11, 1.0, %v4147_v34  ;;  %vm898_vm12 = vcmp.gt.f32.partialorder %v834_v39, %v2158_v24  ;;  %v715_v7 = vld [vmem:[%s4056_s2 + $0x130] sm:$0xff] }
  0x86   :  { %4175 = vst [vmem:[#allocation33_spill] sm:$0xff] %v2877_v10  ;;  %v1090_v52 = vsub.f32 %v834_v39, %v2158_v24  ;;  %v1151_v13 = vmul.f32 %v2877_v10, %v1087_v46  ;;  %v2889_v29 = vsel %vm898_vm12, 1.0, %v4147_v34  ;;  %1964 = vrcp.f32 %v510_v50  ;;  %v718_v50 = vld [vmem:[%s4056_s2 + $0x148] sm:$0xff] }
  0x87   :  { %4176 = vst [vmem:[#allocation34_spill] sm:$0xff] %v2889_v29  ;;  %v509_v18 = vadd.f32 1.0, %v1957_v42  ;;  %v2895_v61 = vadd.f32 %v2871_v62, %v1152_v48  ;;  %1966 = vpow2.f32 %v421_v47  ;;  %v324_v15 = vmul.f32 %v2256_v26, %v254_v60  ;;  %v57_v42 = vld [vmem:[%s4054_s0 + $0x130] sm:$0xff]  ;;  %v60_v60 = vld [vmem:[%s4054_s0 + $0x148] sm:$0xff] }
  0x88   :  { %v1154_v31 = vmul.f32 %v2889_v29, %v1090_v52  ;;  %v2909_v33 = vadd.f32 %v2877_v10, %v1151_v13  ;;  %v119_v39 = vmax.f32 %v55_v27, 0.0  ;;  %v2911_v47 = vmul.f32 0.2, %v713_v37  ;;  %v59_v27 = vld [vmem:[%s4054_s0 + $0x140] sm:$0xff] }
  0x89   :  { %4177 = vst [vmem:[#allocation35_spill] sm:$0xff] %v2895_v61  ;;  %1968 = vrcp.f32 %v509_v18  ;;  %1307 = vmax.xlane.f32.xlu1 %v2895_v61  ;;  %v425_v48 = vmul.f32 1.442695, %v324_v15  ;;  %v122_v52 = vmax.f32 %v58_v58, 0.0  ;;  %v2928_v13 = vmul.f32 0.2, %v716_v22 }
  0x8a   :  { %4178 = vst [vmem:[#allocation36_spill] sm:$0xff] %v2909_v33  ;;  %v2921_v46 = vadd.f32 %v2889_v29, %v1154_v31  ;;  %1970 = vpow2.f32 %v419_v63  ;;  %1305 = vmax.xlane.f32.xlu0 %v2909_v33  ;;  %v189_v37 = vsub.f32 %v119_v39, %v2144_v19  ;;  %v121_v18 = vmax.f32 %v57_v42, 0.0  ;;  %v717_v31 = vld [vmem:[%s4056_s2 + $0x140] sm:$0xff] }
  0x8b   :  { %v2930_v10 = vmul.f32 0.2, %v715_v7  ;;  %v1959_v63 = vpop.eup %1958  ;;  %1972 = vpow2.f32 %v425_v48  ;;  %v192_v58 = vsub.f32 %v122_v52, %v2144_v19  ;;  %v124_v15 = vmax.f32 %v60_v60, 0.0  ;;  %v62_v60 = vld [vmem:[%s4054_s0 + $0x158] sm:$0xff] }
  0x8c   :  { %4179 = vst [vmem:[#allocation37_spill] sm:$0xff] %v2921_v46  ;;  %v2936_v29 = vmul.f32 0.2, %v718_v50  ;;  %v1961_v62 = vpop.eup %1960  ;;  %v512_v33 = vadd.f32 1.0, %v1959_v63  ;;  %v253_v61 = vsub.f32 0.0, %v189_v37  ;;  %v191_v22 = vsub.f32 %v121_v18, %v2144_v19 }
  0x8d   :  { %v123_v39 = vmax.f32 %v59_v27, 0.0  ;;  %1311 = vmax.xlane.f32.xlu1 %v2921_v46  ;;  %v511_v42 = vadd.f32 1.0, %v1961_v62  ;;  %v256_v7 = vsub.f32 0.0, %v192_v58  ;;  %v194_v12 = vsub.f32 %v124_v15, %v2144_v19 }
  0x8e   :  { %v2941_v1 = vmul.f32 0.2, %v717_v31  ;;  %1974 = vrcp.f32 %v512_v33  ;;  %v323_v48 = vmul.f32 %v2256_v26, %v253_v61  ;;  %v255_v52 = vsub.f32 0.0, %v191_v22 }
  0x8f   :  { %v1963_v50 = vpop.eup %1962  ;;  %v193_v37 = vsub.f32 %v123_v39, %v2144_v19  ;;  %1976 = vrcp.f32 %v511_v42  ;;  %v326_v62 = vmul.f32 %v2256_v26, %v256_v7  ;;  %v258_v18 = vsub.f32 0.0, %v194_v12 }
  0x90   :  { %v606_v27 = vmul.f32 %v1963_v50, %v2158_v24  ;;  %v1965_v63 = vpop.eup %1964  ;;  %v423_v31 = vmul.f32 1.442695, %v323_v48  ;;  %v325_v58 = vmul.f32 %v2256_v26, %v255_v52  ;;  %v126_v46 = vmax.f32 %v62_v60, 0.0 }
  0x91   :  { %v257_v15 = vsub.f32 0.0, %v193_v37  ;;  %v1967_v25 = vpop.eup %1966  ;;  %v612_v61 = vmul.f32 %v1965_v63, %v2158_v24  ;;  %v429_v22 = vmul.f32 1.442695, %v326_v62  ;;  %v328_v39 = vmul.f32 %v2256_v26, %v258_v18 }
  0x92   :  { %v833_v33 = vadd.f32 %v2655_v43, %v606_v27  ;;  %v514_v50 = vadd.f32 1.0, %v1967_v25  ;;  %1978 = vpow2.f32 %v423_v31  ;;  %v427_v42 = vmul.f32 1.442695, %v325_v58 }
  0x93   :  { %v1969_v44 = vpop.eup %1968  ;;  %v327_v12 = vmul.f32 %v2256_v26, %v257_v15  ;;  %v836_v60 = vadd.f32 %v2661_v40, %v612_v61  ;;  %v433_v27 = vmul.f32 1.442695, %v328_v39  ;;  %v720_v40 = vld [vmem:[%s4056_s2 + $0x158] sm:$0xff] }
  0x94   :  { %v1971_v7 = vpop.eup %1970  ;;  %vm897_vm13 = vcmp.gt.f32.partialorder %v833_v33, %v2158_v24  ;;  %v1089_v48 = vsub.f32 %v833_v33, %v2158_v24  ;;  %v610_v43 = vmul.f32 %v1969_v44, %v2158_v24  ;;  %1980 = vrcp.f32 %v514_v50 }
  0x95   :  { %v2960_v52 = vsel %vm897_vm13, 1.0, %v4147_v34  ;;  %v513_v37 = vadd.f32 1.0, %v1971_v7  ;;  %v1973_v25 = vpop.eup %1972  ;;  %vm900_vm14 = vcmp.gt.f32.partialorder %v836_v60, %v2158_v24  ;;  %v1092_v18 = vsub.f32 %v836_v60, %v2158_v24 }
  0x96   :  { %4180 = vst [vmem:[#allocation38_spill] sm:$0xff] %v2960_v52  ;;  %v1153_v62 = vmul.f32 %v2960_v52, %v1089_v48  ;;  %v835_v63 = vadd.f32 %v2666_v53, %v610_v43  ;;  %v2970_v44 = vsel %vm900_vm14, 1.0, %v4147_v34  ;;  %v516_v31 = vadd.f32 1.0, %v1973_v25  ;;  %v61_v53 = vld [vmem:[%s4054_s0 + $0x150] sm:$0xff] }
  0x97   :  { %4181 = vst [vmem:[#allocation39_spill] sm:$0xff] %v2970_v44  ;;  %1982 = vrcp.f32 %v513_v37  ;;  %v431_v58 = vmul.f32 1.442695, %v327_v12  ;;  %v1156_v33 = vmul.f32 %v2970_v44, %v1092_v18  ;;  %v196_v12 = vsub.f32 %v126_v46, %v2144_v19  ;;  %v719_v48 = vld [vmem:[%s4056_s2 + $0x150] sm:$0xff] }
  0x98   :  { %v2973_v15 = vadd.f32 %v2960_v52, %v1153_v62  ;;  %vm899_vm15 = vcmp.gt.f32.partialorder %v835_v63, %v2158_v24  ;;  %v1091_v61 = vsub.f32 %v835_v63, %v2158_v24  ;;  %v1975_v39 = vpop.eup %1974  ;;  %1984 = vrcp.f32 %v516_v31  ;;  %v64_v63 = vld [vmem:[%s4054_s0 + $0x168] sm:$0xff] }
  0x99   :  { %v2982_v50 = vsel %vm899_vm15, 1.0, %v4147_v34  ;;  %v2985_v7 = vmul.f32 0.2, %v720_v40  ;;  %v1977_v60 = vpop.eup %1976  ;;  %v2992_v43 = vadd.f32 %v2970_v44, %v1156_v33  ;;  %v616_v25 = vmul.f32 %v1975_v39, %v2158_v24 }
  0x9a   :  { %4182 = vst [vmem:[#allocation40_spill] sm:$0xff] %v2973_v15  ;;  %4183 = vst [vmem:[#allocation41_spill] sm:$0xff] %v2982_v50  ;;  %1309 = vmax.xlane.f32.xlu0 %v2973_v15  ;;  %v1155_v37 = vmul.f32 %v2982_v50, %v1091_v61  ;;  %1986 = vpow2.f32 %v429_v22  ;;  %v614_v62 = vmul.f32 %v1977_v60, %v2158_v24  ;;  %v260_v46 = vsub.f32 0.0, %v196_v12  ;;  %v3361_v15 = vld [vmem:[%s4054_s0 + $0x1e0] sm:$0xff] }
  0x9b   :  { %4184 = vst [vmem:[#allocation42_spill] sm:$0xff] %v2992_v43  ;;  %1988 = vpow2.f32 %v427_v42  ;;  %v125_v18 = vmax.f32 %v61_v53, 0.0  ;;  %1315 = vmax.xlane.f32.xlu1 %v2992_v43  ;;  %v838_v31 = vadd.f32 %v2810_v3, %v616_v25  ;;  %v3005_v33 = vmul.f32 0.2, %v719_v48  ;;  %v722_v48 = vld [vmem:[%s4056_s2 + $0x168] sm:$0xff] }
  0x9c   :  { %v3002_v40 = vadd.f32 %v2982_v50, %v1155_v37  ;;  %1990 = vpow2.f32 %v433_v27  ;;  %v1979_v22 = vpop.eup %1978  ;;  %v837_v61 = vadd.f32 %v2830_v49, %v614_v62  ;;  %v330_v42 = vmul.f32 %v2256_v26, %v260_v46  ;;  %v63_v46 = vld [vmem:[%s4054_s0 + $0x160] sm:$0xff] }
  0x9d   :  { %1992 = vpow2.f32 %v431_v58  ;;  %v195_v53 = vsub.f32 %v125_v18, %v2144_v19  ;;  %vm902_vm0 = vcmp.gt.f32.partialorder %v838_v31, %v2158_v24  ;;  %v1094_v39 = vsub.f32 %v838_v31, %v2158_v24 }
  0x9e   :  { %4185 = vst [vmem:[#allocation43_spill] sm:$0xff] %v3002_v40  ;;  %1313 = vmax.xlane.f32.xlu0 %v3002_v40  ;;  %v515_v12 = vadd.f32 1.0, %v1979_v22  ;;  %v128_v60 = vmax.f32 %v64_v63, 0.0  ;;  %v1981_v3 = vpop.eup %1980  ;;  %v3014_v27 = vsel %vm902_vm0, 1.0, %v4147_v34  ;;  %vm901_vm1 = vcmp.gt.f32.partialorder %v837_v61, %v2158_v24 }
  0x9f   :  { %4186 = vst [vmem:[#allocation44_spill] sm:$0xff] %v3014_v27  ;;  %v1093_v49 = vsub.f32 %v837_v61, %v2158_v24  ;;  %v437_v58 = vmul.f32 1.442695, %v330_v42  ;;  %v1158_v37 = vmul.f32 %v3014_v27, %v1094_v39  ;;  %v3023_v25 = vsel %vm901_vm1, 1.0, %v4147_v34 }
  0xa0   :  { %4187 = vst [vmem:[#allocation45_spill] sm:$0xff] %v3023_v25  ;;  %v620_v62 = vmul.f32 %v1981_v3, %v2158_v24  ;;  %1994 = vrcp.f32 %v515_v12  ;;  %v259_v31 = vsub.f32 0.0, %v195_v53  ;;  %v198_v22 = vsub.f32 %v128_v60, %v2144_v19 }
  0xa1   :  { %v1983_v18 = vpop.eup %1982  ;;  %v1157_v63 = vmul.f32 %v3023_v25, %v1093_v49  ;;  %1996 = vpow2.f32 %v437_v58  ;;  %v3032_v61 = vadd.f32 %v3014_v27, %v1158_v37  ;;  %v3036_v3 = vmul.f32 0.2, %v722_v48 }
  0xa2   :  { %v840_v42 = vadd.f32 %v2834_v20, %v620_v62  ;;  %v618_v39 = vmul.f32 %v1983_v18, %v2158_v24  ;;  %v1985_v12 = vpop.eup %1984  ;;  %v329_v40 = vmul.f32 %v2256_v26, %v259_v31  ;;  %v262_v49 = vsub.f32 0.0, %v198_v22 }
  0xa3   :  { %4188 = vst [vmem:[#allocation46_spill] sm:$0xff] %v3032_v61  ;;  %v3039_v50 = vadd.f32 %v3023_v25, %v1157_v63  ;;  %v127_v58 = vmax.f32 %v63_v46, 0.0  ;;  %1319 = vmax.xlane.f32.xlu1 %v3032_v61  ;;  %v624_v48 = vmul.f32 %v1985_v12, %v2158_v24 }
  0xa4   :  { %v1987_v53 = vpop.eup %1986  ;;  %vm904_vm2 = vcmp.gt.f32.partialorder %v840_v42, %v2158_v24  ;;  %v1096_v60 = vsub.f32 %v840_v42, %v2158_v24  ;;  %v839_v20 = vadd.f32 %v2838_v21, %v618_v39  ;;  %v435_v63 = vmul.f32 1.442695, %v329_v40 }
  0xa5   :  { %4189 = vst [vmem:[#allocation47_spill] sm:$0xff] %v3039_v50  ;;  %v1989_v37 = vpop.eup %1988  ;;  %1317 = vmax.xlane.f32.xlu0 %v3039_v50  ;;  %v3049_v62 = vsel %vm904_vm2, 1.0, %v4147_v34  ;;  %v518_v18 = vadd.f32 1.0, %v1987_v53  ;;  %v332_v46 = vmul.f32 %v2256_v26, %v262_v49  ;;  %v842_v21 = vadd.f32 %v2854_v45, %v624_v48  ;;  %v721_v45 = vld [vmem:[%s4056_s2 + $0x160] sm:$0xff] }
  0xa6   :  { %4190 = vst [vmem:[#allocation48_spill] sm:$0xff] %v3049_v62  ;;  %v1991_v31 = vpop.eup %1990  ;;  %v1160_v22 = vmul.f32 %v3049_v62, %v1096_v60  ;;  %vm903_vm3 = vcmp.gt.f32.partialorder %v839_v20, %v2158_v24  ;;  %v1095_v42 = vsub.f32 %v839_v20, %v2158_v24  ;;  %v517_v25 = vadd.f32 1.0, %v1989_v37  ;;  %v66_v60 = vld [vmem:[%s4054_s0 + $0x178] sm:$0xff] }
  0xa7   :  { %v1993_v39 = vpop.eup %1992  ;;  %v3057_v12 = vsel %vm903_vm3, 1.0, %v4147_v34  ;;  %1998 = vrcp.f32 %v518_v18  ;;  %v520_v27 = vadd.f32 1.0, %v1991_v31  ;;  %vm906_vm4 = vcmp.gt.f32.partialorder %v842_v21, %v2158_v24 }
  0xa8   :  { %4191 = vst [vmem:[#allocation49_spill] sm:$0xff] %v3057_v12  ;;  %v3060_v40 = vadd.f32 %v3049_v62, %v1160_v22  ;;  %v1159_v49 = vmul.f32 %v3057_v12, %v1095_v42  ;;  %v1098_v53 = vsub.f32 %v842_v21, %v2158_v24  ;;  %v3072_v20 = vsel %vm906_vm4, 1.0, %v4147_v34  ;;  %v724_v21 = vld [vmem:[%s4056_s2 + $0x178] sm:$0xff] }
  0xa9   :  { %4193 = vst [vmem:[#allocation51_spill] sm:$0xff] %v3072_v20  ;;  %2000 = vrcp.f32 %v517_v25  ;;  %v519_v48 = vadd.f32 1.0, %v1993_v39  ;;  %v441_v37 = vmul.f32 1.442695, %v332_v46  ;;  %v197_v42 = vsub.f32 %v127_v58, %v2144_v19 }
  0xaa   :  { %4192 = vst [vmem:[#allocation50_spill] sm:$0xff] %v3060_v40  ;;  %v1995_v18 = vpop.eup %1994  ;;  %1323 = vmax.xlane.f32.xlu1 %v3060_v40  ;;  %v3076_v31 = vadd.f32 %v3057_v12, %v1159_v49  ;;  %v1162_v22 = vmul.f32 %v3072_v20, %v1098_v53  ;;  %2002 = vrcp.f32 %v520_v27  ;;  %v3084_v46 = vmul.f32 0.2, %v721_v45  ;;  %v65_v49 = vld [vmem:[%s4054_s0 + $0x170] sm:$0xff]  ;;  %v68_v45 = vld [vmem:[%s4054_s0 + $0x188] sm:$0xff] }
  0xab   :  { %v1997_v62 = vpop.eup %1996  ;;  %v622_v25 = vmul.f32 %v1995_v18, %v2158_v24  ;;  %2004 = vrcp.f32 %v519_v48  ;;  %v130_v39 = vmax.f32 %v66_v60, 0.0  ;;  %v723_v27 = vld [vmem:[%s4056_s2 + $0x170] sm:$0xff]  ;;  %v261_v18 = vsub.f32 0.0, %v197_v42 }
  0xac   :  { %4194 = vst [vmem:[#allocation52_spill] sm:$0xff] %v3076_v31  ;;  %1321 = vmax.xlane.f32.xlu0 %v3076_v31  ;;  %v3094_v58 = vadd.f32 %v3072_v20, %v1162_v22  ;;  %v522_v53 = vadd.f32 1.0, %v1997_v62  ;;  %2006 = vpow2.f32 %v435_v63  ;;  %v3101_v12 = vmul.f32 0.2, %v724_v21  ;;  %v726_v31 = vld [vmem:[%s4056_s2 + $0x188] sm:$0xff] }
  0xad   :  { %v841_v60 = vadd.f32 %v2911_v47, %v622_v25  ;;  %2008 = vpow2.f32 %v441_v37  ;;  %v200_v48 = vsub.f32 %v130_v39, %v2144_v19  ;;  %v331_v62 = vmul.f32 %v2256_v26, %v261_v18  ;;  %v67_v47 = vld [vmem:[%s4054_s0 + $0x180] sm:$0xff] }
  0xae   :  { %4195 = vst [vmem:[#allocation53_spill] sm:$0xff] %v3094_v58  ;;  %1327 = vmax.xlane.f32.xlu1 %v3094_v58  ;;  %2010 = vrcp.f32 %v522_v53  ;;  %v129_v63 = vmax.f32 %v65_v49, 0.0  ;;  %v3108_v22 = vmul.f32 0.2, %v723_v27  ;;  %v132_v21 = vmax.f32 %v68_v45, 0.0  ;;  %v725_v25 = vld [vmem:[%s4056_s2 + $0x180] sm:$0xff] }
  0xaf   :  { %vm905_vm5 = vcmp.gt.f32.partialorder %v841_v60, %v2158_v24  ;;  %v1097_v37 = vsub.f32 %v841_v60, %v2158_v24  ;;  %v264_v42 = vsub.f32 0.0, %v200_v48  ;;  %v439_v49 = vmul.f32 1.442695, %v331_v62  ;;  %v3130_v48 = vld [vmem:[%s4054_s0 + $0x198] sm:$0xff] }
  0xb0   :  { %v3119_v39 = vsel %vm905_vm5, 1.0, %v4147_v34  ;;  %v199_v27 = vsub.f32 %v129_v63, %v2144_v19  ;;  %v3122_v53 = vmul.f32 0.2, %v726_v31  ;;  %v202_v60 = vsub.f32 %v132_v21, %v2144_v19 }
  0xb1   :  { %4196 = vst [vmem:[#allocation54_spill] sm:$0xff] %v3119_v39  ;;  %v1999_v18 = vpop.eup %1998  ;;  %v1161_v20 = vmul.f32 %v3119_v39, %v1097_v37  ;;  %v334_v58 = vmul.f32 %v2256_v26, %v264_v42  ;;  %v131_v45 = vmax.f32 %v67_v47, 0.0  ;;  %2012 = vpow2.f32 %v439_v49 }
  0xb2   :  { %v628_v40 = vmul.f32 %v1999_v18, %v2158_v24  ;;  %v263_v62 = vsub.f32 0.0, %v199_v27  ;;  %v3133_v63 = vmul.f32 0.2, %v725_v25  ;;  %v266_v42 = vsub.f32 0.0, %v202_v60 }
  0xb3   :  { %v2001_v31 = vpop.eup %2000  ;;  %v3136_v50 = vadd.f32 %v3119_v39, %v1161_v20  ;;  %v445_v37 = vmul.f32 1.442695, %v334_v58  ;;  %v201_v21 = vsub.f32 %v131_v45, %v2144_v19  ;;  %v134_v49 = vmax.f32 %v3130_v48, 0.0 }
  0xb4   :  { %v2003_v47 = vpop.eup %2002  ;;  %v844_v61 = vadd.f32 %v2928_v13, %v628_v40  ;;  %v626_v44 = vmul.f32 %v2001_v31, %v2158_v24  ;;  %v333_v43 = vmul.f32 %v2256_v26, %v263_v62  ;;  %v336_v20 = vmul.f32 %v2256_v26, %v266_v42 }
  0xb5   :  { %4197 = vst [vmem:[#allocation55_spill] sm:$0xff] %v3136_v50  ;;  %v2005_v27 = vpop.eup %2004  ;;  %1325 = vmax.xlane.f32.xlu0 %v3136_v50  ;;  %v632_v25 = vmul.f32 %v2003_v47, %v2158_v24  ;;  %2014 = vpow2.f32 %v445_v37  ;;  %v265_v58 = vsub.f32 0.0, %v201_v21 }
  0xb6   :  { %v2007_v18 = vpop.eup %2006  ;;  %vm908_vm6 = vcmp.gt.f32.partialorder %v844_v61, %v2158_v24  ;;  %v1100_v13 = vsub.f32 %v844_v61, %v2158_v24  ;;  %v843_v40 = vadd.f32 %v2930_v10, %v626_v44  ;;  %v630_v60 = vmul.f32 %v2005_v27, %v2158_v24 }
  0xb7   :  { %v2009_v45 = vpop.eup %2008  ;;  %v3151_v48 = vsel %vm908_vm6, 1.0, %v4147_v34  ;;  %v846_v62 = vadd.f32 %v2936_v29, %v632_v25  ;;  %v521_v31 = vadd.f32 1.0, %v2007_v18  ;;  %v443_v37 = vmul.f32 1.442695, %v333_v43 }
  0xb8   :  { %4198 = vst [vmem:[#allocation56_spill] sm:$0xff] %v3151_v48  ;;  %v2011_v47 = vpop.eup %2010  ;;  %v1164_v42 = vmul.f32 %v3151_v48, %v1100_v13  ;;  %vm907_vm7 = vcmp.gt.f32.partialorder %v843_v40, %v2158_v24  ;;  %v1099_v21 = vsub.f32 %v843_v40, %v2158_v24  ;;  %v845_v61 = vadd.f32 %v2941_v1, %v630_v60 }
  0xb9   :  { %v3159_v10 = vsel %vm907_vm7, 1.0, %v4147_v34  ;;  %vm910_vm8 = vcmp.gt.f32.partialorder %v846_v62, %v2158_v24  ;;  %v1102_v44 = vsub.f32 %v846_v62, %v2158_v24  ;;  %v636_v29 = vmul.f32 %v2011_v47, %v2158_v24 }
  0xba   :  { %4199 = vst [vmem:[#allocation57_spill] sm:$0xff] %v3159_v10  ;;  %v3165_v43 = vadd.f32 %v3151_v48, %v1164_v42  ;;  %v1163_v27 = vmul.f32 %v3159_v10, %v1099_v21  ;;  %v3169_v25 = vsel %vm910_vm8, 1.0, %v4147_v34  ;;  %vm909_vm9 = vcmp.gt.f32.partialorder %v845_v61, %v2158_v24 }
  0xbb   :  { %4201 = vst [vmem:[#allocation59_spill] sm:$0xff] %v3169_v25  ;;  %v1166_v1 = vmul.f32 %v3169_v25, %v1102_v44  ;;  %v3174_v18 = vsel %vm909_vm9, 1.0, %v4147_v34  ;;  %v1101_v13 = vsub.f32 %v845_v61, %v2158_v24  ;;  %v848_v40 = vadd.f32 %v2985_v7, %v636_v29  ;;  %v2013_v60 = vpop.eup %2012  ;;  %v728_v7 = vld [vmem:[%s4056_s2 + $0x198] sm:$0xff] }
  0xbc   :  { %4200 = vst [vmem:[#allocation58_spill] sm:$0xff] %v3165_v43  ;;  %4202 = vst [vmem:[#allocation60_spill] sm:$0xff] %v3174_v18  ;;  %1331 = vmax.xlane.f32.xlu1 %v3165_v43  ;;  %v3180_v62 = vadd.f32 %v3159_v10, %v1163_v27  ;;  %2016 = vrcp.f32 %v521_v31  ;;  %v524_v47 = vadd.f32 1.0, %v2009_v45  ;;  %v449_v42 = vmul.f32 1.442695, %v336_v20  ;;  %v69_v31 = vld [vmem:[%s4054_s0 + $0x190] sm:$0xff] }
  0xbd   :  { %v3183_v21 = vadd.f32 %v3169_v25, %v1166_v1  ;;  %v1165_v44 = vmul.f32 %v3174_v18, %v1101_v13  ;;  %vm912_vm10 = vcmp.gt.f32.partialorder %v848_v40, %v2158_v24  ;;  %v1104_v61 = vsub.f32 %v848_v40, %v2158_v24 }
  0xbe   :  { %4203 = vst [vmem:[#allocation61_spill] sm:$0xff] %v3180_v62  ;;  %1329 = vmax.xlane.f32.xlu0 %v3180_v62  ;;  %v3193_v29 = vsel %vm912_vm10, 1.0, %v4147_v34  ;;  %2018 = vrcp.f32 %v524_v47  ;;  %v523_v20 = vadd.f32 1.0, %v2013_v60  ;;  %v335_v45 = vmul.f32 %v2256_v26, %v265_v58  ;;  %v727_v47 = vld [vmem:[%s4056_s2 + $0x190] sm:$0xff]  ;;  %v72_v58 = vld [vmem:[%s4054_s0 + $0x1a8] sm:$0xff]  ;;  %v729_v62 = vld [vmem:[%s4056_s2 + $0x1a0] sm:$0xff] }
  0xbf   :  { %4204 = vst [vmem:[#allocation62_spill] sm:$0xff] %v3183_v21  ;;  %4205 = vst [vmem:[#allocation63_spill] sm:$0xff] %v3193_v29  ;;  %v2015_v27 = vpop.eup %2014  ;;  %v3200_v1 = vadd.f32 %v3174_v18, %v1165_v44  ;;  %v1168_v13 = vmul.f32 %v3193_v29, %v1104_v61  ;;  %2020 = vpow2.f32 %v443_v37  ;;  %v204_v40 = vsub.f32 %v134_v49, %v2144_v19  ;;  %v730_v60 = vld [vmem:[%s4056_s2 + $0x1a8] sm:$0xff]  ;;  %v71_v49 = vld [vmem:[%s4054_s0 + $0x1a0] sm:$0xff] }
  0xc0   :  { %1335 = vmax.xlane.f32.xlu1 %v3183_v21  ;;  %2022 = vrcp.f32 %v523_v20  ;;  %v526_v44 = vadd.f32 1.0, %v2015_v27  ;;  %v447_v61 = vmul.f32 1.442695, %v335_v45  ;;  %v3214_v37 = vmul.f32 0.2, %v728_v7  ;;  %v74_v20 = vld [vmem:[%s4054_s0 + $0x1b8] sm:$0xff] }
  0xc1   :  { %4206 = vst [vmem:[#allocation64_spill] sm:$0xff] %v3200_v1  ;;  %v3220_v18 = vadd.f32 %v3193_v29, %v1168_v13  ;;  %2024 = vpow2.f32 %v449_v42  ;;  %v268_v25 = vsub.f32 0.0, %v204_v40  ;;  %v133_v10 = vmax.f32 %v69_v31, 0.0  ;;  %v732_v7 = vld [vmem:[%s4056_s2 + $0x1b8] sm:$0xff]  ;;  %v73_v31 = vld [vmem:[%s4054_s0 + $0x1b0] sm:$0xff] }
  0xc2   :  { %1333 = vmax.xlane.f32.xlu0 %v3200_v1  ;;  %2026 = vrcp.f32 %v526_v44  ;;  %v3232_v45 = vmul.f32 0.2, %v727_v47  ;;  %v136_v42 = vmax.f32 %v72_v58, 0.0  ;;  %v3234_v27 = vmul.f32 0.2, %v730_v60  ;;  %v731_v1 = vld [vmem:[%s4056_s2 + $0x1b0] sm:$0xff] }
  0xc3   :  { %4207 = vst [vmem:[#allocation65_spill] sm:$0xff] %v3220_v18  ;;  %2028 = vpow2.f32 %v447_v61  ;;  %v338_v13 = vmul.f32 %v2256_v26, %v268_v25  ;;  %v203_v40 = vsub.f32 %v133_v10, %v2144_v19  ;;  %v135_v29 = vmax.f32 %v71_v49, 0.0  ;;  %v76_v47 = vld [vmem:[%s4054_s0 + $0x1c8] sm:$0xff] }
  0xc4   :  { %1339 = vmax.xlane.f32.xlu1 %v3220_v18  ;;  %v206_v58 = vsub.f32 %v136_v42, %v2144_v19  ;;  %v3249_v60 = vmul.f32 0.2, %v729_v62  ;;  %v138_v44 = vmax.f32 %v74_v20, 0.0  ;;  %v3251_v61 = vmul.f32 0.2, %v732_v7 }
  0xc5   :  { %v453_v25 = vmul.f32 1.442695, %v338_v13  ;;  %v267_v10 = vsub.f32 0.0, %v203_v40  ;;  %v205_v49 = vsub.f32 %v135_v29, %v2144_v19  ;;  %v137_v21 = vmax.f32 %v73_v31, 0.0 }
  0xc6   :  { %v2017_v48 = vpop.eup %2016  ;;  %v270_v43 = vsub.f32 0.0, %v206_v58  ;;  %v208_v39 = vsub.f32 %v138_v44, %v2144_v19  ;;  %v3255_v50 = vmul.f32 0.2, %v731_v1  ;;  %v140_v52 = vmax.f32 %v76_v47, 0.0 }
  0xc7   :  { %v634_v18 = vmul.f32 %v2017_v48, %v2158_v24  ;;  %2030 = vpow2.f32 %v453_v25  ;;  %v337_v62 = vmul.f32 %v2256_v26, %v267_v10  ;;  %v269_v20 = vsub.f32 0.0, %v205_v49 }
  0xc8   :  { %v2019_v7 = vpop.eup %2018  ;;  %v340_v42 = vmul.f32 %v2256_v26, %v270_v43  ;;  %v272_v13 = vsub.f32 0.0, %v208_v39  ;;  %v207_v29 = vsub.f32 %v137_v21, %v2144_v19  ;;  %v3262_v31 = vsub.f32 %v140_v52, %v2144_v19  ;;  %v3268_v39 = vpop.xlane.xlu1 %1257 }
  0xc9   :  { %v2021_v40 = vpop.eup %2020  ;;  %v847_v1 = vadd.f32 %v3005_v33, %v634_v18  ;;  %v640_v47 = vmul.f32 %v2019_v7, %v2158_v24  ;;  %v451_v58 = vmul.f32 1.442695, %v337_v62  ;;  %v339_v48 = vmul.f32 %v2256_v26, %v269_v20 }
  0xca   :  { %v2023_v44 = vpop.eup %2022  ;;  %v525_v25 = vadd.f32 1.0, %v2021_v40  ;;  %v457_v10 = vmul.f32 1.442695, %v340_v42  ;;  %v342_v49 = vmul.f32 %v2256_v26, %v272_v13  ;;  %v271_v43 = vsub.f32 0.0, %v207_v29 }
  0xcb   :  { %v2025_v21 = vpop.eup %2024  ;;  %vm911_vm11 = vcmp.gt.f32.partialorder %v847_v1, %v2158_v24  ;;  %v1103_v52 = vsub.f32 %v847_v1, %v2158_v24  ;;  %v850_v33 = vadd.f32 %v3036_v3, %v640_v47  ;;  %v638_v18 = vmul.f32 %v2023_v44, %v2158_v24 }
  0xcc   :  { %v2027_v62 = vpop.eup %2026  ;;  %v3275_v20 = vsel %vm911_vm11, 1.0, %v4147_v34  ;;  %2032 = vrcp.f32 %v525_v25  ;;  %v528_v7 = vadd.f32 1.0, %v2025_v21  ;;  %v455_v42 = vmul.f32 1.442695, %v339_v48 }
  0xcd   :  { %4208 = vst [vmem:[#allocation66_spill] sm:$0xff] %v3275_v20  ;;  %v2029_v13 = vpop.eup %2028  ;;  %v1167_v29 = vmul.f32 %v3275_v20, %v1103_v52  ;;  %vm914_vm12 = vcmp.gt.f32.partialorder %v850_v33, %v2158_v24  ;;  %v1106_v40 = vsub.f32 %v850_v33, %v2158_v24  ;;  %v849_v1 = vadd.f32 %v3084_v46, %v638_v18  ;;  %v3291_v52 = vpop.xlane.xlu0 %1253 }
  0xce   :  { %v3282_v3 = vsel %vm914_vm12, 1.0, %v4147_v34  ;;  %v644_v47 = vmul.f32 %v2027_v62, %v2158_v24  ;;  %2034 = vrcp.f32 %v528_v7  ;;  %v527_v44 = vadd.f32 1.0, %v2029_v13  ;;  %v3297_v62 = vpop.xlane.xlu1 %1259 }
  0xcf   :  { %4209 = vst [vmem:[#allocation67_spill] sm:$0xff] %v3282_v3  ;;  %v3286_v25 = vadd.f32 %v3275_v20, %v1167_v29  ;;  %v1170_v48 = vmul.f32 %v3282_v3, %v1106_v40  ;;  %vm913_vm13 = vcmp.gt.f32.partialorder %v849_v1, %v2158_v24  ;;  %v1105_v21 = vsub.f32 %v849_v1, %v2158_v24  ;;  %v734_v1 = vld [vmem:[%s4056_s2 + $0x1c8] sm:$0xff] }
  0xd0   :  { %v3294_v46 = vsel %vm913_vm13, 1.0, %v4147_v34  ;;  %v852_v33 = vadd.f32 %v3101_v12, %v644_v47  ;;  %2036 = vrcp.f32 %v527_v44  ;;  %v461_v18 = vmul.f32 1.442695, %v342_v49  ;;  %v75_v47 = vld [vmem:[%s4054_s0 + $0x1c0] sm:$0xff] }
  0xd1   :  { %4210 = vst [vmem:[#allocation68_spill] sm:$0xff] %v3286_v25  ;;  %4211 = vst [vmem:[#allocation69_spill] sm:$0xff] %v3294_v46  ;;  %v2031_v7 = vpop.eup %2030  ;;  %1337 = vmax.xlane.f32.xlu0 %v3286_v25  ;;  %v3301_v13 = vadd.f32 %v3282_v3, %v1170_v48  ;;  %v1169_v29 = vmul.f32 %v3294_v46, %v1105_v21  ;;  %2038 = vpow2.f32 %v451_v58  ;;  %v733_v58 = vld [vmem:[%s4056_s2 + $0x1c0] sm:$0xff]  ;;  %v736_v21 = vld [vmem:[%s4056_s2 + $0x1d8] sm:$0xff]  ;;  %v3331_v3 = vmul.f32 0.2, %v734_v1  ;;  %v3345_v1 = vpop.xlane.xlu0 %1255 }
  0xd2   :  { %v341_v40 = vmul.f32 %v2256_v26, %v271_v43  ;;  %vm916_vm14 = vcmp.gt.f32.partialorder %v852_v33, %v2158_v24  ;;  %v1108_v12 = vsub.f32 %v852_v33, %v2158_v24  ;;  %v530_v49 = vadd.f32 1.0, %v2031_v7  ;;  %v78_v43 = vld [vmem:[%s4054_s0 + $0x1d8] sm:$0xff] }
  0xd3   :  { %4212 = vst [vmem:[#allocation70_spill] sm:$0xff] %v3301_v13  ;;  %2040 = vpow2.f32 %v457_v10  ;;  %1343 = vmax.xlane.f32.xlu1 %v3301_v13  ;;  %v3321_v44 = vadd.f32 %v3294_v46, %v1169_v29  ;;  %v3324_v48 = vsel %vm916_vm14, 1.0, %v4147_v34  ;;  %v274_v7 = vsub.f32 0.0, %v3262_v31  ;;  %v77_v29 = vld [vmem:[%s4054_s0 + $0x1d0] sm:$0xff]  ;;  %v80_v31 = vld [vmem:[%s4054_s0 + $0x1e8] sm:$0xff] }
  0xd4   :  { %4214 = vst [vmem:[#allocation72_spill] sm:$0xff] %v3324_v48  ;;  %2042 = vpow2.f32 %v455_v42  ;;  %v459_v10 = vmul.f32 1.442695, %v341_v40  ;;  %v1172_v33 = vmul.f32 %v3324_v48, %v1108_v12  ;;  %v139_v42 = vmax.f32 %v75_v47, 0.0  ;;  %v735_v12 = vld [vmem:[%s4056_s2 + $0x1d0] sm:$0xff] }
  0xd5   :  { %4213 = vst [vmem:[#allocation71_spill] sm:$0xff] %v3321_v44  ;;  %2044 = vrcp.f32 %v530_v49  ;;  %1341 = vmax.xlane.f32.xlu0 %v3321_v44  ;;  %v3337_v40 = vmul.f32 0.2, %v733_v58  ;;  %v142_v46 = vmax.f32 %v78_v43, 0.0  ;;  %v3351_v47 = vmul.f32 0.2, %v736_v21  ;;  %v3353_v58 = vpop.xlane.xlu1 %1263 }
  0xd6   :  { %2046 = vpow2.f32 %v461_v18  ;;  %v2033_v49 = vpop.eup %2032  ;;  %v3348_v13 = vadd.f32 %v3324_v48, %v1172_v33  ;;  %v344_v18 = vmul.f32 %v2256_v26, %v274_v7  ;;  %v209_v44 = vsub.f32 %v139_v42, %v2144_v19 }
  0xd7   :  { %2048 = vpow2.f32 %v459_v10  ;;  %4216 = vst [vmem:[#allocation74_spill] sm:$0xff] %v3351_v47  ;;  %v642_v43 = vmul.f32 %v2033_v49, %v2158_v24  ;;  %v212_v20 = vsub.f32 %v142_v46, %v2144_v19  ;;  %v141_v25 = vmax.f32 %v77_v29, 0.0 }
  0xd8   :  { %4215 = vst [vmem:[#allocation73_spill] sm:$0xff] %v3348_v13  ;;  %v2035_v33 = vpop.eup %2034  ;;  %1347 = vmax.xlane.f32.xlu1 %v3348_v13  ;;  %v465_v10 = vmul.f32 1.442695, %v344_v18  ;;  %v3364_v21 = vmul.f32 0.2, %v735_v12  ;;  %v144_v7 = vmax.f32 %v80_v31, 0.0  ;;  %vm1383_vm3 = vcmp.ge.f32.partialorder %v2414_v2, %v3268_v39 }
  0xd9   :  { %v851_v48 = vadd.f32 %v3108_v22, %v642_v43  ;;  %v648_v49 = vmul.f32 %v2035_v33, %v2158_v24  ;;  %v273_v42 = vsub.f32 0.0, %v209_v44  ;;  %v276_v36 = vsub.f32 0.0, %v212_v20  ;;  %v3379_v20 = vpop.xlane.xlu0 %1261 }
  0xda   :  { %4217 = vst [vmem:[#allocation75_spill] sm:$0xff] %v3364_v21  ;;  %v2037_v46 = vpop.eup %2036  ;;  %2050 = vpow2.f32 %v465_v10  ;;  %v3369_v29 = vsub.f32 %v141_v25, %v2144_v19  ;;  %v3372_v30 = vsub.f32 %v144_v7, %v2144_v19  ;;  %v143_v13 = vmax.f32 %v3361_v15, 0.0  ;;  %v3386_v10 = vpop.xlane.xlu1 %1267 }
  0xdb   :  { %v2039_v18 = vpop.eup %2038  ;;  %vm915_vm15 = vcmp.gt.f32.partialorder %v851_v48, %v2158_v24  ;;  %v1107_v12 = vsub.f32 %v851_v48, %v2158_v24  ;;  %v854_v22 = vadd.f32 %v3122_v53, %v648_v49  ;;  %v646_v44 = vmul.f32 %v2037_v46, %v2158_v24 }
  0xdc   :  { %v3382_v25 = vsel %vm915_vm15, 1.0, %v4147_v34  ;;  %v529_v43 = vadd.f32 1.0, %v2039_v18  ;;  %v343_v33 = vmul.f32 %v2256_v26, %v273_v42  ;;  %v346_v15 = vmul.f32 %v2256_v26, %v276_v36 }
  0xdd   :  { %v2041_v31 = vpop.eup %2040  ;;  %4218 = vst [vmem:[#allocation76_spill] sm:$0xff] %v3382_v25  ;;  %v1171_v48 = vmul.f32 %v3382_v25, %v1107_v12  ;;  %vm918_vm0 = vcmp.gt.f32.partialorder %v854_v22, %v2158_v24  ;;  %v1110_v53 = vsub.f32 %v854_v22, %v2158_v24  ;;  %v853_v49 = vadd.f32 %v3133_v63, %v646_v44 }
  0xde   :  { %v2043_v7 = vpop.eup %2042  ;;  %v3393_v35 = vsel %vm918_vm0, 1.0, %v4147_v34  ;;  %2052 = vrcp.f32 %v529_v43  ;;  %v532_v18 = vadd.f32 1.0, %v2041_v31  ;;  %vm1381_vm10 = vcmp.ge.f32.partialorder %v2422_v9, %v3291_v52 }
  0xdf   :  { %v2045_v46 = vpop.eup %2044  ;;  %4219 = vst [vmem:[#allocation77_spill] sm:$0xff] %v3393_v35  ;;  %v531_v42 = vadd.f32 1.0, %v2043_v7  ;;  %v3396_v36 = vadd.f32 %v3382_v25, %v1171_v48  ;;  %v1174_v47 = vmul.f32 %v3393_v35, %v1110_v53  ;;  %vm917_vm1 = vcmp.gt.f32.partialorder %v853_v49, %v2158_v24  ;;  %v738_v53 = vld [vmem:[%s4056_s2 + $0x1e8] sm:$0xff] }
  0xe0   :  { %v2047_v21 = vpop.eup %2046  ;;  %v1109_v12 = vsub.f32 %v853_v49, %v2158_v24  ;;  %v3402_v63 = vsel %vm917_vm1, 1.0, %v4147_v34  ;;  %v652_v44 = vmul.f32 %v2045_v46, %v2158_v24  ;;  %2054 = vrcp.f32 %v532_v18  ;;  %v3413_v49 = vpop.xlane.xlu0 %1265 }
  0xe1   :  { %4220 = vst [vmem:[#allocation78_spill] sm:$0xff] %v3396_v36  ;;  %v2049_v22 = vpop.eup %2048  ;;  %4221 = vst [vmem:[#allocation79_spill] sm:$0xff] %v3402_v63  ;;  %v534_v43 = vadd.f32 1.0, %v2047_v21  ;;  %1345 = vmax.xlane.f32.xlu0 %v3396_v36  ;;  %v3407_v31 = vadd.f32 %v3393_v35, %v1174_v47  ;;  %2056 = vrcp.f32 %v531_v42  ;;  %v463_v46 = vmul.f32 1.442695, %v343_v33  ;;  %v3416_v18 = vpop.xlane.xlu1 %1271 }
  0xe2   :  { %v1173_v7 = vmul.f32 %v3402_v63, %v1109_v12  ;;  %v533_v48 = vadd.f32 1.0, %v2049_v22  ;;  %v856_v25 = vadd.f32 %v3214_v37, %v652_v44  ;;  %v469_v21 = vmul.f32 1.442695, %v346_v15  ;;  %v737_v15 = vld [vmem:[%s4056_s2 + $0x1e0] sm:$0xff] }
  0xe3   :  { %4222 = vst [vmem:[#allocation80_spill] sm:$0xff] %v3407_v31  ;;  %2058 = vrcp.f32 %v534_v43  ;;  %1351 = vmax.xlane.f32.xlu1 %v3407_v31  ;;  %v275_v42 = vsub.f32 0.0, %v3369_v29  ;;  %v278_v12 = vsub.f32 0.0, %v3372_v30  ;;  %v3426_v44 = vmul.f32 0.2, %v738_v53  ;;  %v82_v43 = vld [vmem:[%s4054_s0 + $0x1f8] sm:$0xff] }
  0xe4   :  { %v3420_v47 = vadd.f32 %v3402_v63, %v1173_v7  ;;  %2060 = vrcp.f32 %v533_v48  ;;  %v2051_v22 = vpop.eup %2050  ;;  %vm920_vm2 = vcmp.gt.f32.partialorder %v856_v25, %v2158_v24  ;;  %v1112_v37 = vsub.f32 %v856_v25, %v2158_v24  ;;  %v740_v63 = vld [vmem:[%s4056_s2 + $0x1f8] sm:$0xff] }
  0xe5   :  { %v213_v33 = vsub.f32 %v143_v13, %v2144_v19  ;;  %v3437_v30 = vsel %vm920_vm2, 1.0, %v4147_v34  ;;  %v536_v29 = vadd.f32 1.0, %v2051_v22  ;;  %2062 = vpow2.f32 %v463_v46  ;;  %v81_v13 = vld [vmem:[%s4054_s0 + $0x1f0] sm:$0xff] }
  0xe6   :  { %4223 = vst [vmem:[#allocation81_spill] sm:$0xff] %v3420_v47  ;;  %1349 = vmax.xlane.f32.xlu0 %v3420_v47  ;;  %4224 = vst [vmem:[#allocation82_spill] sm:$0xff] %v3437_v30  ;;  %v345_v25 = vmul.f32 %v2256_v26, %v275_v42  ;;  %v1176_v7 = vmul.f32 %v3437_v30, %v1112_v37  ;;  %2064 = vpow2.f32 %v469_v21  ;;  %v3448_v22 = vmul.f32 0.2, %v737_v15  ;;  %v3450_v42 = vpop.xlane.xlu0 %1269 }
  0xe7   :  { %v348_v48 = vmul.f32 %v2256_v26, %v278_v12  ;;  %v277_v53 = vsub.f32 0.0, %v213_v33  ;;  %2066 = vrcp.f32 %v536_v29  ;;  %v146_v46 = vmax.f32 %v82_v43, 0.0  ;;  %v3456_v33 = vpop.xlane.xlu1 %1275 }
  0xe8   :  { %v467_v47 = vmul.f32 1.442695, %v345_v25  ;;  %v2053_v35 = vpop.eup %2052  ;;  %v3453_v31 = vadd.f32 %v3437_v30, %v1176_v7  ;;  %v145_v12 = vmax.f32 %v81_v13, 0.0  ;;  %v3460_v15 = vmul.f32 0.2, %v740_v63 }
  0xe9   :  { %v473_v37 = vmul.f32 1.442695, %v348_v48  ;;  %v347_v21 = vmul.f32 %v2256_v26, %v277_v53  ;;  %v650_v36 = vmul.f32 %v2053_v35, %v2158_v24  ;;  %v216_v29 = vsub.f32 %v146_v46, %v2144_v19 }
  0xea   :  { %4225 = vst [vmem:[#allocation83_spill] sm:$0xff] %v3453_v31  ;;  %2068 = vpow2.f32 %v467_v47  ;;  %4226 = vst [vmem:[#allocation84_spill] sm:$0xff] %v3460_v15  ;;  %v2055_v43 = vpop.eup %2054  ;;  %1355 = vmax.xlane.f32.xlu1 %v3453_v31  ;;  %v3464_v7 = vsub.f32 %v145_v12, %v2144_v19  ;;  %v1771_v63 = vsel %vm1383_vm3, 1.0, %v4147_v34  ;;  %vm1384_vm11 = vcmp.ge.f32.partialorder %v2429_v28, %v3297_v62 }
  0xeb   :  { %2070 = vpow2.f32 %v473_v37  ;;  %v471_v25 = vmul.f32 1.442695, %v347_v21  ;;  %v2057_v13 = vpop.eup %2056  ;;  %v855_v48 = vadd.f32 %v3232_v45, %v650_v36  ;;  %v656_v35 = vmul.f32 %v2055_v43, %v2158_v24  ;;  %v3478_v36 = vpop.xlane.xlu0 %1273 }
  0xec   :  { %v280_v47 = vsub.f32 0.0, %v216_v29  ;;  %v654_v46 = vmul.f32 %v2057_v13, %v2158_v24  ;;  %v279_v37 = vsub.f32 0.0, %v3464_v7  ;;  %v1575_v19 = vmul.f32 %v1771_v63, %v2396_v16 }
  0xed   :  { %v2059_v53 = vpop.eup %2058  ;;  %2072 = vpow2.f32 %v471_v25  ;;  %vm919_vm4 = vcmp.gt.f32.partialorder %v855_v48, %v2158_v24  ;;  %v1111_v2 = vsub.f32 %v855_v48, %v2158_v24  ;;  %v858_v45 = vadd.f32 %v3234_v27, %v656_v35  ;;  %v3489_v25 = vpop.xlane.xlu1 %1279 }
  0xee   :  { %v2061_v21 = vpop.eup %2060  ;;  %v660_v39 = vmul.f32 %v2059_v53, %v2158_v24  ;;  %v3481_v12 = vsel %vm919_vm4, 1.0, %v4147_v34  ;;  %v857_v29 = vadd.f32 %v3249_v60, %v654_v46  ;;  %v350_v16 = vmul.f32 %v2256_v26, %v280_v47  ;;  %1639 = vst [vmem:[%s4057_s3 + $0x10] sm:$0xff] %v1575_v19 }
  0xef   :  { %4227 = vst [vmem:[#allocation85_spill] sm:$0xff] %v3481_v12  ;;  %v658_v43 = vmul.f32 %v2061_v21, %v2158_v24  ;;  %v2063_v27 = vpop.eup %2062  ;;  %v1175_v7 = vmul.f32 %v3481_v12, %v1111_v2  ;;  %vm922_vm5 = vcmp.gt.f32.partialorder %v858_v45, %v2158_v24  ;;  %v1114_v13 = vsub.f32 %v858_v45, %v2158_v24 }
  0xf0   :  { %v860_v48 = vadd.f32 %v3251_v61, %v660_v39  ;;  %v2065_v60 = vpop.eup %2064  ;;  %v3496_v35 = vsel %vm922_vm5, 1.0, %v4147_v34  ;;  %vm921_vm6 = vcmp.gt.f32.partialorder %v857_v29, %v2158_v24  ;;  %v1113_v47 = vsub.f32 %v857_v29, %v2158_v24 }
  0xf1   :  { %4228 = vst [vmem:[#allocation86_spill] sm:$0xff] %v3496_v35  ;;  %v859_v63 = vadd.f32 %v3255_v50, %v658_v43  ;;  %v2067_v53 = vpop.eup %2066  ;;  %v3502_v46 = vadd.f32 %v3481_v12, %v1175_v7  ;;  %v1178_v19 = vmul.f32 %v3496_v35, %v1114_v13  ;;  %v3506_v21 = vsel %vm921_vm6, 1.0, %v4147_v34  ;;  %v3524_v13 = vpop.xlane.xlu0 %1277 }
  0xf2   :  { %vm924_vm7 = vcmp.gt.f32.partialorder %v860_v48, %v2158_v24  ;;  %v1177_v61 = vmul.f32 %v3506_v21, %v1113_v47  ;;  %v1116_v45 = vsub.f32 %v860_v48, %v2158_v24  ;;  %v664_v7 = vmul.f32 %v2067_v53, %v2158_v24  ;;  %4230 = vst [vmem:[#allocation88_spill] sm:$0xff] %v3524_v13  ;;  %v3530_v31 = vpop.xlane.xlu1 %1283 }
  0xf3   :  { %4229 = vst [vmem:[#allocation87_spill] sm:$0xff] %v3502_v46  ;;  %v3511_v2 = vsel %vm924_vm7, 1.0, %v4147_v34  ;;  %vm923_vm8 = vcmp.gt.f32.partialorder %v859_v63, %v2158_v24  ;;  %1353 = vmax.xlane.f32.xlu0 %v3502_v46  ;;  %v3517_v39 = vadd.f32 %v3496_v35, %v1178_v19  ;;  %v1115_v43 = vsub.f32 %v859_v63, %v2158_v24 }
  0xf4   :  { %v2069_v50 = vpop.eup %2068  ;;  %v3520_v29 = vsel %vm923_vm8, 1.0, %v4147_v34  ;;  %v3527_v48 = vadd.f32 %v3506_v21, %v1177_v61  ;;  %v1180_v12 = vmul.f32 %v3511_v2, %v1116_v45  ;;  %v535_v30 = vadd.f32 1.0, %v2063_v27 }
  0xf5   :  { %v2071_v47 = vpop.eup %2070  ;;  %v538_v46 = vadd.f32 1.0, %v2065_v60  ;;  %1359 = vmax.xlane.f32.xlu1 %v3517_v39  ;;  %v1179_v19 = vmul.f32 %v3520_v29, %v1115_v43  ;;  %v862_v63 = vadd.f32 %v3331_v3, %v664_v7  ;;  %v537_v35 = vadd.f32 1.0, %v2069_v50 }
  0xf6   :  { %v540_v53 = vadd.f32 1.0, %v2071_v47  ;;  %v3536_v13 = vadd.f32 %v3511_v2, %v1180_v12  ;;  %2074 = vrcp.f32 %v535_v30  ;;  %v477_v61 = vmul.f32 1.442695, %v350_v16  ;;  %v4233_v47 = vld [vmem:[#allocation74_spill] sm:$0xff] }
  0xf7   :  { %v2073_v15 = vpop.eup %2072  ;;  %v349_v45 = vmul.f32 %v2256_v26, %v279_v37  ;;  %1357 = vmax.xlane.f32.xlu0 %v3527_v48  ;;  %v3541_v27 = vadd.f32 %v3520_v29, %v1179_v19  ;;  %vm926_vm9 = vcmp.gt.f32.partialorder %v862_v63, %v2158_v24  ;;  %v1118_v60 = vsub.f32 %v862_v63, %v2158_v24 }
  0xf8   :  { %2076 = vrcp.f32 %v538_v46  ;;  %v3546_v3 = vsel %vm926_vm9, 1.0, %v4147_v34  ;;  %v539_v12 = vadd.f32 1.0, %v2073_v15  ;;  %v3554_v30 = vpop.xlane.xlu0 %1281  ;;  %v1769_v37 = vsel %vm1381_vm10, 1.0, %v4147_v34 }
  0xf9   :  { %2078 = vrcp.f32 %v537_v35  ;;  %v475_v50 = vmul.f32 1.442695, %v349_v45  ;;  %1363 = vmax.xlane.f32.xlu1 %v3536_v13  ;;  %v1182_v26 = vmul.f32 %v3546_v3, %v1118_v60  ;;  %v1772_v16 = vsel %vm1384_vm11, 1.0, %v4147_v34  ;;  %v3560_v15 = vpop.xlane.xlu1 %1287 }
  0xfa   :  { %2080 = vrcp.f32 %v540_v53  ;;  %vm1382_vm12 = vcmp.ge.f32.partialorder %v2436_v11, %v3345_v1  ;;  %v1573_v9 = vmul.f32 %v1769_v37, %v2403_v57  ;;  %v1576_v28 = vmul.f32 %v1772_v16, %v2409_v0  ;;  %v4235_v53 = vld [vmem:[#allocation3_spill] sm:$0xff] }
  0xfb   :  { %2082 = vrcp.f32 %v539_v12  ;;  %1361 = vmax.xlane.f32.xlu0 %v3541_v27  ;;  %v3564_v35 = vadd.f32 %v3546_v3, %v1182_v26  ;;  %v1770_v52 = vsel %vm1382_vm12, 1.0, %v4147_v34  ;;  %vm1386_vm13 = vcmp.ge.f32.partialorder %v2453_v51, %v3353_v58  ;;  %v4236_v12 = vld [vmem:[#allocation75_spill] sm:$0xff] }
  0xfc   :  { %2084 = vpow2.f32 %v477_v61  ;;  %vm1385_vm14 = vcmp.ge.f32.partialorder %v2474_v14, %v3379_v20  ;;  %1637 = vst [vmem:[%s4057_s3] sm:$0xff] %v1573_v9  ;;  %1640 = vst [vmem:[%s4057_s3 + $0x18] sm:$0xff] %v1576_v28  ;;  %v1574_v57 = vmul.f32 %v1770_v52, %v2418_v5  ;;  %v1774_v0 = vsel %vm1386_vm13, 1.0, %v4147_v34  ;;  %v3585_v51 = vpop.xlane.xlu0 %1285 }
  0xfd   :  { %2086 = vpow2.f32 %v475_v50  ;;  %1367 = vmax.xlane.f32.xlu1 %v3564_v35  ;;  %v1773_v11 = vsel %vm1385_vm14, 1.0, %v4147_v34  ;;  %vm1388_vm15 = vcmp.ge.f32.partialorder %v2477_v17, %v3386_v10  ;;  %v1578_v14 = vmul.f32 %v1774_v0, %v2439_v41  ;;  %v3601_v41 = vpop.xlane.xlu1 %1291 }
  0xfe   :  { %v1577_v62 = vmul.f32 %v1773_v11, %v2456_v56  ;;  %v1776_v1 = vsel %vm1388_vm15, 1.0, %v4147_v34  ;;  %vm1387_vm0 = vcmp.ge.f32.partialorder %v2488_v8, %v3413_v49  ;;  %1638 = vst [vmem:[%s4057_s3 + $0x8] sm:$0xff] %v1574_v57  ;;  %vm1390_vm1 = vcmp.ge.f32.partialorder %v2505_v38, %v3416_v18 }
  0xff   :  { %v1580_v5 = vmul.f32 %v1776_v1, %v2459_v54  ;;  %v1775_v58 = vsel %vm1387_vm0, 1.0, %v4147_v34  ;;  %vm1389_vm2 = vcmp.ge.f32.partialorder %v2508_v4, %v3450_v42  ;;  %1642 = vst [vmem:[%s4057_s3 + $0x28] sm:$0xff] %v1578_v14  ;;  %v1778_v17 = vsel %vm1390_vm1, 1.0, %v4147_v34 }
 0x100   :  { %v2075_v56 = vpop.eup %2074  ;;  %1641 = vst [vmem:[%s4057_s3 + $0x20] sm:$0xff] %v1577_v62  ;;  %v1579_v54 = vmul.f32 %v1775_v58, %v2466_v59  ;;  %v1777_v8 = vsel %vm1389_vm2, 1.0, %v4147_v34  ;;  %vm1392_vm3 = vcmp.ge.f32.partialorder %v2536_v6, %v3456_v33  ;;  %v1582_v20 = vmul.f32 %v1778_v17, %v2491_v23  ;;  %v3621_v49 = vpop.xlane.xlu0 %1289  ;;  %v4231_v33 = vld [vmem:[#allocation4_spill] sm:$0xff]  ;;  %v4232_v23 = vld [vmem:[#allocation5_spill] sm:$0xff] }
 0x101   :  { %v662_v4 = vmul.f32 %v2075_v56, %v2158_v24  ;;  %1644 = vst [vmem:[%s4057_s3 + $0x38] sm:$0xff] %v1580_v5  ;;  %v1581_v10 = vmul.f32 %v1777_v8, %v2494_v32  ;;  %v1780_v59 = vsel %vm1392_vm3, 1.0, %v4147_v34  ;;  %vm1391_vm4 = vcmp.ge.f32.partialorder %v4231_v33, %v3478_v36  ;;  %v3653_v37 = vpop.xlane.xlu1 %1295 }
 0x102   :  { %v2077_v38 = vpop.eup %2076  ;;  %1643 = vst [vmem:[%s4057_s3 + $0x30] sm:$0xff] %v1579_v54  ;;  %v1584_v6 = vmul.f32 %v1780_v59, %v2511_v55  ;;  %vm1394_vm5 = vcmp.ge.f32.partialorder %v4232_v23, %v3489_v25  ;;  %1646 = vst [vmem:[%s4057_s3 + $0x48] sm:$0xff] %v1582_v20  ;;  %v1779_v55 = vsel %vm1391_vm4, 1.0, %v4147_v34  ;;  %v4237_v59 = vld [vmem:[#allocation88_spill] sm:$0xff] }
 0x103   :  { %v2079_v18 = vpop.eup %2078  ;;  %v668_v42 = vmul.f32 %v2077_v38, %v2158_v24  ;;  %v861_v46 = vadd.f32 %v3337_v40, %v662_v4  ;;  %1645 = vst [vmem:[%s4057_s3 + $0x40] sm:$0xff] %v1581_v10  ;;  %v1782_v36 = vsel %vm1394_vm5, 1.0, %v4147_v34  ;;  %v4234_v40 = vld [vmem:[#allocation2_spill] sm:$0xff] }
 0x104   :  { %v2081_v32 = vpop.eup %2080  ;;  %v666_v43 = vmul.f32 %v2079_v18, %v2158_v24  ;;  %1648 = vst [vmem:[%s4057_s3 + $0x58] sm:$0xff] %v1584_v6  ;;  %v1583_v63 = vmul.f32 %v1779_v55, %v4234_v40  ;;  %v1586_v61 = vmul.f32 %v1782_v36, %v4235_v53  ;;  %v3667_v57 = vpop.xlane.xlu0 %1293  ;;  %v4238_v18 = vld [vmem:[#allocation8_spill] sm:$0xff]  ;;  %v4240_v55 = vld [vmem:[#allocation9_spill] sm:$0xff] }
 0x105   :  { %v2083_v7 = vpop.eup %2082  ;;  %v864_v25 = vadd.f32 %v4233_v47, %v668_v42  ;;  %v672_v19 = vmul.f32 %v2081_v32, %v2158_v24  ;;  %vm925_vm6 = vcmp.gt.f32.partialorder %v861_v46, %v2158_v24  ;;  %v1117_v60 = vsub.f32 %v861_v46, %v2158_v24  ;;  %v4239_v46 = vld [vmem:[#allocation6_spill] sm:$0xff] }
 0x106   :  { %v2085_v45 = vpop.eup %2084  ;;  %v863_v50 = vadd.f32 %v4236_v12, %v666_v43  ;;  %v670_v26 = vmul.f32 %v2083_v7, %v2158_v24  ;;  %v3656_v9 = vsel %vm925_vm6, 1.0, %v4147_v34  ;;  %1647 = vst [vmem:[%s4057_s3 + $0x50] sm:$0xff] %v1583_v63  ;;  %1650 = vst [vmem:[%s4057_s3 + $0x68] sm:$0xff] %v1586_v61  ;;  %vm1393_vm11 = vcmp.ge.f32.partialorder %v4238_v18, %v4237_v59  ;;  %v4241_v7 = vld [vmem:[#allocation13_spill] sm:$0xff]  ;;  %v4242_v47 = vld [vmem:[#allocation14_spill] sm:$0xff] }
 0x107   :  { %v2087_v16 = vpop.eup %2086  ;;  %vm928_vm7 = vcmp.gt.f32.partialorder %v864_v25, %v2158_v24  ;;  %v1120_v28 = vsub.f32 %v864_v25, %v2158_v24  ;;  %v866_v52 = vadd.f32 %v3426_v44, %v672_v19  ;;  %v1181_v0 = vmul.f32 %v3656_v9, %v1117_v60  ;;  %v4243_v25 = vld [vmem:[#allocation15_spill] sm:$0xff]  ;;  %v4247_v60 = vld [vmem:[#allocation18_spill] sm:$0xff]  ;;  %v4248_v12 = vld [vmem:[#allocation12_spill] sm:$0xff] }
 0x108   :  { %v3671_v11 = vsel %vm928_vm7, 1.0, %v4147_v34  ;;  %vm927_vm8 = vcmp.gt.f32.partialorder %v863_v50, %v2158_v24  ;;  %v1119_v14 = vsub.f32 %v863_v50, %v2158_v24  ;;  %v865_v54 = vadd.f32 %v3448_v22, %v670_v26  ;;  %v1300_v22 = vpop.xlane.xlu1 %1299  ;;  %v1298_v23 = vpop.xlane.xlu0 %1297 }
 0x109   :  { %v1184_v44 = vmul.f32 %v3671_v11, %v1120_v28  ;;  %v3677_v62 = vsel %vm927_vm8, 1.0, %v4147_v34  ;;  %vm930_vm9 = vcmp.gt.f32.partialorder %v866_v52, %v2158_v24  ;;  %v1122_v1 = vsub.f32 %v866_v52, %v2158_v24  ;;  %v4250_v28 = vld [vmem:[#allocation22_spill] sm:$0xff] }
 0x10a   :  { %v3682_v5 = vadd.f32 %v3656_v9, %v1181_v0  ;;  %v1183_v58 = vmul.f32 %v3677_v62, %v1119_v14  ;;  %v3686_v56 = vsel %vm930_vm9, 1.0, %v4147_v34  ;;  %v542_v38 = vadd.f32 1.0, %v2085_v45 }
 0x10b   :  { %v3690_v17 = vadd.f32 %v3671_v11, %v1184_v44  ;;  %v1186_v8 = vmul.f32 %v3686_v56, %v1122_v1  ;;  %v541_v4 = vadd.f32 1.0, %v2087_v16  ;;  %vm929_vm10 = vcmp.gt.f32.partialorder %v865_v54, %v2158_v24  ;;  %v4249_v16 = vld [vmem:[#allocation19_spill] sm:$0xff] }
 0x10c   :  { %1365 = vmax.xlane.f32.xlu0 %v3682_v5  ;;  %v3695_v20 = vadd.f32 %v3677_v62, %v1183_v58  ;;  %v1121_v10 = vsub.f32 %v865_v54, %v2158_v24  ;;  %v3706_v6 = vsel %vm929_vm10, 1.0, %v4147_v34  ;;  %2088 = vrcp.f32 %v542_v38  ;;  %v1304_v52 = vpop.xlane.xlu1 %1303  ;;  %v4253_v58 = vld [vmem:[#allocation17_spill] sm:$0xff] }
 0x10d   :  { %1371 = vmax.xlane.f32.xlu1 %v3690_v17  ;;  %v3703_v42 = vadd.f32 %v3686_v56, %v1186_v8  ;;  %v1781_v33 = vsel %vm1393_vm11, 1.0, %v4147_v34  ;;  %2090 = vrcp.f32 %v541_v4  ;;  %vm1396_vm12 = vcmp.ge.f32.partialorder %v4240_v55, %v3530_v31  ;;  %v4244_v31 = vld [vmem:[#allocation7_spill] sm:$0xff]  ;;  %v4254_v8 = vld [vmem:[#allocation20_spill] sm:$0xff] }
 0x10e   :  { %v1185_v32 = vmul.f32 %v3706_v6, %v1121_v10  ;;  %v1585_v43 = vmul.f32 %v1781_v33, %v4239_v46  ;;  %v1784_v36 = vsel %vm1396_vm12, 1.0, %v4147_v34  ;;  %vm1395_vm13 = vcmp.ge.f32.partialorder %v4241_v7, %v3554_v30  ;;  %v4255_v10 = vld [vmem:[#allocation27_spill] sm:$0xff]  ;;  %v4257_v33 = vld [vmem:[#allocation28_spill] sm:$0xff] }
 0x10f   :  { %vm1398_vm14 = vcmp.ge.f32.partialorder %v4242_v47, %v3560_v15  ;;  %vm1397_vm15 = vcmp.ge.f32.partialorder %v4243_v25, %v3585_v51  ;;  %v1588_v40 = vmul.f32 %v1784_v36, %v4244_v31  ;;  %v1783_v63 = vsel %vm1395_vm13, 1.0, %v4147_v34  ;;  %v4245_v15 = vld [vmem:[#allocation10_spill] sm:$0xff]  ;;  %v4246_v51 = vld [vmem:[#allocation11_spill] sm:$0xff]  ;;  %v1302_v1 = vpop.xlane.xlu0 %1301  ;;  %v4261_v47 = vld [vmem:[#allocation25_spill] sm:$0xff] }
 0x110   :  { %1369 = vmax.xlane.f32.xlu0 %v3695_v20  ;;  %v3722_v19 = vadd.f32 %v3706_v6, %v1185_v32  ;;  %1649 = vst [vmem:[%s4057_s3 + $0x60] sm:$0xff] %v1585_v43  ;;  %v1786_v30 = vsel %vm1398_vm14, 1.0, %v4147_v34  ;;  %v1587_v53 = vmul.f32 %v1783_v63, %v4245_v15  ;;  %v1785_v45 = vsel %vm1397_vm15, 1.0, %v4147_v34  ;;  %v4258_v32 = vld [vmem:[#allocation29_spill] sm:$0xff]  ;;  %v4260_v36 = vld [vmem:[#allocation31_spill] sm:$0xff]  ;;  %v4262_v31 = vld [vmem:[#allocation26_spill] sm:$0xff] }
 0x111   :  { %1375 = vmax.xlane.f32.xlu1 %v3703_v42  ;;  %v1590_v61 = vmul.f32 %v1786_v30, %v4246_v51  ;;  %vm1400_vm0 = vcmp.ge.f32.partialorder %v4247_v60, %v3601_v41  ;;  %1652 = vst [vmem:[%s4057_s3 + $0x78] sm:$0xff] %v1588_v40  ;;  %v1589_v50 = vmul.f32 %v1785_v45, %v4248_v12  ;;  %v4251_v41 = vld [vmem:[#allocation16_spill] sm:$0xff]  ;;  %v4264_v60 = vld [vmem:[#allocation35_spill] sm:$0xff] }
 0x112   :  { %v1788_v26 = vsel %vm1400_vm0, 1.0, %v4147_v34  ;;  %vm1399_vm1 = vcmp.ge.f32.partialorder %v4249_v16, %v3621_v49  ;;  %vm1402_vm2 = vcmp.ge.f32.partialorder %v4250_v28, %v3653_v37  ;;  %1651 = vst [vmem:[%s4057_s3 + $0x70] sm:$0xff] %v1587_v53  ;;  %v4252_v49 = vld [vmem:[#allocation23_spill] sm:$0xff]  ;;  %v739_v37 = vld [vmem:[%s4056_s2 + $0x1f0] sm:$0xff]  ;;  %vm1404_vm4 = vcmp.ge.f32.partialorder %v4255_v10, %v1300_v22  ;;  %v4263_v53 = vld [vmem:[#allocation30_spill] sm:$0xff] }
 0x113   :  { %1654 = vst [vmem:[%s4057_s3 + $0x88] sm:$0xff] %v1590_v61  ;;  %v1592_v0 = vmul.f32 %v1788_v26, %v4251_v41  ;;  %v1787_v14 = vsel %vm1399_vm1, 1.0, %v4147_v34  ;;  %v1790_v44 = vsel %vm1402_vm2, 1.0, %v4147_v34  ;;  %vm1401_vm3 = vcmp.ge.f32.partialorder %v4252_v49, %v3667_v57  ;;  %1653 = vst [vmem:[%s4057_s3 + $0x80] sm:$0xff] %v1589_v50  ;;  %v4256_v57 = vld [vmem:[#allocation21_spill] sm:$0xff]  ;;  %v4259_v22 = vld [vmem:[#allocation24_spill] sm:$0xff] }
 0x114   :  { %1373 = vmax.xlane.f32.xlu0 %v3722_v19  ;;  %v1591_v54 = vmul.f32 %v1787_v14, %v4253_v58  ;;  %v1594_v38 = vmul.f32 %v1790_v44, %v4254_v8  ;;  %v1789_v4 = vsel %vm1401_vm3, 1.0, %v4147_v34  ;;  %v1792_v18 = vsel %vm1404_vm4, 1.0, %v4147_v34  ;;  %v4265_v50 = vld [vmem:[#allocation84_spill] sm:$0xff]  ;;  %v4268_v49 = vld [vmem:[#allocation33_spill] sm:$0xff] }
 0x115   :  { %1656 = vst [vmem:[%s4057_s3 + $0x98] sm:$0xff] %v1592_v0  ;;  %v1593_v59 = vmul.f32 %v1789_v4, %v4256_v57  ;;  %vm1403_vm5 = vcmp.ge.f32.partialorder %v4257_v33, %v1298_v23  ;;  %vm1406_vm6 = vcmp.ge.f32.partialorder %v4258_v32, %v1304_v52  ;;  %v1596_v46 = vmul.f32 %v1792_v18, %v4259_v22  ;;  %v4266_v28 = vld [vmem:[#allocation36_spill] sm:$0xff]  ;;  %v4269_v8 = vld [vmem:[#allocation37_spill] sm:$0xff] }
 0x116   :  { %1655 = vst [vmem:[%s4057_s3 + $0x90] sm:$0xff] %v1591_v54  ;;  %1658 = vst [vmem:[%s4057_s3 + $0xa8] sm:$0xff] %v1594_v38  ;;  %v1791_v43 = vsel %vm1403_vm5, 1.0, %v4147_v34  ;;  %v1794_v55 = vsel %vm1406_vm6, 1.0, %v4147_v34  ;;  %vm1405_vm7 = vcmp.ge.f32.partialorder %v4260_v36, %v1302_v1  ;;  %v2089_v7 = vpop.eup %2088  ;;  %v803_v23 = vmul.f32 0.2, %v739_v37  ;;  %v1308_v61 = vpop.xlane.xlu1 %1307 }
 0x117   :  { %1657 = vst [vmem:[%s4057_s3 + $0xa0] sm:$0xff] %v1593_v59  ;;  %v1595_v25 = vmul.f32 %v1791_v43, %v4261_v47  ;;  %v1598_v40 = vmul.f32 %v1794_v55, %v4262_v31  ;;  %v1793_v63 = vsel %vm1405_vm7, 1.0, %v4147_v34  ;;  %v2091_v30 = vpop.eup %2090  ;;  %v676_v15 = vmul.f32 %v2089_v7, %v2158_v24  ;;  %1660 = vst [vmem:[%s4057_s3 + $0xb8] sm:$0xff] %v1596_v46  ;;  %v1306_v12 = vpop.xlane.xlu0 %1305  ;;  %v4267_v41 = vld [vmem:[#allocation32_spill] sm:$0xff]  ;;  %v4272_v55 = vld [vmem:[#allocation38_spill] sm:$0xff] }
 0x118   :  { %v1597_v51 = vmul.f32 %v1793_v63, %v4263_v53  ;;  %v674_v45 = vmul.f32 %v2091_v30, %v2158_v24  ;;  %vm1408_vm8 = vcmp.ge.f32.partialorder %v4264_v60, %v1308_v61  ;;  %vm1407_vm9 = vcmp.ge.f32.partialorder %v4266_v28, %v1306_v12  ;;  %v4271_v22 = vld [vmem:[#allocation40_spill] sm:$0xff]  ;;  %v4273_v7 = vld [vmem:[#allocation42_spill] sm:$0xff]  ;;  %v4276_v30 = vld [vmem:[#allocation41_spill] sm:$0xff] }
 0x119   :  { %1659 = vst [vmem:[%s4057_s3 + $0xb0] sm:$0xff] %v1595_v25  ;;  %1662 = vst [vmem:[%s4057_s3 + $0xc8] sm:$0xff] %v1598_v40  ;;  %v868_v26 = vadd.f32 %v4265_v50, %v676_v15  ;;  %v1796_v16 = vsel %vm1408_vm8, 1.0, %v4147_v34  ;;  %v1795_v14 = vsel %vm1407_vm9, 1.0, %v4147_v34  ;;  %v4274_v25 = vld [vmem:[#allocation39_spill] sm:$0xff]  ;;  %v4279_v12 = vld [vmem:[#allocation44_spill] sm:$0xff] }
 0x11a   :  { %1661 = vst [vmem:[%s4057_s3 + $0xc0] sm:$0xff] %v1597_v51  ;;  %v867_v52 = vadd.f32 %v803_v23, %v674_v45  ;;  %v1600_v0 = vmul.f32 %v1796_v16, %v4267_v41  ;;  %v1599_v1 = vmul.f32 %v1795_v14, %v4268_v49  ;;  %v1312_v37 = vpop.xlane.xlu1 %1311  ;;  %v4275_v40 = vld [vmem:[#allocation43_spill] sm:$0xff]  ;;  %v4277_v51 = vld [vmem:[#allocation46_spill] sm:$0xff]  ;;  %v4280_v16 = vld [vmem:[#allocation45_spill] sm:$0xff] }
 0x11b   :  { %vm932_vm10 = vcmp.gt.f32.partialorder %v868_v26, %v2158_v24  ;;  %v1124_v44 = vsub.f32 %v868_v26, %v2158_v24  ;;  %vm1410_vm12 = vcmp.ge.f32.partialorder %v4269_v8, %v1312_v37  ;;  %v4278_v60 = vld [vmem:[#allocation47_spill] sm:$0xff]  ;;  %v4281_v41 = vld [vmem:[#allocation50_spill] sm:$0xff]  ;;  %v4284_v8 = vld [vmem:[#allocation49_spill] sm:$0xff] }
 0x11c   :  { %v3815_v58 = vsel %vm932_vm10, 1.0, %v4147_v34  ;;  %vm931_vm11 = vcmp.gt.f32.partialorder %v867_v52, %v2158_v24  ;;  %v1123_v54 = vsub.f32 %v867_v52, %v2158_v24  ;;  %1664 = vst [vmem:[%s4057_s3 + $0xd8] sm:$0xff] %v1600_v0  ;;  %1663 = vst [vmem:[%s4057_s3 + $0xd0] sm:$0xff] %v1599_v1  ;;  %v1798_v10 = vsel %vm1410_vm12, 1.0, %v4147_v34  ;;  %v4270_v24 = vld [vmem:[#allocation34_spill] sm:$0xff]  ;;  %v4283_v1 = vld [vmem:[#allocation52_spill] sm:$0xff] }
 0x11d   :  { %v1188_v38 = vmul.f32 %v3815_v58, %v1124_v44  ;;  %v3825_v4 = vsel %vm931_vm11, 1.0, %v4147_v34  ;;  %v1602_v59 = vmul.f32 %v1798_v10, %v4270_v24  ;;  %v4282_v44 = vld [vmem:[#allocation48_spill] sm:$0xff]  ;;  %v4285_v10 = vld [vmem:[#allocation53_spill] sm:$0xff]  ;;  %v4286_v24 = vld [vmem:[#allocation51_spill] sm:$0xff] }
 0x11e   :  { %v1187_v57 = vmul.f32 %v3825_v4, %v1123_v54 }
 0x11f   :  { %v3834_v18 = vadd.f32 %v3815_v58, %v1188_v38  ;;  %1666 = vst [vmem:[%s4057_s3 + $0xe8] sm:$0xff] %v1602_v59 }
 0x120   :  { %v3837_v33 = vadd.f32 %v3825_v4, %v1187_v57 }
 0x121   :  { %1379 = vmax.xlane.f32.xlu1 %v3834_v18 }
 0x122   :  { %1377 = vmax.xlane.f32.xlu0 %v3837_v33 }
 0x127   :  { %v1310_v32 = vpop.xlane.xlu0 %1309 }
 0x128   :  { %vm1409_vm13 = vcmp.ge.f32.partialorder %v4271_v22, %v1310_v32  ;;  %v1316_v43 = vpop.xlane.xlu1 %1315  ;;  %v4287_v22 = vld [vmem:[#allocation55_spill] sm:$0xff] }
 0x129   :  { %v1797_v46 = vsel %vm1409_vm13, 1.0, %v4147_v34  ;;  %vm1412_vm14 = vcmp.ge.f32.partialorder %v4273_v7, %v1316_v43  ;;  %v4288_v43 = vld [vmem:[#allocation54_spill] sm:$0xff] }
 0x12a   :  { %v1601_v36 = vmul.f32 %v1797_v46, %v4272_v55  ;;  %v1800_v23 = vsel %vm1412_vm14, 1.0, %v4147_v34  ;;  %v4289_v7 = vld [vmem:[#allocation58_spill] sm:$0xff] }
 0x12b   :  { %v1314_v47 = vpop.xlane.xlu0 %1313  ;;  %v1604_v31 = vmul.f32 %v1800_v23, %v4274_v25  ;;  %v4290_v25 = vld [vmem:[#allocation56_spill] sm:$0xff] }
 0x12c   :  { %1665 = vst [vmem:[%s4057_s3 + $0xe0] sm:$0xff] %v1601_v36  ;;  %vm1411_vm15 = vcmp.ge.f32.partialorder %v4275_v40, %v1314_v47  ;;  %v4291_v40 = vld [vmem:[#allocation61_spill] sm:$0xff] }
 0x12d   :  { %v1799_v63 = vsel %vm1411_vm15, 1.0, %v4147_v34  ;;  %1668 = vst [vmem:[%s4057_s3 + $0xf8] sm:$0xff] %v1604_v31 }
 0x12e   :  { %v1603_v15 = vmul.f32 %v1799_v63, %v4276_v30 }
 0x130   :  { %1667 = vst [vmem:[%s4057_s3 + $0xf0] sm:$0xff] %v1603_v15  ;;  %v1320_v53 = vpop.xlane.xlu1 %1319  ;;  %v4292_v15 = vld [vmem:[#allocation57_spill] sm:$0xff] }
 0x131   :  { %vm1414_vm0 = vcmp.ge.f32.partialorder %v4277_v51, %v1320_v53  ;;  %v4293_v51 = vld [vmem:[#allocation62_spill] sm:$0xff] }
 0x132   :  { %v1318_v61 = vpop.xlane.xlu0 %1317  ;;  %v1802_v45 = vsel %vm1414_vm0, 1.0, %v4147_v34 }
 0x133   :  { %vm1413_vm1 = vcmp.ge.f32.partialorder %v4278_v60, %v1318_v61  ;;  %v1606_v50 = vmul.f32 %v1802_v45, %v4279_v12  ;;  %v4294_v60 = vld [vmem:[#allocation59_spill] sm:$0xff] }
 0x134   :  { %v1801_v26 = vsel %vm1413_vm1, 1.0, %v4147_v34 }
 0x135   :  { %v1605_v28 = vmul.f32 %v1801_v26, %v4280_v16  ;;  %1670 = vst [vmem:[%s4057_s3 + $0x108] sm:$0xff] %v1606_v50  ;;  %v4295_v50 = vld [vmem:[#allocation64_spill] sm:$0xff] }
 0x137   :  { %1669 = vst [vmem:[%s4057_s3 + $0x100] sm:$0xff] %v1605_v28  ;;  %v1324_v52 = vpop.xlane.xlu1 %1323  ;;  %v4296_v28 = vld [vmem:[#allocation60_spill] sm:$0xff] }
 0x138   :  { %vm1416_vm2 = vcmp.ge.f32.partialorder %v4281_v41, %v1324_v52  ;;  %v4297_v41 = vld [vmem:[#allocation65_spill] sm:$0xff] }
 0x139   :  { %v1804_v0 = vsel %vm1416_vm2, 1.0, %v4147_v34  ;;  %v1322_v14 = vpop.xlane.xlu0 %1321 }
 0x13a   :  { %v1608_v49 = vmul.f32 %v1804_v0, %v4282_v44  ;;  %vm1415_vm3 = vcmp.ge.f32.partialorder %v4283_v1, %v1322_v14  ;;  %v4298_v14 = vld [vmem:[#allocation63_spill] sm:$0xff]  ;;  %v4299_v1 = vld [vmem:[#allocation68_spill] sm:$0xff] }
 0x13b   :  { %v1803_v37 = vsel %vm1415_vm3, 1.0, %v4147_v34  ;;  %v1328_v54 = vpop.xlane.xlu1 %1327 }
 0x13c   :  { %1672 = vst [vmem:[%s4057_s3 + $0x118] sm:$0xff] %v1608_v49  ;;  %v1607_v38 = vmul.f32 %v1803_v37, %v4284_v8  ;;  %vm1418_vm4 = vcmp.ge.f32.partialorder %v4285_v10, %v1328_v54  ;;  %v4300_v8 = vld [vmem:[#allocation66_spill] sm:$0xff] }
 0x13d   :  { %v1806_v57 = vsel %vm1418_vm4, 1.0, %v4147_v34  ;;  %v4301_v10 = vld [vmem:[#allocation70_spill] sm:$0xff] }
 0x13e   :  { %1671 = vst [vmem:[%s4057_s3 + $0x110] sm:$0xff] %v1607_v38  ;;  %v1610_v59 = vmul.f32 %v1806_v57, %v4286_v24 }
 0x140   :  { %1674 = vst [vmem:[%s4057_s3 + $0x128] sm:$0xff] %v1610_v59  ;;  %v4302_v59 = vld [vmem:[#allocation67_spill] sm:$0xff] }
 0x142   :  { %v1326_v32 = vpop.xlane.xlu0 %1325 }
 0x143   :  { %vm1417_vm5 = vcmp.ge.f32.partialorder %v4287_v22, %v1326_v32  ;;  %v4303_v22 = vld [vmem:[#allocation71_spill] sm:$0xff] }
 0x144   :  { %v1805_v46 = vsel %vm1417_vm5, 1.0, %v4147_v34 }
 0x145   :  { %v1609_v55 = vmul.f32 %v1805_v46, %v4288_v43  ;;  %v4304_v43 = vld [vmem:[#allocation69_spill] sm:$0xff] }
 0x147   :  { %1673 = vst [vmem:[%s4057_s3 + $0x120] sm:$0xff] %v1609_v55 }
 0x149   :  { %v1332_v36 = vpop.xlane.xlu1 %1331 }
 0x14a   :  { %vm1420_vm6 = vcmp.ge.f32.partialorder %v4289_v7, %v1332_v36  ;;  %v4305_v7 = vld [vmem:[#allocation73_spill] sm:$0xff] }
 0x14b   :  { %v1808_v23 = vsel %vm1420_vm6, 1.0, %v4147_v34  ;;  %v1330_v47 = vpop.xlane.xlu0 %1329 }
 0x14c   :  { %v1612_v31 = vmul.f32 %v1808_v23, %v4290_v25  ;;  %vm1419_vm7 = vcmp.ge.f32.partialorder %v4291_v40, %v1330_v47  ;;  %v4306_v47 = vld [vmem:[#allocation72_spill] sm:$0xff]  ;;  %v4307_v40 = vld [vmem:[#allocation78_spill] sm:$0xff] }
 0x14d   :  { %v1807_v63 = vsel %vm1419_vm7, 1.0, %v4147_v34  ;;  %v1336_v30 = vpop.xlane.xlu1 %1335 }
 0x14e   :  { %1676 = vst [vmem:[%s4057_s3 + $0x138] sm:$0xff] %v1612_v31  ;;  %v1611_v53 = vmul.f32 %v1807_v63, %v4292_v15  ;;  %vm1422_vm8 = vcmp.ge.f32.partialorder %v4293_v51, %v1336_v30  ;;  %v4308_v15 = vld [vmem:[#allocation76_spill] sm:$0xff] }
 0x14f   :  { %v1810_v61 = vsel %vm1422_vm8, 1.0, %v4147_v34  ;;  %v1334_v45 = vpop.xlane.xlu0 %1333  ;;  %v4309_v51 = vld [vmem:[#allocation80_spill] sm:$0xff] }
 0x150   :  { %1675 = vst [vmem:[%s4057_s3 + $0x130] sm:$0xff] %v1611_v53  ;;  %v1614_v12 = vmul.f32 %v1810_v61, %v4294_v60  ;;  %vm1421_vm9 = vcmp.ge.f32.partialorder %v4295_v50, %v1334_v45  ;;  %v4310_v60 = vld [vmem:[#allocation77_spill] sm:$0xff] }
 0x151   :  { %v1809_v26 = vsel %vm1421_vm9, 1.0, %v4147_v34  ;;  %v1340_v16 = vpop.xlane.xlu1 %1339  ;;  %v4311_v50 = vld [vmem:[#allocation81_spill] sm:$0xff] }
 0x152   :  { %1678 = vst [vmem:[%s4057_s3 + $0x148] sm:$0xff] %v1614_v12  ;;  %v1613_v52 = vmul.f32 %v1809_v26, %v4296_v28  ;;  %vm1424_vm10 = vcmp.ge.f32.partialorder %v4297_v41, %v1340_v16  ;;  %v4312_v16 = vld [vmem:[#allocation79_spill] sm:$0xff] }
 0x153   :  { %v1812_v0 = vsel %vm1424_vm10, 1.0, %v4147_v34  ;;  %v4313_v41 = vld [vmem:[#allocation83_spill] sm:$0xff] }
 0x154   :  { %1677 = vst [vmem:[%s4057_s3 + $0x140] sm:$0xff] %v1613_v52  ;;  %v1616_v44 = vmul.f32 %v1812_v0, %v4298_v14  ;;  %v4314_v14 = vld [vmem:[#allocation82_spill] sm:$0xff] }
 0x156   :  { %1680 = vst [vmem:[%s4057_s3 + $0x158] sm:$0xff] %v1616_v44 }
 0x15e   :  { %v1338_v49 = vpop.xlane.xlu0 %1337 }
 0x15f   :  { %vm1423_vm11 = vcmp.ge.f32.partialorder %v4299_v1, %v1338_v49  ;;  %v4315_v1 = vld [vmem:[#allocation87_spill] sm:$0xff] }
 0x160   :  { %v1811_v37 = vsel %vm1423_vm11, 1.0, %v4147_v34  ;;  %v1344_v54 = vpop.xlane.xlu1 %1343 }
 0x161   :  { %v1615_v38 = vmul.f32 %v1811_v37, %v4300_v8  ;;  %vm1426_vm12 = vcmp.ge.f32.partialorder %v4301_v10, %v1344_v54  ;;  %v4316_v8 = vld [vmem:[#allocation85_spill] sm:$0xff] }
 0x162   :  { %v1814_v57 = vsel %vm1426_vm12, 1.0, %v4147_v34  ;;  %v1342_v24 = vpop.xlane.xlu0 %1341 }
 0x163   :  { %1679 = vst [vmem:[%s4057_s3 + $0x150] sm:$0xff] %v1615_v38  ;;  %v1618_v32 = vmul.f32 %v1814_v57, %v4302_v59  ;;  %vm1425_vm13 = vcmp.ge.f32.partialorder %v4303_v22, %v1342_v24  ;;  %v4317_v24 = vld [vmem:[#allocation86_spill] sm:$0xff] }
 0x164   :  { %v1813_v46 = vsel %vm1425_vm13, 1.0, %v4147_v34 }
 0x165   :  { %1682 = vst [vmem:[%s4057_s3 + $0x168] sm:$0xff] %v1618_v32  ;;  %v1617_v55 = vmul.f32 %v1813_v46, %v4304_v43  ;;  %v1348_v36 = vpop.xlane.xlu1 %1347 }
 0x166   :  { %vm1428_vm14 = vcmp.ge.f32.partialorder %v4305_v7, %v1348_v36 }
 0x167   :  { %1681 = vst [vmem:[%s4057_s3 + $0x160] sm:$0xff] %v1617_v55  ;;  %v1816_v23 = vsel %vm1428_vm14, 1.0, %v4147_v34 }
 0x168   :  { %v1620_v25 = vmul.f32 %v1816_v23, %v4306_v47 }
 0x16a   :  { %1684 = vst [vmem:[%s4057_s3 + $0x178] sm:$0xff] %v1620_v25 }
 0x16e   :  { %v1346_v31 = vpop.xlane.xlu0 %1345 }
 0x16f   :  { %vm1427_vm15 = vcmp.ge.f32.partialorder %v4307_v40, %v1346_v31 }
 0x170   :  { %v1815_v63 = vsel %vm1427_vm15, 1.0, %v4147_v34  ;;  %v1352_v30 = vpop.xlane.xlu1 %1351 }
 0x171   :  { %v1619_v53 = vmul.f32 %v1815_v63, %v4308_v15  ;;  %vm1430_vm0 = vcmp.ge.f32.partialorder %v4309_v51, %v1352_v30 }
 0x172   :  { %v1818_v61 = vsel %vm1430_vm0, 1.0, %v4147_v34 }
 0x173   :  { %v1350_v45 = vpop.xlane.xlu0 %1349  ;;  %1683 = vst [vmem:[%s4057_s3 + $0x170] sm:$0xff] %v1619_v53  ;;  %v1622_v12 = vmul.f32 %v1818_v61, %v4310_v60 }
 0x174   :  { %vm1429_vm1 = vcmp.ge.f32.partialorder %v4311_v50, %v1350_v45 }
 0x175   :  { %v1817_v26 = vsel %vm1429_vm1, 1.0, %v4147_v34  ;;  %1686 = vst [vmem:[%s4057_s3 + $0x188] sm:$0xff] %v1622_v12 }
 0x176   :  { %v1621_v28 = vmul.f32 %v1817_v26, %v4312_v16 }
 0x177   :  { %v1356_v52 = vpop.xlane.xlu1 %1355 }
 0x178   :  { %1685 = vst [vmem:[%s4057_s3 + $0x180] sm:$0xff] %v1621_v28  ;;  %vm1432_vm2 = vcmp.ge.f32.partialorder %v4313_v41, %v1356_v52 }
 0x179   :  { %v1820_v0 = vsel %vm1432_vm2, 1.0, %v4147_v34 }
 0x17a   :  { %v1624_v44 = vmul.f32 %v1820_v0, %v4314_v14 }
 0x17c   :  { %1688 = vst [vmem:[%s4057_s3 + $0x198] sm:$0xff] %v1624_v44 }
 0x180   :  { %v1354_v49 = vpop.xlane.xlu0 %1353 }
 0x181   :  { %vm1431_vm3 = vcmp.ge.f32.partialorder %v4315_v1, %v1354_v49 }
 0x182   :  { %v1819_v37 = vsel %vm1431_vm3, 1.0, %v4147_v34  ;;  %v1360_v54 = vpop.xlane.xlu1 %1359 }
 0x183   :  { %v1623_v38 = vmul.f32 %v1819_v37, %v4316_v8  ;;  %vm1434_vm4 = vcmp.ge.f32.partialorder %v3517_v39, %v1360_v54 }
 0x184   :  { %v1822_v10 = vsel %vm1434_vm4, 1.0, %v4147_v34  ;;  %v1358_v57 = vpop.xlane.xlu0 %1357 }
 0x185   :  { %1687 = vst [vmem:[%s4057_s3 + $0x190] sm:$0xff] %v1623_v38  ;;  %v1626_v59 = vmul.f32 %v1822_v10, %v4317_v24  ;;  %vm1433_vm5 = vcmp.ge.f32.partialorder %v3527_v48, %v1358_v57 }
 0x186   :  { %v1821_v32 = vsel %vm1433_vm5, 1.0, %v4147_v34  ;;  %v1364_v22 = vpop.xlane.xlu1 %1363 }
 0x187   :  { %1690 = vst [vmem:[%s4057_s3 + $0x1a8] sm:$0xff] %v1626_v59  ;;  %v1625_v39 = vmul.f32 %v1821_v32, %v3506_v21  ;;  %vm1436_vm6 = vcmp.ge.f32.partialorder %v3536_v13, %v1364_v22 }
 0x188   :  { %v1824_v46 = vsel %vm1436_vm6, 1.0, %v4147_v34  ;;  %v1362_v43 = vpop.xlane.xlu0 %1361 }
 0x189   :  { %1689 = vst [vmem:[%s4057_s3 + $0x1a0] sm:$0xff] %v1625_v39  ;;  %v1628_v48 = vmul.f32 %v1824_v46, %v3511_v2  ;;  %vm1435_vm7 = vcmp.ge.f32.partialorder %v3541_v27, %v1362_v43 }
 0x18a   :  { %v1823_v55 = vsel %vm1435_vm7, 1.0, %v4147_v34  ;;  %v1368_v36 = vpop.xlane.xlu1 %1367 }
 0x18b   :  { %1692 = vst [vmem:[%s4057_s3 + $0x1b8] sm:$0xff] %v1628_v48  ;;  %v1627_v21 = vmul.f32 %v1823_v55, %v3520_v29  ;;  %vm1438_vm8 = vcmp.ge.f32.partialorder %v3564_v35, %v1368_v36 }
 0x18c   :  { %v1826_v13 = vsel %vm1438_vm8, 1.0, %v4147_v34 }
 0x18d   :  { %1691 = vst [vmem:[%s4057_s3 + $0x1b0] sm:$0xff] %v1627_v21  ;;  %v1630_v2 = vmul.f32 %v1826_v13, %v3546_v3 }
 0x18f   :  { %1694 = vst [vmem:[%s4057_s3 + $0x1c8] sm:$0xff] %v1630_v2 }
 0x199   :  { %v1366_v27 = vpop.xlane.xlu0 %1365 }
 0x19a   :  { %vm1437_vm9 = vcmp.ge.f32.partialorder %v3682_v5, %v1366_v27  ;;  %v1372_v7 = vpop.xlane.xlu1 %1371 }
 0x19b   :  { %v1825_v29 = vsel %vm1437_vm9, 1.0, %v4147_v34  ;;  %vm1440_vm10 = vcmp.ge.f32.partialorder %v3690_v17, %v1372_v7 }
 0x19c   :  { %v1629_v35 = vmul.f32 %v1825_v29, %v3656_v9  ;;  %v1828_v23 = vsel %vm1440_vm10, 1.0, %v4147_v34 }
 0x19d   :  { %v1632_v47 = vmul.f32 %v1828_v23, %v3671_v11  ;;  %v1370_v25 = vpop.xlane.xlu0 %1369 }
 0x19e   :  { %1693 = vst [vmem:[%s4057_s3 + $0x1c0] sm:$0xff] %v1629_v35  ;;  %vm1439_vm11 = vcmp.ge.f32.partialorder %v3695_v20, %v1370_v25  ;;  %v1376_v3 = vpop.xlane.xlu1 %1375 }
 0x19f   :  { %1696 = vst [vmem:[%s4057_s3 + $0x1d8] sm:$0xff] %v1632_v47  ;;  %v1827_v5 = vsel %vm1439_vm11, 1.0, %v4147_v34  ;;  %vm1442_vm12 = vcmp.ge.f32.partialorder %v3703_v42, %v1376_v3 }
 0x1a0   :  { %v1631_v9 = vmul.f32 %v1827_v5, %v3677_v62  ;;  %v1830_v11 = vsel %vm1442_vm12, 1.0, %v4147_v34 }
 0x1a1   :  { %v1634_v17 = vmul.f32 %v1830_v11, %v3686_v56  ;;  %v1374_v31 = vpop.xlane.xlu0 %1373 }
 0x1a2   :  { %1695 = vst [vmem:[%s4057_s3 + $0x1d0] sm:$0xff] %v1631_v9  ;;  %vm1441_vm13 = vcmp.ge.f32.partialorder %v3722_v19, %v1374_v31 }
 0x1a3   :  { %1698 = vst [vmem:[%s4057_s3 + $0x1e8] sm:$0xff] %v1634_v17  ;;  %v1829_v20 = vsel %vm1441_vm13, 1.0, %v4147_v34 }
 0x1a4   :  { %v1633_v42 = vmul.f32 %v1829_v20, %v3706_v6 }
 0x1a6   :  { %1697 = vst [vmem:[%s4057_s3 + $0x1e0] sm:$0xff] %v1633_v42 }
 0x1ae   :  { %v1380_v62 = vpop.xlane.xlu1 %1379 }
 0x1af   :  { %vm1444_vm14 = vcmp.ge.f32.partialorder %v3834_v18, %v1380_v62  ;;  %v1378_v56 = vpop.xlane.xlu0 %1377 }
 0x1b0   :  { %v1832_v40 = vsel %vm1444_vm14, 1.0, %v4147_v34  ;;  %vm1443_vm15 = vcmp.ge.f32.partialorder %v3837_v33, %v1378_v56 }
 0x1b1   :  { %v1636_v19 = vmul.f32 %v1832_v40, %v3815_v58  ;;  %v1831_v63 = vsel %vm1443_vm15, 1.0, %v4147_v34 }
 0x1b2   :  { %v1635_v30 = vmul.f32 %v1831_v63, %v3825_v4 }
 0x1b3   :  { %1700 = vst [vmem:[%s4057_s3 + $0x1f8] sm:$0xff] %v1636_v19 }
 0x1b4   :  { %1699 = vst [vmem:[%s4057_s3 + $0x1f0] sm:$0xff] %v1635_v30 }

</bundles_post_ra>
